<compile_context>
chip_gen: v7x
topology: tpu7x:2x2x1
jax: 0.10.0
libtpu: 0.0.40
codegen_flags: <defaults>
</compile_context>

<pallas_src>
import jax
import jax.numpy as jnp
from jax import lax
from jax.experimental import pallas as pl
from jax.experimental.pallas import tpu as pltpu

LEAKY_SLOPE = 0.01
BN_EPS = 1e-5
STRIDES = (2, 2, 1, 1)        # conv strides of the 4 layers

# Geometry for the 33x33 single-channel input:
#   conv1 (k=7,s=2): 33 -> 14 ; conv2 (k=3,s=2): 14 -> 6
#   conv3 (k=3,s=1):  6 ->  4 ; conv4 (k=3,s=1):  4 -> 2
PITCH = 14                    # shared flat pitch of activations in VMEM
DB = 200                      # per-batch lane offset inside activation buffers
HALF = DB // 2                # parity-block size of the layer-1 activation
F2 = (6 - 1) * PITCH + 6      # flat lanes computed per batch by layer 2 (=76)
F3 = (4 - 1) * PITCH + 4      # layer 3 (=46)
F4 = (2 - 1) * PITCH + 2      # layer 4 (=16)
C = 32                        # channel count of every conv layer
K1 = 56                       # layer-1 contraction dim (49 taps) padded to x8
NCLS = 2                      # output classes of the FC head


# ---------------------------------------------------------------------------
# Fused kernel: conv1 (matmul) + conv2/3/4 (fused-tap matmuls) + pool + FC
# ---------------------------------------------------------------------------
def _make_fused_kernel(n_batch):
    len2 = (n_batch - 1) * DB + F2
    len3 = (n_batch - 1) * DB + F3
    len4 = (n_batch - 1) * DB + F4

    def kernel(p1_ref, w1_ref, w234_ref, sh_ref, fcw_ref, o_ref,
               a1, a2, a3, a4, col, pooled):
        def bn_lrelu(y, layer):
            # per-channel BN shift (scale is folded into W), broadcast on lanes
            y = y + sh_ref[:, layer:layer + 1]
            return jnp.where(y >= 0.0, y, LEAKY_SLOPE * y)

        # ---- layer 1: one lane-dense MXU matmul [32,56] @ [56, N*DB] --------
        a1[...] = bn_lrelu(
            jnp.dot(w1_ref[...], p1_ref[...],
                    preferred_element_type=jnp.float32), 0)

        # ---- layers 2..4: 3x3 conv as ONE contraction per layer -------------
        # Build a channel-major im2col scratch [9*32, L] with 9 static
        # lane-shifted copies of the previous activation, then a single
        # [32, 288] @ [288, L] MXU dot (K fills the systolic depth).
        def conv3x3(src, li, dst, length, stride2):
            for kh in range(3):
                for kw in range(3):
                    shift = kh * PITCH + kw
                    if stride2:
                        start = (shift % 2) * HALF + shift // 2
                    else:
                        start = shift
                    t = kh * 3 + kw
                    col[t * C:(t + 1) * C, 0:length] = \
                        src[:, start:start + length]
            w = w234_ref[li * C:(li + 1) * C, :]              # [32, 288]
            dst[:, 0:length] = bn_lrelu(
                jnp.dot(w, col[:, 0:length],
                        preferred_element_type=jnp.float32), li + 1)

        conv3x3(a1, 0, a2, len2, stride2=True)
        conv3x3(a2, 1, a3, len3, stride2=False)
        conv3x3(a3, 2, a4, len4, stride2=False)

        # ---- head: adaptive_avg_pool2d((1,1)) over the 2x2 valid outputs,
        #      assembled into [32, N], then ONE Linear(32 -> 2) dot -----------
        for n in range(n_batch):
            b = n * DB
            q = a4[:, b:b + 2] + a4[:, b + PITCH:b + PITCH + 2]   # [32, 2]
            pooled[:, n:n + 1] = (q[:, 0:1] + q[:, 1:2]) * 0.25   # [32, 1]
        logits = jnp.dot(fcw_ref[...], pooled[...],
                         preferred_element_type=jnp.float32)      # [8, N]
        o_ref[...] = logits[0:NCLS, :] + sh_ref[0:NCLS, 4:5]      # + fc bias

    return kernel


# ---------------------------------------------------------------------------
# Host wrapper: weight folding, input im2col packing, single pallas_call
# ---------------------------------------------------------------------------
def model_forward(x, params):
    """x: [N, 1, 33, 33] float32.  Returns logits [N, 2]."""
    N = x.shape[0]
    assert x.shape[1:] == (1, 33, 33), x.shape
    convs = params["convs"]

    def fold(w, gamma, beta, mean, var):
        inv = gamma / jnp.sqrt(var + BN_EPS)
        return inv, beta - mean * inv

    # Layer 1: fold BN scale into weights; [32,1,7,7] -> [32,49] -> pad K to 56.
    w1, g1, b1, m1, v1 = convs[0]
    inv1, shift1 = fold(w1, g1, b1, m1, v1)
    w1t = w1.reshape(C, 49) * inv1[:, None]
    w1t = jnp.pad(w1t, ((0, 0), (0, K1 - 49)))                   # [32, 56]

    # Layers 2..4: [co,ci,3,3] -> channel-major LHS [32, (kh,kw,ci)=288] with
    # the BN scale folded; stacked into one [96, 288] operand.
    w_list, sh_list = [], [shift1]
    for (w, g, b, m, v) in convs[1:]:
        inv, shift = fold(w, g, b, m, v)
        w_list.append(w.transpose(0, 2, 3, 1).reshape(C, 9 * C) * inv[:, None])
        sh_list.append(shift)
    w234 = jnp.concatenate(w_list, axis=0)                       # [96, 288]

    # Pack all BN shifts (+ fc bias) into one small operand [32, 8].
    shifts = jnp.zeros((C, 8), jnp.float32)
    shifts = shifts.at[:, 0:4].set(jnp.stack(sh_list, axis=1))
    shifts = shifts.at[0:NCLS, 4].set(params["fc_b"])

    # FC weight [2,32] padded to 8 sublanes for a clean MXU tile.
    fcw8 = jnp.zeros((8, C), jnp.float32).at[0:NCLS, :].set(params["fc_w"])

    # im2col of the network input only (one cheap host gather of ~8.7 KB),
    # transposed to channel-major [K1, N*DB] with the parity-split lane layout
    # (n, flat%2, flat//2) so the in-kernel stride-2 layer reads contiguous
    # lane slices.  NOTE: keep the spatial padding 98->HALF intact (junk-lane
    # scheme relies on those columns being defined zeros).
    cols = []
    for kh in range(7):
        for kw in range(7):
            cols.append(x[:, 0, kh:kh + 27:2, kw:kw + 27:2])     # [N, 14, 14]
    p1 = jnp.stack(cols, axis=-1).reshape(N, 14 * 14, 49)        # flat = oh*14+ow
    p1 = p1.reshape(N, 98, 2, 49).transpose(0, 2, 1, 3)          # [N, parity, 98, 49]
    p1 = jnp.pad(p1, ((0, 0), (0, 0), (0, HALF - 98), (0, K1 - 49)))
    p1t = p1.reshape(N * DB, K1).T                               # [56, N*DB]

    kernel = _make_fused_kernel(N)
    out = pl.pallas_call(
        kernel,
        out_shape=jax.ShapeDtypeStruct((NCLS, N), jnp.float32),
        scratch_shapes=[pltpu.VMEM((C, N * DB), jnp.float32) for _ in range(4)]
                       + [pltpu.VMEM((9 * C, N * DB), jnp.float32),   # im2col
                          pltpu.VMEM((C, N), jnp.float32)],           # pooled
    )(p1t, w1t, w234, shifts, fcw8)
    return out.T                                                  # [N, 2]


# ---------------------------------------------------------------------------
# Pure-JAX (XLA) reference for correctness checking
# ---------------------------------------------------------------------------
def ref_forward(x, params):
    y = x
    for (w, g, b, m, v), s in zip(params["convs"], STRIDES):
        y = lax.conv_general_dilated(
            y, w, (s, s), "VALID",
            dimension_numbers=("NCHW", "OIHW", "NCHW"),
            precision=lax.Precision.HIGHEST)
        inv = g / jnp.sqrt(v + BN_EPS)
        y = y * inv[None, :, None, None] + (b - m * inv)[None, :, None, None]
        y = jnp.where(y >= 0.0, y, LEAKY_SLOPE * y)
    pooled = jnp.mean(y, axis=(2, 3))
    return jnp.dot(pooled, params["fc_w"].T,
                   precision=lax.Precision.HIGHEST) + params["fc_b"]


def init_params(key):
    specs = [(32, 1, 7), (32, 32, 3), (32, 32, 3), (32, 32, 3)]   # (Cout, Cin, K)
    convs = []
    for (co, ci, k) in specs:
        key, k1, k2, k3, k4, k5 = jax.random.split(key, 6)
        w = 0.1 * jax.random.normal(k1, (co, ci, k, k), jnp.float32)
        gamma = 1.0 + 0.1 * jax.random.normal(k2, (co,), jnp.float32)
        beta = 0.1 * jax.random.normal(k3, (co,), jnp.float32)
        mean = 0.1 * jax.random.normal(k4, (co,), jnp.float32)
        var = jax.random.uniform(k5, (co,), jnp.float32, 0.5, 1.5)
        convs.append((w, gamma, beta, mean, var))
    key, kw, kb = jax.random.split(key, 3)
    bound = 1.0 / jnp.sqrt(32.0)
    # NOTE: the PyTorch module zero-initializes fc_final.weight; we use nonzero
    # values here so the correctness check actually exercises the conv/pool
    # path (the forward is linear in fc_w, so the zero-weight case is subsumed).
    fc_w = jax.random.uniform(kw, (NCLS, 32), jnp.float32, -bound, bound)
    fc_b = jax.random.uniform(kb, (NCLS,), jnp.float32, -bound, bound)
    return {"convs": convs, "fc_w": fc_w, "fc_b": fc_b}


if __name__ == "__main__":
    key = jax.random.PRNGKey(0)
    kx, kp = jax.random.split(key)

    # NCHW, 1 input channel; 33x33 -> 14 -> 6 -> 4 -> 2 through the conv stack.
    x = jax.random.normal(kx, (2, 1, 33, 33), jnp.float32)
    params = init_params(kp)

    fwd = jax.jit(model_forward)
    out = jax.block_until_ready(fwd(x, params))
    ref = jax.block_until_ready(ref_forward(x, params))

    assert out.shape == (2, 2), out.shape
    # Tolerance accommodates possible MXU reduced-precision passes in either the
    # Pallas dots or the XLA reference conv; structural/indexing bugs produce
    # errors orders of magnitude larger than this.
    assert jnp.allclose(out, ref, atol=1e-2, rtol=1e-2), (out, ref)
    print("KERNEL_OK")
</pallas_src>

<mosaic_0001>
module attributes {stable_mosaic.version = 11 : i64} {
  func.func @kernel(%arg0: memref<56x400xf32, #tpu.memory_space<vmem>>, %arg1: memref<32x56xf32, #tpu.memory_space<vmem>>, %arg2: memref<96x288xf32, #tpu.memory_space<vmem>>, %arg3: memref<32x8xf32, #tpu.memory_space<vmem>>, %arg4: memref<8x32xf32, #tpu.memory_space<vmem>>, %arg5: memref<2x2xf32, #tpu.memory_space<vmem>>, %arg6: memref<32x400xf32, #tpu.memory_space<vmem>>, %arg7: memref<32x400xf32, #tpu.memory_space<vmem>>, %arg8: memref<32x400xf32, #tpu.memory_space<vmem>>, %arg9: memref<32x400xf32, #tpu.memory_space<vmem>>, %arg10: memref<288x400xf32, #tpu.memory_space<vmem>>, %arg11: memref<32x2xf32, #tpu.memory_space<vmem>>) attributes {dimension_semantics = [], scalar_prefetch = 0 : i64, scratch_operands = 6 : i64, tpu.core_type = #tpu.core_type<tc>} {
    %c0 = arith.constant 0 : index
    %c0_0 = arith.constant 0 : index
    %0 = vector.load %arg1[%c0, %c0_0] : memref<32x56xf32, #tpu.memory_space<vmem>>, vector<32x56xf32>
    %c0_1 = arith.constant 0 : index
    %c0_2 = arith.constant 0 : index
    %1 = vector.load %arg0[%c0_1, %c0_2] : memref<56x400xf32, #tpu.memory_space<vmem>>, vector<56x400xf32>
    %cst = arith.constant dense<0.000000e+00> : vector<32x400xf32>
    %2 = tpu.matmul %0, %1, %cst {dimension_numbers = #tpu.dot_dimension_numbers<[1], [0], [0], [1], [0, 0, 1, 1], [], []>} : vector<32x56xf32>, vector<56x400xf32>, vector<32x400xf32> -> vector<32x400xf32>
    %c0_3 = arith.constant 0 : index
    %c0_4 = arith.constant 0 : index
    %3 = vector.load %arg3[%c0_3, %c0_4] : memref<32x8xf32, #tpu.memory_space<vmem>>, vector<32x1xf32>
    %4 = vector.broadcast %3 : vector<32x1xf32> to vector<32x400xf32>
    %5 = arith.addf %2, %4 : vector<32x400xf32>
    %cst_5 = arith.constant 0.000000e+00 : f32
    %6 = vector.broadcast %cst_5 : f32 to vector<32x400xf32>
    %7 = arith.cmpf oge, %5, %6 : vector<32x400xf32>
    %cst_6 = arith.constant 0.00999999977 : f32
    %8 = vector.broadcast %cst_6 : f32 to vector<32x400xf32>
    %9 = arith.mulf %8, %5 : vector<32x400xf32>
    %10 = arith.select %7, %5, %9 : vector<32x400xi1>, vector<32x400xf32>
    %c0_7 = arith.constant 0 : index
    %c0_8 = arith.constant 0 : index
    %11 = vector.load %arg6[%c0_7, %c0_8] : memref<32x400xf32, #tpu.memory_space<vmem>>, vector<32x400xf32>
    tpu.vector_store %arg6[%c0_7, %c0_8], %10 {strides = array<i32>} : memref<32x400xf32, #tpu.memory_space<vmem>>, vector<32x400xf32>,
    %c0_9 = arith.constant 0 : index
    %c0_10 = arith.constant 0 : index
    %12 = vector.load %arg6[%c0_9, %c0_10] : memref<32x400xf32, #tpu.memory_space<vmem>>, vector<32x276xf32>
    %c0_11 = arith.constant 0 : index
    %c0_12 = arith.constant 0 : index
    %13 = vector.load %arg10[%c0_11, %c0_12] : memref<288x400xf32, #tpu.memory_space<vmem>>, vector<32x276xf32>
    tpu.vector_store %arg10[%c0_11, %c0_12], %12 {strides = array<i32>} : memref<288x400xf32, #tpu.memory_space<vmem>>, vector<32x276xf32>,
    %c0_13 = arith.constant 0 : index
    %c100 = arith.constant 100 : index
    %14 = vector.load %arg6[%c0_13, %c100] : memref<32x400xf32, #tpu.memory_space<vmem>>, vector<32x276xf32>
    %c32 = arith.constant 32 : index
    %c0_14 = arith.constant 0 : index
    %15 = vector.load %arg10[%c32, %c0_14] : memref<288x400xf32, #tpu.memory_space<vmem>>, vector<32x276xf32>
    tpu.vector_store %arg10[%c32, %c0_14], %14 {strides = array<i32>} : memref<288x400xf32, #tpu.memory_space<vmem>>, vector<32x276xf32>,
    %c0_15 = arith.constant 0 : index
    %c1 = arith.constant 1 : index
    %16 = vector.load %arg6[%c0_15, %c1] : memref<32x400xf32, #tpu.memory_space<vmem>>, vector<32x276xf32>
    %c64 = arith.constant 64 : index
    %c0_16 = arith.constant 0 : index
    %17 = vector.load %arg10[%c64, %c0_16] : memref<288x400xf32, #tpu.memory_space<vmem>>, vector<32x276xf32>
    tpu.vector_store %arg10[%c64, %c0_16], %16 {strides = array<i32>} : memref<288x400xf32, #tpu.memory_space<vmem>>, vector<32x276xf32>,
    %c0_17 = arith.constant 0 : index
    %c7 = arith.constant 7 : index
    %18 = vector.load %arg6[%c0_17, %c7] : memref<32x400xf32, #tpu.memory_space<vmem>>, vector<32x276xf32>
    %c96 = arith.constant 96 : index
    %c0_18 = arith.constant 0 : index
    %19 = vector.load %arg10[%c96, %c0_18] : memref<288x400xf32, #tpu.memory_space<vmem>>, vector<32x276xf32>
    tpu.vector_store %arg10[%c96, %c0_18], %18 {strides = array<i32>} : memref<288x400xf32, #tpu.memory_space<vmem>>, vector<32x276xf32>,
    %c0_19 = arith.constant 0 : index
    %c107 = arith.constant 107 : index
    %20 = vector.load %arg6[%c0_19, %c107] : memref<32x400xf32, #tpu.memory_space<vmem>>, vector<32x276xf32>
    %c128 = arith.constant 128 : index
    %c0_20 = arith.constant 0 : index
    %21 = vector.load %arg10[%c128, %c0_20] : memref<288x400xf32, #tpu.memory_space<vmem>>, vector<32x276xf32>
    tpu.vector_store %arg10[%c128, %c0_20], %20 {strides = array<i32>} : memref<288x400xf32, #tpu.memory_space<vmem>>, vector<32x276xf32>,
    %c0_21 = arith.constant 0 : index
    %c8 = arith.constant 8 : index
    %22 = vector.load %arg6[%c0_21, %c8] : memref<32x400xf32, #tpu.memory_space<vmem>>, vector<32x276xf32>
    %c160 = arith.constant 160 : index
    %c0_22 = arith.constant 0 : index
    %23 = vector.load %arg10[%c160, %c0_22] : memref<288x400xf32, #tpu.memory_space<vmem>>, vector<32x276xf32>
    tpu.vector_store %arg10[%c160, %c0_22], %22 {strides = array<i32>} : memref<288x400xf32, #tpu.memory_space<vmem>>, vector<32x276xf32>,
    %c0_23 = arith.constant 0 : index
    %c14 = arith.constant 14 : index
    %24 = vector.load %arg6[%c0_23, %c14] : memref<32x400xf32, #tpu.memory_space<vmem>>, vector<32x276xf32>
    %c192 = arith.constant 192 : index
    %c0_24 = arith.constant 0 : index
    %25 = vector.load %arg10[%c192, %c0_24] : memref<288x400xf32, #tpu.memory_space<vmem>>, vector<32x276xf32>
    tpu.vector_store %arg10[%c192, %c0_24], %24 {strides = array<i32>} : memref<288x400xf32, #tpu.memory_space<vmem>>, vector<32x276xf32>,
    %c0_25 = arith.constant 0 : index
    %c114 = arith.constant 114 : index
    %26 = vector.load %arg6[%c0_25, %c114] : memref<32x400xf32, #tpu.memory_space<vmem>>, vector<32x276xf32>
    %c224 = arith.constant 224 : index
    %c0_26 = arith.constant 0 : index
    %27 = vector.load %arg10[%c224, %c0_26] : memref<288x400xf32, #tpu.memory_space<vmem>>, vector<32x276xf32>
    tpu.vector_store %arg10[%c224, %c0_26], %26 {strides = array<i32>} : memref<288x400xf32, #tpu.memory_space<vmem>>, vector<32x276xf32>,
    %c0_27 = arith.constant 0 : index
    %c15 = arith.constant 15 : index
    %28 = vector.load %arg6[%c0_27, %c15] : memref<32x400xf32, #tpu.memory_space<vmem>>, vector<32x276xf32>
    %c256 = arith.constant 256 : index
    %c0_28 = arith.constant 0 : index
    %29 = vector.load %arg10[%c256, %c0_28] : memref<288x400xf32, #tpu.memory_space<vmem>>, vector<32x276xf32>
    tpu.vector_store %arg10[%c256, %c0_28], %28 {strides = array<i32>} : memref<288x400xf32, #tpu.memory_space<vmem>>, vector<32x276xf32>,
    %c0_29 = arith.constant 0 : index
    %c0_30 = arith.constant 0 : index
    %30 = vector.load %arg2[%c0_29, %c0_30] : memref<96x288xf32, #tpu.memory_space<vmem>>, vector<32x288xf32>
    %c0_31 = arith.constant 0 : index
    %c0_32 = arith.constant 0 : index
    %31 = vector.load %arg10[%c0_31, %c0_32] : memref<288x400xf32, #tpu.memory_space<vmem>>, vector<288x276xf32>
    %cst_33 = arith.constant dense<0.000000e+00> : vector<32x276xf32>
    %32 = tpu.matmul %30, %31, %cst_33 {dimension_numbers = #tpu.dot_dimension_numbers<[1], [0], [0], [1], [0, 0, 1, 1], [], []>} : vector<32x288xf32>, vector<288x276xf32>, vector<32x276xf32> -> vector<32x276xf32>
    %c0_34 = arith.constant 0 : index
    %c1_35 = arith.constant 1 : index
    %33 = vector.load %arg3[%c0_34, %c1_35] : memref<32x8xf32, #tpu.memory_space<vmem>>, vector<32x1xf32>
    %34 = vector.broadcast %33 : vector<32x1xf32> to vector<32x276xf32>
    %35 = arith.addf %32, %34 : vector<32x276xf32>
    %cst_36 = arith.constant 0.000000e+00 : f32
    %36 = vector.broadcast %cst_36 : f32 to vector<32x276xf32>
    %37 = arith.cmpf oge, %35, %36 : vector<32x276xf32>
    %cst_37 = arith.constant 0.00999999977 : f32
    %38 = vector.broadcast %cst_37 : f32 to vector<32x276xf32>
    %39 = arith.mulf %38, %35 : vector<32x276xf32>
    %40 = arith.select %37, %35, %39 : vector<32x276xi1>, vector<32x276xf32>
    %c0_38 = arith.constant 0 : index
    %c0_39 = arith.constant 0 : index
    %41 = vector.load %arg7[%c0_38, %c0_39] : memref<32x400xf32, #tpu.memory_space<vmem>>, vector<32x276xf32>
    tpu.vector_store %arg7[%c0_38, %c0_39], %40 {strides = array<i32>} : memref<32x400xf32, #tpu.memory_space<vmem>>, vector<32x276xf32>,
    %c0_40 = arith.constant 0 : index
    %c0_41 = arith.constant 0 : index
    %42 = vector.load %arg7[%c0_40, %c0_41] : memref<32x400xf32, #tpu.memory_space<vmem>>, vector<32x246xf32>
    %c0_42 = arith.constant 0 : index
    %c0_43 = arith.constant 0 : index
    %43 = vector.load %arg10[%c0_42, %c0_43] : memref<288x400xf32, #tpu.memory_space<vmem>>, vector<32x246xf32>
    tpu.vector_store %arg10[%c0_42, %c0_43], %42 {strides = array<i32>} : memref<288x400xf32, #tpu.memory_space<vmem>>, vector<32x246xf32>,
    %c0_44 = arith.constant 0 : index
    %c1_45 = arith.constant 1 : index
    %44 = vector.load %arg7[%c0_44, %c1_45] : memref<32x400xf32, #tpu.memory_space<vmem>>, vector<32x246xf32>
    %c32_46 = arith.constant 32 : index
    %c0_47 = arith.constant 0 : index
    %45 = vector.load %arg10[%c32_46, %c0_47] : memref<288x400xf32, #tpu.memory_space<vmem>>, vector<32x246xf32>
    tpu.vector_store %arg10[%c32_46, %c0_47], %44 {strides = array<i32>} : memref<288x400xf32, #tpu.memory_space<vmem>>, vector<32x246xf32>,
    %c0_48 = arith.constant 0 : index
    %c2 = arith.constant 2 : index
    %46 = vector.load %arg7[%c0_48, %c2] : memref<32x400xf32, #tpu.memory_space<vmem>>, vector<32x246xf32>
    %c64_49 = arith.constant 64 : index
    %c0_50 = arith.constant 0 : index
    %47 = vector.load %arg10[%c64_49, %c0_50] : memref<288x400xf32, #tpu.memory_space<vmem>>, vector<32x246xf32>
    tpu.vector_store %arg10[%c64_49, %c0_50], %46 {strides = array<i32>} : memref<288x400xf32, #tpu.memory_space<vmem>>, vector<32x246xf32>,
    %c0_51 = arith.constant 0 : index
    %c14_52 = arith.constant 14 : index
    %48 = vector.load %arg7[%c0_51, %c14_52] : memref<32x400xf32, #tpu.memory_space<vmem>>, vector<32x246xf32>
    %c96_53 = arith.constant 96 : index
    %c0_54 = arith.constant 0 : index
    %49 = vector.load %arg10[%c96_53, %c0_54] : memref<288x400xf32, #tpu.memory_space<vmem>>, vector<32x246xf32>
    tpu.vector_store %arg10[%c96_53, %c0_54], %48 {strides = array<i32>} : memref<288x400xf32, #tpu.memory_space<vmem>>, vector<32x246xf32>,
    %c0_55 = arith.constant 0 : index
    %c15_56 = arith.constant 15 : index
    %50 = vector.load %arg7[%c0_55, %c15_56] : memref<32x400xf32, #tpu.memory_space<vmem>>, vector<32x246xf32>
    %c128_57 = arith.constant 128 : index
    %c0_58 = arith.constant 0 : index
    %51 = vector.load %arg10[%c128_57, %c0_58] : memref<288x400xf32, #tpu.memory_space<vmem>>, vector<32x246xf32>
    tpu.vector_store %arg10[%c128_57, %c0_58], %50 {strides = array<i32>} : memref<288x400xf32, #tpu.memory_space<vmem>>, vector<32x246xf32>,
    %c0_59 = arith.constant 0 : index
    %c16 = arith.constant 16 : index
    %52 = vector.load %arg7[%c0_59, %c16] : memref<32x400xf32, #tpu.memory_space<vmem>>, vector<32x246xf32>
    %c160_60 = arith.constant 160 : index
    %c0_61 = arith.constant 0 : index
    %53 = vector.load %arg10[%c160_60, %c0_61] : memref<288x400xf32, #tpu.memory_space<vmem>>, vector<32x246xf32>
    tpu.vector_store %arg10[%c160_60, %c0_61], %52 {strides = array<i32>} : memref<288x400xf32, #tpu.memory_space<vmem>>, vector<32x246xf32>,
    %c0_62 = arith.constant 0 : index
    %c28 = arith.constant 28 : index
    %54 = vector.load %arg7[%c0_62, %c28] : memref<32x400xf32, #tpu.memory_space<vmem>>, vector<32x246xf32>
    %c192_63 = arith.constant 192 : index
    %c0_64 = arith.constant 0 : index
    %55 = vector.load %arg10[%c192_63, %c0_64] : memref<288x400xf32, #tpu.memory_space<vmem>>, vector<32x246xf32>
    tpu.vector_store %arg10[%c192_63, %c0_64], %54 {strides = array<i32>} : memref<288x400xf32, #tpu.memory_space<vmem>>, vector<32x246xf32>,
    %c0_65 = arith.constant 0 : index
    %c29 = arith.constant 29 : index
    %56 = vector.load %arg7[%c0_65, %c29] : memref<32x400xf32, #tpu.memory_space<vmem>>, vector<32x246xf32>
    %c224_66 = arith.constant 224 : index
    %c0_67 = arith.constant 0 : index
    %57 = vector.load %arg10[%c224_66, %c0_67] : memref<288x400xf32, #tpu.memory_space<vmem>>, vector<32x246xf32>
    tpu.vector_store %arg10[%c224_66, %c0_67], %56 {strides = array<i32>} : memref<288x400xf32, #tpu.memory_space<vmem>>, vector<32x246xf32>,
    %c0_68 = arith.constant 0 : index
    %c30 = arith.constant 30 : index
    %58 = vector.load %arg7[%c0_68, %c30] : memref<32x400xf32, #tpu.memory_space<vmem>>, vector<32x246xf32>
    %c256_69 = arith.constant 256 : index
    %c0_70 = arith.constant 0 : index
    %59 = vector.load %arg10[%c256_69, %c0_70] : memref<288x400xf32, #tpu.memory_space<vmem>>, vector<32x246xf32>
    tpu.vector_store %arg10[%c256_69, %c0_70], %58 {strides = array<i32>} : memref<288x400xf32, #tpu.memory_space<vmem>>, vector<32x246xf32>,
    %c32_71 = arith.constant 32 : index
    %c0_72 = arith.constant 0 : index
    %60 = vector.load %arg2[%c32_71, %c0_72] : memref<96x288xf32, #tpu.memory_space<vmem>>, vector<32x288xf32>
    %c0_73 = arith.constant 0 : index
    %c0_74 = arith.constant 0 : index
    %61 = vector.load %arg10[%c0_73, %c0_74] : memref<288x400xf32, #tpu.memory_space<vmem>>, vector<288x246xf32>
    %cst_75 = arith.constant dense<0.000000e+00> : vector<32x246xf32>
    %62 = tpu.matmul %60, %61, %cst_75 {dimension_numbers = #tpu.dot_dimension_numbers<[1], [0], [0], [1], [0, 0, 1, 1], [], []>} : vector<32x288xf32>, vector<288x246xf32>, vector<32x246xf32> -> vector<32x246xf32>
    %c0_76 = arith.constant 0 : index
    %c2_77 = arith.constant 2 : index
    %63 = vector.load %arg3[%c0_76, %c2_77] : memref<32x8xf32, #tpu.memory_space<vmem>>, vector<32x1xf32>
    %64 = vector.broadcast %63 : vector<32x1xf32> to vector<32x246xf32>
    %65 = arith.addf %62, %64 : vector<32x246xf32>
    %cst_78 = arith.constant 0.000000e+00 : f32
    %66 = vector.broadcast %cst_78 : f32 to vector<32x246xf32>
    %67 = arith.cmpf oge, %65, %66 : vector<32x246xf32>
    %cst_79 = arith.constant 0.00999999977 : f32
    %68 = vector.broadcast %cst_79 : f32 to vector<32x246xf32>
    %69 = arith.mulf %68, %65 : vector<32x246xf32>
    %70 = arith.select %67, %65, %69 : vector<32x246xi1>, vector<32x246xf32>
    %c0_80 = arith.constant 0 : index
    %c0_81 = arith.constant 0 : index
    %71 = vector.load %arg8[%c0_80, %c0_81] : memref<32x400xf32, #tpu.memory_space<vmem>>, vector<32x246xf32>
    tpu.vector_store %arg8[%c0_80, %c0_81], %70 {strides = array<i32>} : memref<32x400xf32, #tpu.memory_space<vmem>>, vector<32x246xf32>,
    %c0_82 = arith.constant 0 : index
    %c0_83 = arith.constant 0 : index
    %72 = vector.load %arg8[%c0_82, %c0_83] : memref<32x400xf32, #tpu.memory_space<vmem>>, vector<32x216xf32>
    %c0_84 = arith.constant 0 : index
    %c0_85 = arith.constant 0 : index
    %73 = vector.load %arg10[%c0_84, %c0_85] : memref<288x400xf32, #tpu.memory_space<vmem>>, vector<32x216xf32>
    tpu.vector_store %arg10[%c0_84, %c0_85], %72 {strides = array<i32>} : memref<288x400xf32, #tpu.memory_space<vmem>>, vector<32x216xf32>,
    %c0_86 = arith.constant 0 : index
    %c1_87 = arith.constant 1 : index
    %74 = vector.load %arg8[%c0_86, %c1_87] : memref<32x400xf32, #tpu.memory_space<vmem>>, vector<32x216xf32>
    %c32_88 = arith.constant 32 : index
    %c0_89 = arith.constant 0 : index
    %75 = vector.load %arg10[%c32_88, %c0_89] : memref<288x400xf32, #tpu.memory_space<vmem>>, vector<32x216xf32>
    tpu.vector_store %arg10[%c32_88, %c0_89], %74 {strides = array<i32>} : memref<288x400xf32, #tpu.memory_space<vmem>>, vector<32x216xf32>,
    %c0_90 = arith.constant 0 : index
    %c2_91 = arith.constant 2 : index
    %76 = vector.load %arg8[%c0_90, %c2_91] : memref<32x400xf32, #tpu.memory_space<vmem>>, vector<32x216xf32>
    %c64_92 = arith.constant 64 : index
    %c0_93 = arith.constant 0 : index
    %77 = vector.load %arg10[%c64_92, %c0_93] : memref<288x400xf32, #tpu.memory_space<vmem>>, vector<32x216xf32>
    tpu.vector_store %arg10[%c64_92, %c0_93], %76 {strides = array<i32>} : memref<288x400xf32, #tpu.memory_space<vmem>>, vector<32x216xf32>,
    %c0_94 = arith.constant 0 : index
    %c14_95 = arith.constant 14 : index
    %78 = vector.load %arg8[%c0_94, %c14_95] : memref<32x400xf32, #tpu.memory_space<vmem>>, vector<32x216xf32>
    %c96_96 = arith.constant 96 : index
    %c0_97 = arith.constant 0 : index
    %79 = vector.load %arg10[%c96_96, %c0_97] : memref<288x400xf32, #tpu.memory_space<vmem>>, vector<32x216xf32>
    tpu.vector_store %arg10[%c96_96, %c0_97], %78 {strides = array<i32>} : memref<288x400xf32, #tpu.memory_space<vmem>>, vector<32x216xf32>,
    %c0_98 = arith.constant 0 : index
    %c15_99 = arith.constant 15 : index
    %80 = vector.load %arg8[%c0_98, %c15_99] : memref<32x400xf32, #tpu.memory_space<vmem>>, vector<32x216xf32>
    %c128_100 = arith.constant 128 : index
    %c0_101 = arith.constant 0 : index
    %81 = vector.load %arg10[%c128_100, %c0_101] : memref<288x400xf32, #tpu.memory_space<vmem>>, vector<32x216xf32>
    tpu.vector_store %arg10[%c128_100, %c0_101], %80 {strides = array<i32>} : memref<288x400xf32, #tpu.memory_space<vmem>>, vector<32x216xf32>,
    %c0_102 = arith.constant 0 : index
    %c16_103 = arith.constant 16 : index
    %82 = vector.load %arg8[%c0_102, %c16_103] : memref<32x400xf32, #tpu.memory_space<vmem>>, vector<32x216xf32>
    %c160_104 = arith.constant 160 : index
    %c0_105 = arith.constant 0 : index
    %83 = vector.load %arg10[%c160_104, %c0_105] : memref<288x400xf32, #tpu.memory_space<vmem>>, vector<32x216xf32>
    tpu.vector_store %arg10[%c160_104, %c0_105], %82 {strides = array<i32>} : memref<288x400xf32, #tpu.memory_space<vmem>>, vector<32x216xf32>,
    %c0_106 = arith.constant 0 : index
    %c28_107 = arith.constant 28 : index
    %84 = vector.load %arg8[%c0_106, %c28_107] : memref<32x400xf32, #tpu.memory_space<vmem>>, vector<32x216xf32>
    %c192_108 = arith.constant 192 : index
    %c0_109 = arith.constant 0 : index
    %85 = vector.load %arg10[%c192_108, %c0_109] : memref<288x400xf32, #tpu.memory_space<vmem>>, vector<32x216xf32>
    tpu.vector_store %arg10[%c192_108, %c0_109], %84 {strides = array<i32>} : memref<288x400xf32, #tpu.memory_space<vmem>>, vector<32x216xf32>,
    %c0_110 = arith.constant 0 : index
    %c29_111 = arith.constant 29 : index
    %86 = vector.load %arg8[%c0_110, %c29_111] : memref<32x400xf32, #tpu.memory_space<vmem>>, vector<32x216xf32>
    %c224_112 = arith.constant 224 : index
    %c0_113 = arith.constant 0 : index
    %87 = vector.load %arg10[%c224_112, %c0_113] : memref<288x400xf32, #tpu.memory_space<vmem>>, vector<32x216xf32>
    tpu.vector_store %arg10[%c224_112, %c0_113], %86 {strides = array<i32>} : memref<288x400xf32, #tpu.memory_space<vmem>>, vector<32x216xf32>,
    %c0_114 = arith.constant 0 : index
    %c30_115 = arith.constant 30 : index
    %88 = vector.load %arg8[%c0_114, %c30_115] : memref<32x400xf32, #tpu.memory_space<vmem>>, vector<32x216xf32>
    %c256_116 = arith.constant 256 : index
    %c0_117 = arith.constant 0 : index
    %89 = vector.load %arg10[%c256_116, %c0_117] : memref<288x400xf32, #tpu.memory_space<vmem>>, vector<32x216xf32>
    tpu.vector_store %arg10[%c256_116, %c0_117], %88 {strides = array<i32>} : memref<288x400xf32, #tpu.memory_space<vmem>>, vector<32x216xf32>,
    %c64_118 = arith.constant 64 : index
    %c0_119 = arith.constant 0 : index
    %90 = vector.load %arg2[%c64_118, %c0_119] : memref<96x288xf32, #tpu.memory_space<vmem>>, vector<32x288xf32>
    %c0_120 = arith.constant 0 : index
    %c0_121 = arith.constant 0 : index
    %91 = vector.load %arg10[%c0_120, %c0_121] : memref<288x400xf32, #tpu.memory_space<vmem>>, vector<288x216xf32>
    %cst_122 = arith.constant dense<0.000000e+00> : vector<32x216xf32>
    %92 = tpu.matmul %90, %91, %cst_122 {dimension_numbers = #tpu.dot_dimension_numbers<[1], [0], [0], [1], [0, 0, 1, 1], [], []>} : vector<32x288xf32>, vector<288x216xf32>, vector<32x216xf32> -> vector<32x216xf32>
    %c0_123 = arith.constant 0 : index
    %c3 = arith.constant 3 : index
    %93 = vector.load %arg3[%c0_123, %c3] : memref<32x8xf32, #tpu.memory_space<vmem>>, vector<32x1xf32>
    %94 = vector.broadcast %93 : vector<32x1xf32> to vector<32x216xf32>
    %95 = arith.addf %92, %94 : vector<32x216xf32>
    %cst_124 = arith.constant 0.000000e+00 : f32
    %96 = vector.broadcast %cst_124 : f32 to vector<32x216xf32>
    %97 = arith.cmpf oge, %95, %96 : vector<32x216xf32>
    %cst_125 = arith.constant 0.00999999977 : f32
    %98 = vector.broadcast %cst_125 : f32 to vector<32x216xf32>
    %99 = arith.mulf %98, %95 : vector<32x216xf32>
    %100 = arith.select %97, %95, %99 : vector<32x216xi1>, vector<32x216xf32>
    %c0_126 = arith.constant 0 : index
    %c0_127 = arith.constant 0 : index
    %101 = vector.load %arg9[%c0_126, %c0_127] : memref<32x400xf32, #tpu.memory_space<vmem>>, vector<32x216xf32>
    tpu.vector_store %arg9[%c0_126, %c0_127], %100 {strides = array<i32>} : memref<32x400xf32, #tpu.memory_space<vmem>>, vector<32x216xf32>,
    %c0_128 = arith.constant 0 : index
    %c0_129 = arith.constant 0 : index
    %102 = vector.load %arg9[%c0_128, %c0_129] : memref<32x400xf32, #tpu.memory_space<vmem>>, vector<32x2xf32>
    %c0_130 = arith.constant 0 : index
    %c14_131 = arith.constant 14 : index
    %103 = vector.load %arg9[%c0_130, %c14_131] : memref<32x400xf32, #tpu.memory_space<vmem>>, vector<32x2xf32>
    %104 = arith.addf %102, %103 : vector<32x2xf32>
    %105 = vector.extract_strided_slice %104 {offsets = [0, 0], sizes = [32, 1], strides = [1, 1]} : vector<32x2xf32> to vector<32x1xf32>
    %106 = vector.extract_strided_slice %104 {offsets = [0, 1], sizes = [32, 1], strides = [1, 1]} : vector<32x2xf32> to vector<32x1xf32>
    %107 = arith.addf %105, %106 : vector<32x1xf32>
    %cst_132 = arith.constant 2.500000e-01 : f32
    %108 = vector.broadcast %cst_132 : f32 to vector<32x1xf32>
    %109 = arith.mulf %107, %108 : vector<32x1xf32>
    %c0_133 = arith.constant 0 : index
    %c0_134 = arith.constant 0 : index
    %110 = vector.load %arg11[%c0_133, %c0_134] : memref<32x2xf32, #tpu.memory_space<vmem>>, vector<32x1xf32>
    tpu.vector_store %arg11[%c0_133, %c0_134], %109 {strides = array<i32>} : memref<32x2xf32, #tpu.memory_space<vmem>>, vector<32x1xf32>,
    %c0_135 = arith.constant 0 : index
    %c200 = arith.constant 200 : index
    %111 = vector.load %arg9[%c0_135, %c200] : memref<32x400xf32, #tpu.memory_space<vmem>>, vector<32x2xf32>
    %c0_136 = arith.constant 0 : index
    %c214 = arith.constant 214 : index
    %112 = vector.load %arg9[%c0_136, %c214] : memref<32x400xf32, #tpu.memory_space<vmem>>, vector<32x2xf32>
    %113 = arith.addf %111, %112 : vector<32x2xf32>
    %114 = vector.extract_strided_slice %113 {offsets = [0, 0], sizes = [32, 1], strides = [1, 1]} : vector<32x2xf32> to vector<32x1xf32>
    %115 = vector.extract_strided_slice %113 {offsets = [0, 1], sizes = [32, 1], strides = [1, 1]} : vector<32x2xf32> to vector<32x1xf32>
    %116 = arith.addf %114, %115 : vector<32x1xf32>
    %cst_137 = arith.constant 2.500000e-01 : f32
    %117 = vector.broadcast %cst_137 : f32 to vector<32x1xf32>
    %118 = arith.mulf %116, %117 : vector<32x1xf32>
    %c0_138 = arith.constant 0 : index
    %c1_139 = arith.constant 1 : index
    %119 = vector.load %arg11[%c0_138, %c1_139] : memref<32x2xf32, #tpu.memory_space<vmem>>, vector<32x1xf32>
    tpu.vector_store %arg11[%c0_138, %c1_139], %118 {strides = array<i32>} : memref<32x2xf32, #tpu.memory_space<vmem>>, vector<32x1xf32>,
    %c0_140 = arith.constant 0 : index
    %c0_141 = arith.constant 0 : index
    %120 = vector.load %arg4[%c0_140, %c0_141] : memref<8x32xf32, #tpu.memory_space<vmem>>, vector<8x32xf32>
    %c0_142 = arith.constant 0 : index
    %c0_143 = arith.constant 0 : index
    %121 = vector.load %arg11[%c0_142, %c0_143] : memref<32x2xf32, #tpu.memory_space<vmem>>, vector<32x2xf32>
    %cst_144 = arith.constant dense<0.000000e+00> : vector<8x2xf32>
    %122 = tpu.matmul %120, %121, %cst_144 {dimension_numbers = #tpu.dot_dimension_numbers<[1], [0], [0], [1], [0, 0, 1, 1], [], []>} : vector<8x32xf32>, vector<32x2xf32>, vector<8x2xf32> -> vector<8x2xf32>
    %123 = vector.extract_strided_slice %122 {offsets = [0, 0], sizes = [2, 2], strides = [1, 1]} : vector<8x2xf32> to vector<2x2xf32>
    %c0_145 = arith.constant 0 : index
    %c4 = arith.constant 4 : index
    %124 = vector.load %arg3[%c0_145, %c4] : memref<32x8xf32, #tpu.memory_space<vmem>>, vector<2x1xf32>
    %125 = vector.broadcast %124 : vector<2x1xf32> to vector<2x2xf32>
    %126 = arith.addf %123, %125 : vector<2x2xf32>
    %c0_146 = arith.constant 0 : index
    %c0_147 = arith.constant 0 : index
    %127 = vector.load %arg5[%c0_146, %c0_147] : memref<2x2xf32, #tpu.memory_space<vmem>>, vector<2x2xf32>
    tpu.vector_store %arg5[%c0_146, %c0_147], %126 {strides = array<i32>} : memref<2x2xf32, #tpu.memory_space<vmem>>, vector<2x2xf32>,
    return
  }
}

</mosaic_0001>

<bundles_post_ra>
// kernel: model_forward.1
= control target key start
LH: loop header
LB: loop body
LE: loop exit
PB: predicated region body
PF: predicated region fallthrough
CT: control target
= control target key end

     0   :  { %v5697_v3 = vmov 0.0   ;;  %v3916_v4 = vmov 0   ;;  %vm76_vm0 = vcmask 457728   ;;  %s3919_s15 = smov 121   ;;  %vm346_vm9 = vcmask 162816   ;;  %s3920_s16 = smov 21   ;;  %s5691_s0 = inlined_call_operand.vmem [shape: f32[56,400], index: 0, kind: input, shape index: {}]   ;;  %s5692_s3 = inlined_call_operand.vmem [shape: f32[32,8], index: 3, kind: input, shape index: {}]   ;;  %s5693_s1 = inlined_call_operand.vmem [shape: f32[32,56], index: 1, kind: input, shape index: {}]   ;;  %s5694_s2 = inlined_call_operand.vmem [shape: f32[96,288], index: 2, kind: input, shape index: {}]   ;;  %s5695_s4 = inlined_call_operand.vmem [shape: f32[8,32], index: 4, kind: input, shape index: {}]   ;;  %s5696_s5 = inlined_call_operand.vmem [shape: f32[2,2], index: 5, kind: output, shape index: {}]  }
   0x1   :  { %v25_v0 = vld [vmem:[%s5691_s0 + $0x8] sm:$0xff]  ;;  %v24_v2 = vld [vmem:[%s5691_s0] sm:$0xff]  ;;  %153 = vmatprep.mubr.f32.mxu1 %v5697_v3  ;;  %3905 = vset.pattern.permute.xlu0 %v3916_v4  ;;  %v27_v21 = vld [vmem:[%s5691_s0 + $0x18] sm:$0xff]  ;;  %vm318_vm12 = vcmask 130048   ;;  %s3921_s17 = smov 120   ;;  %s3922_s18 = smov 114  }
   0x2   :  { %v29_v1 = vld [vmem:[%s5691_s0 + $0x28] sm:$0xff]  ;;  %v28_v6 = vld [vmem:[%s5691_s0 + $0x20] sm:$0xff]  ;;  %3906 = vset.pattern.permute.xlu1 %v3916_v4  ;;  %v31_v22 = vld [vmem:[%s5691_s0 + $0x38] sm:$0xff]  ;;  %s3923_s19 = smov 14   ;;  %s3924_s20 = smov 113  }
   0x3   :  { %v3549_v5 = vpack.c.bf16 %v29_v1, %v25_v0  ;;  %v33_v7 = vld [vmem:[%s5691_s0 + $0x48] sm:$0xff]  ;;  %v3551_v9 = vpack.c.bf16 %v28_v6, %v24_v2  ;;  %v32_v11 = vld [vmem:[%s5691_s0 + $0x40] sm:$0xff]  ;;  %v26_v24 = vld [vmem:[%s5691_s0 + $0x10] sm:$0xff]  ;;  %v3561_v31 = vpack.c.bf16 %v31_v22, %v27_v21  ;;  %s3926_s29 = smov 126   ;;  %s3927_s30 = smov 112  }
   0x4   :  { %v37_v8 = vld [vmem:[%s5691_s0 + $0x68] sm:$0xff]  ;;  %v36_v12 = vld [vmem:[%s5691_s0 + $0x60] sm:$0xff]  ;;  %v30_v25 = vld [vmem:[%s5691_s0 + $0x30] sm:$0xff]  ;;  %s3928_s6 = smov 100   ;;  %s3929_s7 = smov 99  }
   0x5   :  { %v3553_v10 = vpack.c.bf16 %v37_v8, %v33_v7  ;;  %v41_v13 = vld [vmem:[%s5691_s0 + $0x88] sm:$0xff]  ;;  %3550 = vmatprep.subr.bf16.mxu1 %v3549_v5  ;;  %v3555_v15 = vpack.c.bf16 %v36_v12, %v32_v11  ;;  %v40_v17 = vld [vmem:[%s5691_s0 + $0x80] sm:$0xff]  ;;  %v54_v26 = vld [vmem:[%s5692_s3 + $0x10] sm:$0xff]  ;;  %v3563_v34 = vpack.c.bf16 %v30_v25, %v26_v24  ;;  %s3930_s8 = smov 98  }
   0x6   :  { %v45_v14 = vld [vmem:[%s5691_s0 + $0xa8] sm:$0xff]  ;;  %3552 = vmatpush1.bf16.msra.mxu1 %v3551_v9  ;;  %v44_v18 = vld [vmem:[%s5691_s0 + $0xa0] sm:$0xff]  ;;  %v35_v27 = vld [vmem:[%s5691_s0 + $0x58] sm:$0xff]  ;;  %68 = vperm.xlu1 %3906, %v54_v26  }
   0x7   :  { %3554 = vmatprep.subr.bf16.mxu1 %v3553_v10  ;;  %v3557_v16 = vpack.c.bf16 %v45_v14, %v41_v13  ;;  %v3559_v19 = vpack.c.bf16 %v44_v18, %v40_v17  ;;  %v49_v20 = vld [vmem:[%s5691_s0 + $0xc8] sm:$0xff]  ;;  %v52_v23 = vld [vmem:[%s5692_s3] sm:$0xff]  ;;  %v39_v28 = vld [vmem:[%s5691_s0 + $0x78] sm:$0xff] }
   0x8   :  { %58 = vperm.xlu0 %3905, %v52_v23   ;;  %v53_v29 = vld [vmem:[%s5692_s3 + $0x8] sm:$0xff]  ;;  %v48_v30 = vld [vmem:[%s5691_s0 + $0xc0] sm:$0xff]  ;;  %v55_v32 = vld [vmem:[%s5692_s3 + $0x18] sm:$0xff]  ;;  %v3565_v35 = vpack.c.bf16 %v39_v28, %v35_v27 }
   0x9   :  { %v20_v33 = vld [vmem:[%s5693_s1] sm:$0xff]  ;;  %v34_v36 = vld [vmem:[%s5691_s0 + $0x50] sm:$0xff]  ;;  %v43_v38 = vld [vmem:[%s5691_s0 + $0x98] sm:$0xff] }
   0xa   :  { %3556 = vmatpush1.bf16.msra.mxu1 %v3555_v15  ;;  %v38_v37 = vld [vmem:[%s5691_s0 + $0x70] sm:$0xff]  ;;  %v47_v39 = vld [vmem:[%s5691_s0 + $0xb8] sm:$0xff]  ;;  %73 = vperm.xlu1 %3906, %v55_v32   ;;  %v21_v40 = vld [vmem:[%s5693_s1 + $0x8] sm:$0xff] }
   0xb   :  { %3558 = vmatprep.subr.bf16.mxu1 %v3557_v16  ;;  %v3567_v41 = vpack.c.bf16 %v38_v37, %v34_v36  ;;  %v3569_v42 = vpack.c.bf16 %v47_v39, %v43_v38  ;;  %v42_v43 = vld [vmem:[%s5691_s0 + $0x90] sm:$0xff]  ;;  %v51_v47 = vld [vmem:[%s5691_s0 + $0xd8] sm:$0xff] }
   0xc   :  { %63 = vperm.xlu0 %3905, %v53_v29   ;;  %v46_v44 = vld [vmem:[%s5691_s0 + $0xb0] sm:$0xff]  ;;  %v23_v48 = vld [vmem:[%s5693_s1 + $0x18] sm:$0xff] }
   0xd   :  { %v22_v45 = vld [vmem:[%s5693_s1 + $0x10] sm:$0xff]  ;;  %v3571_v46 = vpack.c.bf16 %v46_v44, %v42_v43  ;;  %s3918_s1 = smov 127  }
   0xe   :  { %3560 = vmatpush1.bf16.msra.mxu1 %v3559_v19  ;;  %v50_v49 = vld [vmem:[%s5691_s0 + $0xd0] sm:$0xff]  ;;  %s3917_s0 = smov 28  }
   0xf   :  { %101 = vmatprep.subr.mxu1 %v49_v20 }
  0x12   :  { %102 = vmatpush1.msra.mxu1 %v48_v30 }
  0x13   :  { %3442 = vmatmul.mubr.msk.f32.vlgmr.msra.gmra.mrb[0].mxu1 %vm76_vm0, %v20_v33  ;;  %3562 = vmatprep.subr.bf16.mxu1 %v3561_v31 }
  0x14   :  { %159 = vmatprep.mubr.f32.mxu1 %v5697_v3  ;;  %3564 = vmatpush1.bf16.msra.mxu1 %v3563_v34 }
  0x15   :  { %3566 = vmatprep.subr.bf16.mxu1 %v3565_v35 }
  0x17   :  { %3443 = vmatmul.mubr.msk.f32.gmra.mrb[2].mxu1 %vm76_vm0, %v21_v40 }
  0x18   :  { %165 = vmatprep.mubr.f32.mxu1 %v5697_v3  ;;  %3568 = vmatpush1.bf16.msra.mxu1 %v3567_v41 }
  0x19   :  { %3570 = vmatprep.subr.bf16.mxu1 %v3569_v42 }
  0x1b   :  { %3444 = vmatmul.mubr.msk.f32.gmra.mrb[4].mxu1 %vm76_vm0, %v22_v45 }
  0x1c   :  { %171 = vmatprep.mubr.f32.mxu1 %v5697_v3  ;;  %3572 = vmatpush1.bf16.msra.mxu1 %v3571_v46 }
  0x1d   :  { %190 = vmatprep.subr.mxu1 %v51_v47 }
  0x1f   :  { %3445 = vmatmul.mubr.msk.f32.gmra.mrb[6].mxu1 %vm76_vm0, %v23_v48 }
  0x20   :  { %191 = vmatpush1.msra.mxu1 %v50_v49  ;;  %242 = vmatprep.mubr.f32.mxu1 %v5697_v3 }
  0x23   :  { %3446 = vmatmul.mubr.msk.f32.vlgmr.msra.gmra.mrb[8].mxu1 %vm76_vm0, %v20_v33 }
  0x24   :  { %248 = vmatprep.mubr.f32.mxu1 %v5697_v3 }
  0x27   :  { %3447 = vmatmul.mubr.msk.f32.gmra.mrb[10].mxu1 %vm76_vm0, %v21_v40 }
  0x28   :  { %254 = vmatprep.mubr.f32.mxu1 %v5697_v3 }
  0x2b   :  { %3448 = vmatmul.mubr.msk.f32.gmra.mrb[12].mxu1 %vm76_vm0, %v22_v45 }
  0x2c   :  { %260 = vmatprep.mubr.f32.mxu1 %v5697_v3 }
  0x2f   :  { %3449 = vmatmul.mubr.msk.f32.gmra.mrb[14].mxu1 %vm76_vm0, %v23_v48 }
  0x85   :  { %v4091_v56 = vpop.permute.xlu1 %68 }
  0x87   :  { %v59_v50 = vpop.permute.xlu0 %58 }
  0x89   :  { %v4114_v10 = vpop.permute.xlu1 %73 }
  0x8b   :  { %v4093_v57 = vpop.permute.xlu0 %63 }
  0xe6   :  { %v155_v51 = vpop.f32.mrb[0].mxu1 }
  0xe7   :  { %v156_v52 = vadd.f32 %v155_v51, %v59_v50  ;;  %v157_v53 = vpop.f32.mrb[1].mxu1 }
  0xe8   :  { %v158_v54 = vadd.f32 %v157_v53, %v59_v50 }
  0xe9   :  { %vm267_vm1 = vcmp.ge.f32.partialorder %v156_v52, 0.0  ;;  %v283_v55 = vmul.f32 0.01, %v156_v52 }
  0xea   :  { %vm268_vm2 = vcmp.ge.f32.partialorder %v158_v54, 0.0  ;;  %v284_v58 = vmul.f32 0.01, %v158_v54  ;;  %v161_v59 = vpop.f32.mrb[2].mxu1 }
  0xeb   :  { %v4095_v60 = vsel %vm267_vm1, %v156_v52, %v283_v55  ;;  %v162_v61 = vadd.f32 %v161_v59, %v4093_v57  ;;  %v163_v62 = vpop.f32.mrb[3].mxu1 }
  0xec   :  { %v4098_v63 = vsel %vm268_vm2, %v158_v54, %v284_v58  ;;  %v164_v0 = vadd.f32 %v163_v62, %v4093_v57  ;;  %381 = vrot.lane.b32.xlu0 %v4095_v60, %s3917_s0 }
  0xed   :  { %vm271_vm3 = vcmp.ge.f32.partialorder %v162_v61, 0.0  ;;  %v287_v1 = vmul.f32 0.01, %v162_v61  ;;  %345 = vst [vmem:[#allocation6 + $0x8] sm:$0xff] %v4098_v63 }
  0xee   :  { %vm272_vm4 = vcmp.ge.f32.partialorder %v164_v0, 0.0  ;;  %v288_v2 = vmul.f32 0.01, %v164_v0  ;;  %v167_v4 = vpop.f32.mrb[4].mxu1 }
  0xef   :  { %v4104_v5 = vsel %vm271_vm3, %v162_v61, %v287_v1  ;;  %v169_v6 = vpop.f32.mrb[5].mxu1  ;;  %v168_v7 = vadd.f32 %v167_v4, %v4091_v56  ;;  %vm405_vm3 = vcmask 228352  }
  0xf0   :  { %v4107_v8 = vsel %vm272_vm4, %v164_v0, %v288_v2  ;;  %v170_v9 = vadd.f32 %v169_v6, %v4091_v56  ;;  %387 = vrot.lane.b32.xlu1 %v4104_v5, %s3917_s0  ;;  %462 = vrot.lane.b32.xlu0 %v4095_v60, %s3918_s1  ;;  %v3575_v18 = vpack.c.bf16 %v4104_v5, %v4095_v60  ;;  %vm486_vm4 = vcmask 1039360  }
  0xf1   :  { %vm275_vm5 = vcmp.ge.f32.partialorder %v168_v7, 0.0  ;;  %v291_v11 = vmul.f32 0.01, %v168_v7  ;;  %349 = vst [vmem:[#allocation6 + $0x28] sm:$0xff] %v4107_v8  ;;  %v3573_v12 = vpack.c.bf16 %v4107_v8, %v4098_v63 }
  0xf2   :  { %v173_v13 = vpop.f32.mrb[6].mxu1  ;;  %vm276_vm6 = vcmp.ge.f32.partialorder %v170_v9, 0.0  ;;  %v292_v14 = vmul.f32 0.01, %v170_v9 }
  0xf3   :  { %v175_v15 = vpop.f32.mrb[7].mxu1  ;;  %v4119_v16 = vsel %vm275_vm5, %v168_v7, %v291_v11  ;;  %v174_v17 = vadd.f32 %v173_v13, %v4114_v10  ;;  %3574 = vmatprep.subr.bf16.mxu0 %v3573_v12  ;;  %vm567_vm5 = vcmask 990208  }
  0xf4   :  { %v4124_v19 = vsel %vm276_vm6, %v170_v9, %v292_v14  ;;  %v176_v20 = vadd.f32 %v175_v15, %v4114_v10  ;;  %468 = vrot.lane.b32.xlu1 %v4104_v5, %s3918_s1  ;;  %543 = vrot.lane.b32.xlu0 %v4095_v60, %s3919_s15  ;;  %vm648_vm6 = vcmask 171008  }
  0xf5   :  { %vm279_vm7 = vcmp.ge.f32.partialorder %v174_v17, 0.0  ;;  %v295_v21 = vmul.f32 0.01, %v174_v17  ;;  %3576 = vmatpush1.bf16.msra.mxu0 %v3575_v18  ;;  %352 = vst [vmem:[#allocation6 + $0x48] sm:$0xff] %v4124_v19 }
  0xf6   :  { %v244_v22 = vpop.f32.mrb[8].mxu1  ;;  %vm280_vm8 = vcmp.ge.f32.partialorder %v176_v20, 0.0  ;;  %v296_v23 = vmul.f32 0.01, %v176_v20 }
  0xf7   :  { %v245_v24 = vadd.f32 %v244_v22, %v59_v50  ;;  %v246_v25 = vpop.f32.mrb[9].mxu1  ;;  %v4132_v26 = vsel %vm279_vm7, %v174_v17, %v295_v21  ;;  %vm729_vm7 = vcmask 982016  }
  0xf8   :  { %v247_v27 = vadd.f32 %v246_v25, %v59_v50  ;;  %v4134_v28 = vsel %vm280_vm8, %v176_v20, %v296_v23  ;;  %549 = vrot.lane.b32.xlu1 %v4104_v5, %s3919_s15  ;;  %624 = vrot.lane.b32.xlu0 %v4095_v60, %s3920_s16  ;;  %v3579_v31 = vpack.c.bf16 %v4132_v26, %v4119_v16  ;;  %vm810_vm8 = vcmask 932864  }
  0xf9   :  { %vm269_vm10 = vcmp.ge.f32.partialorder %v245_v24, 0.0  ;;  %v285_v29 = vmul.f32 0.01, %v245_v24  ;;  %355 = vst [vmem:[#allocation6 + $0x68] sm:$0xff] %v4134_v28  ;;  %v3577_v30 = vpack.c.bf16 %v4134_v28, %v4124_v19 }
  0xfa   :  { %vm270_vm11 = vcmp.ge.f32.partialorder %v247_v27, 0.0  ;;  %v286_v32 = vmul.f32 0.01, %v247_v27  ;;  %v250_v33 = vpop.f32.mrb[10].mxu1 }
  0xfb   :  { %v4145_v34 = vsel %vm269_vm10, %v245_v24, %v285_v29  ;;  %v251_v35 = vadd.f32 %v250_v33, %v4093_v57  ;;  %v252_v36 = vpop.f32.mrb[11].mxu1  ;;  %3578 = vmatprep.subr.bf16.mxu0 %v3577_v30  ;;  %vm907_vm10 = vcmask 113664  }
  0xfc   :  { %347 = vst.msk [vmem:[#allocation6 + $0x10] sm:$0xff] %vm346_vm9, %v4145_v34  ;;  %v302_v37 = vsel %vm270_vm11, %v247_v27, %v286_v32  ;;  %v253_v38 = vadd.f32 %v252_v36, %v4093_v57  ;;  %630 = vrot.lane.b32.xlu1 %v4104_v5, %s3920_s16  ;;  %705 = vrot.lane.b32.xlu0 %v4095_v60, %s3921_s17  ;;  %v1026_v32 = vld [vmem:[%s5694_s2 + $0x8] sm:$0xff]  ;;  %vm992_vm11 = vcmask 924672  }
  0xfd   :  { %319 = vst.msk [vmem:[#allocation2 + $0x18] sm:$0xff] %vm318_vm12, %v302_v37  ;;  %vm273_vm13 = vcmp.ge.f32.partialorder %v251_v35, 0.0  ;;  %v289_v39 = vmul.f32 0.01, %v251_v35  ;;  %3580 = vmatpush1.bf16.msra.mxu0 %v3579_v31  ;;  %1246 = vmatprep.mubr.f32.mxu0 %v1026_v32 }
  0xfe   :  { %vm274_vm14 = vcmp.ge.f32.partialorder %v253_v38, 0.0  ;;  %v290_v40 = vmul.f32 0.01, %v253_v38  ;;  %v256_v41 = vpop.f32.mrb[12].mxu1  ;;  %1424 = vmatprep.mubr.f32.mxu1 %v1026_v32 }
  0xff   :  { %v4156_v42 = vsel %vm273_vm13, %v251_v35, %v289_v39  ;;  %v257_v43 = vadd.f32 %v256_v41, %v4091_v56  ;;  %v258_v44 = vpop.f32.mrb[13].mxu1 }
 0x100   :  { %350 = vst.msk [vmem:[#allocation6 + $0x30] sm:$0xff] %vm346_vm9, %v4156_v42  ;;  %v306_v45 = vsel %vm274_vm14, %v253_v38, %v290_v40  ;;  %v259_v46 = vadd.f32 %v258_v44, %v4091_v56  ;;  %711 = vrot.lane.b32.xlu1 %v4104_v5, %s3921_s17  ;;  %786 = vrot.lane.b32.xlu0 %v4095_v60, %s3922_s18 }
 0x101   :  { %323 = vst.msk [vmem:[#allocation2 + $0x38] sm:$0xff] %vm318_vm12, %v306_v45  ;;  %vm277_vm15 = vcmp.ge.f32.partialorder %v257_v43, 0.0  ;;  %v293_v47 = vmul.f32 0.01, %v257_v43 }
 0x102   :  { %vm278_vm0 = vcmp.ge.f32.partialorder %v259_v46, 0.0  ;;  %v294_v48 = vmul.f32 0.01, %v259_v46  ;;  %v262_v49 = vpop.f32.mrb[14].mxu1 }
 0x103   :  { %v4167_v50 = vsel %vm277_vm15, %v257_v43, %v293_v47  ;;  %v263_v51 = vadd.f32 %v262_v49, %v4114_v10  ;;  %v264_v52 = vpop.f32.mrb[15].mxu1  ;;  %vm1587_vm15 = vcmask 965632  }
 0x104   :  { %353 = vst.msk [vmem:[#allocation6 + $0x50] sm:$0xff] %vm346_vm9, %v4167_v50  ;;  %v310_v53 = vsel %vm278_vm0, %v259_v46, %v294_v48  ;;  %v265_v54 = vadd.f32 %v264_v52, %v4114_v10  ;;  %792 = vrot.lane.b32.xlu1 %v4104_v5, %s3922_s18  ;;  %383 = vrot.lane.b32.xlu0 %v4098_v63, %s3917_s0  ;;  %v846_v45 = vld [vmem:[#allocation2 + $0x18] sm:$0xff] }
 0x105   :  { %327 = vst.msk [vmem:[#allocation2 + $0x58] sm:$0xff] %vm318_vm12, %v310_v53  ;;  %vm281_vm1 = vcmp.ge.f32.partialorder %v263_v51, 0.0  ;;  %v297_v55 = vmul.f32 0.01, %v263_v51 }
 0x106   :  { %vm282_vm2 = vcmp.ge.f32.partialorder %v265_v54, 0.0  ;;  %v298_v56 = vmul.f32 0.01, %v265_v54 }
 0x107   :  { %v4178_v57 = vsel %vm281_vm1, %v263_v51, %v297_v55 }
 0x108   :  { %356 = vst.msk [vmem:[#allocation6 + $0x70] sm:$0xff] %vm346_vm9, %v4178_v57  ;;  %v314_v58 = vsel %vm282_vm2, %v265_v54, %v298_v56  ;;  %399 = vrot.lane.b32.xlu1 %v4132_v26, %s3917_s0  ;;  %464 = vrot.lane.b32.xlu0 %v4098_v63, %s3918_s1  ;;  %v850_v48 = vld [vmem:[#allocation2 + $0x38] sm:$0xff] }
 0x109   :  { %331 = vst.msk [vmem:[#allocation2 + $0x78] sm:$0xff] %vm318_vm12, %v314_v58  ;;  %vm1169_vm12 = vcmask 261120  }
 0x10c   :  { %480 = vrot.lane.b32.xlu1 %v4132_v26, %s3918_s1  ;;  %545 = vrot.lane.b32.xlu0 %v4098_v63, %s3919_s15  ;;  %v854_v49 = vld [vmem:[#allocation2 + $0x58] sm:$0xff] }
 0x110   :  { %561 = vrot.lane.b32.xlu1 %v4132_v26, %s3919_s15  ;;  %626 = vrot.lane.b32.xlu0 %v4098_v63, %s3920_s16  ;;  %v858_v56 = vld [vmem:[#allocation2 + $0x78] sm:$0xff] }
 0x114   :  { %642 = vrot.lane.b32.xlu1 %v4132_v26, %s3920_s16  ;;  %707 = vrot.lane.b32.xlu0 %v4098_v63, %s3921_s17 }
 0x118   :  { %723 = vrot.lane.b32.xlu1 %v4132_v26, %s3921_s17  ;;  %788 = vrot.lane.b32.xlu0 %v4098_v63, %s3922_s18 }
 0x11c   :  { %804 = vrot.lane.b32.xlu1 %v4132_v26, %s3922_s18  ;;  %877 = vrot.lane.b32.xlu0 %v4098_v63, %s3923_s19 }
 0x120   :  { %385 = vrot.lane.b32.xlu1 %v4145_v34, %s3917_s0  ;;  %389 = vrot.lane.b32.xlu0 %v4107_v8, %s3917_s0 }
 0x124   :  { %466 = vrot.lane.b32.xlu1 %v4145_v34, %s3918_s1  ;;  %470 = vrot.lane.b32.xlu0 %v4107_v8, %s3918_s1 }
 0x128   :  { %547 = vrot.lane.b32.xlu1 %v4145_v34, %s3919_s15  ;;  %551 = vrot.lane.b32.xlu0 %v4107_v8, %s3919_s15 }
 0x12c   :  { %628 = vrot.lane.b32.xlu1 %v4145_v34, %s3920_s16  ;;  %632 = vrot.lane.b32.xlu0 %v4107_v8, %s3920_s16 }
 0x130   :  { %709 = vrot.lane.b32.xlu1 %v4145_v34, %s3921_s17  ;;  %713 = vrot.lane.b32.xlu0 %v4107_v8, %s3921_s17 }
 0x134   :  { %790 = vrot.lane.b32.xlu1 %v4145_v34, %s3922_s18  ;;  %794 = vrot.lane.b32.xlu0 %v4107_v8, %s3922_s18 }
 0x138   :  { %879 = vrot.lane.b32.xlu1 %v4145_v34, %s3923_s19  ;;  %393 = vrot.lane.b32.xlu0 %v4119_v16, %s3917_s0 }
 0x13c   :  { %391 = vrot.lane.b32.xlu1 %v4156_v42, %s3917_s0  ;;  %474 = vrot.lane.b32.xlu0 %v4119_v16, %s3918_s1 }
 0x140   :  { %472 = vrot.lane.b32.xlu1 %v4156_v42, %s3918_s1  ;;  %555 = vrot.lane.b32.xlu0 %v4119_v16, %s3919_s15 }
 0x144   :  { %553 = vrot.lane.b32.xlu1 %v4156_v42, %s3919_s15  ;;  %636 = vrot.lane.b32.xlu0 %v4119_v16, %s3920_s16 }
 0x148   :  { %634 = vrot.lane.b32.xlu1 %v4156_v42, %s3920_s16  ;;  %717 = vrot.lane.b32.xlu0 %v4119_v16, %s3921_s17 }
 0x14c   :  { %715 = vrot.lane.b32.xlu1 %v4156_v42, %s3921_s17  ;;  %798 = vrot.lane.b32.xlu0 %v4119_v16, %s3922_s18 }
 0x150   :  { %796 = vrot.lane.b32.xlu1 %v4156_v42, %s3922_s18  ;;  %395 = vrot.lane.b32.xlu0 %v4124_v19, %s3917_s0 }
 0x154   :  { %397 = vrot.lane.b32.xlu1 %v4167_v50, %s3917_s0  ;;  %476 = vrot.lane.b32.xlu0 %v4124_v19, %s3918_s1 }
 0x158   :  { %478 = vrot.lane.b32.xlu1 %v4167_v50, %s3918_s1  ;;  %557 = vrot.lane.b32.xlu0 %v4124_v19, %s3919_s15 }
 0x15c   :  { %559 = vrot.lane.b32.xlu1 %v4167_v50, %s3919_s15  ;;  %638 = vrot.lane.b32.xlu0 %v4124_v19, %s3920_s16 }
 0x15e   :  { %v4271_v59 = vpop.permute.xlu0 %381 }
 0x160   :  { %640 = vrot.lane.b32.xlu1 %v4167_v50, %s3920_s16  ;;  %719 = vrot.lane.b32.xlu0 %v4124_v19, %s3921_s17 }
 0x162   :  { %v4277_v61 = vpop.permute.xlu1 %387  ;;  %v4279_v62 = vpop.permute.xlu0 %462 }
 0x164   :  { %721 = vrot.lane.b32.xlu1 %v4167_v50, %s3921_s17  ;;  %800 = vrot.lane.b32.xlu0 %v4124_v19, %s3922_s18 }
 0x166   :  { %v4285_v0 = vpop.permute.xlu1 %468  ;;  %v4287_v1 = vpop.permute.xlu0 %543 }
 0x168   :  { %802 = vrot.lane.b32.xlu1 %v4167_v50, %s3922_s18  ;;  %401 = vrot.lane.b32.xlu0 %v4134_v28, %s3917_s0 }
 0x16a   :  { %v4293_v2 = vpop.permute.xlu1 %549  ;;  %v4295_v4 = vpop.permute.xlu0 %624 }
 0x16c   :  { %403 = vrot.lane.b32.xlu1 %v4178_v57, %s3917_s0  ;;  %885 = vrot.lane.b32.xlu0 %v4107_v8, %s3923_s19 }
 0x16e   :  { %v4301_v6 = vpop.permute.xlu1 %630  ;;  %v4303_v7 = vpop.permute.xlu0 %705 }
 0x170   :  { %887 = vrot.lane.b32.xlu1 %v4156_v42, %s3923_s19  ;;  %482 = vrot.lane.b32.xlu0 %v4134_v28, %s3918_s1 }
 0x172   :  { %v4309_v9 = vpop.permute.xlu1 %711  ;;  %v4311_v10 = vpop.permute.xlu0 %786 }
 0x174   :  { %484 = vrot.lane.b32.xlu1 %v4178_v57, %s3918_s1  ;;  %563 = vrot.lane.b32.xlu0 %v4134_v28, %s3919_s15 }
 0x176   :  { %v4317_v11 = vpop.permute.xlu1 %792  ;;  %v4319_v12 = vpop.permute.xlu0 %383 }
 0x178   :  { %883 = vrot.lane.b32.xlu1 %v4104_v5, %s3923_s19  ;;  %644 = vrot.lane.b32.xlu0 %v4134_v28, %s3920_s16 }
 0x17a   :  { %v4325_v13 = vpop.permute.xlu1 %399  ;;  %v4327_v14 = vpop.permute.xlu0 %464 }
 0x17c   :  { %565 = vrot.lane.b32.xlu1 %v4178_v57, %s3919_s15  ;;  %725 = vrot.lane.b32.xlu0 %v4134_v28, %s3921_s17 }
 0x17e   :  { %v4333_v15 = vpop.permute.xlu1 %480  ;;  %v4335_v17 = vpop.permute.xlu0 %545 }
 0x180   :  { %895 = vrot.lane.b32.xlu1 %v4167_v50, %s3923_s19  ;;  %806 = vrot.lane.b32.xlu0 %v4134_v28, %s3922_s18 }
 0x182   :  { %v4341_v18 = vpop.permute.xlu1 %561  ;;  %v4343_v20 = vpop.permute.xlu0 %626 }
 0x184   :  { %646 = vrot.lane.b32.xlu1 %v4178_v57, %s3920_s16  ;;  %875 = vrot.lane.b32.xlu0 %v4095_v60, %s3923_s19 }
 0x186   :  { %v4349_v21 = vpop.permute.xlu1 %642  ;;  %v4351_v22 = vpop.permute.xlu0 %707 }
 0x188   :  { %899 = vrot.lane.b32.xlu1 %v4132_v26, %s3923_s19  ;;  %893 = vrot.lane.b32.xlu0 %v4124_v19, %s3923_s19 }
 0x18a   :  { %v4357_v23 = vpop.permute.xlu1 %723  ;;  %v4359_v24 = vpop.permute.xlu0 %788 }
 0x18c   :  { %727 = vrot.lane.b32.xlu1 %v4178_v57, %s3921_s17  ;;  %901 = vrot.lane.b32.xlu0 %v4134_v28, %s3923_s19 }
 0x18e   :  { %v4365_v25 = vpop.permute.xlu1 %804  ;;  %v4367_v27 = vpop.permute.xlu0 %877 }
 0x18f   :  { %5703 = vst [vmem:[#allocation8_spill] sm:$0xff] %v4367_v27 }
 0x190   :  { %972 = vrot.lane.b32.xlu1 %v4145_v34, %s3924_s20  ;;  %891 = vrot.lane.b32.xlu0 %v4119_v16, %s3923_s19 }
 0x192   :  { %v386_v29 = vpop.permute.xlu1 %385  ;;  %v390_v30 = vpop.permute.xlu0 %389 }
 0x193   :  { %v4375_v31 = vsel %vm405_vm3, %v4319_v12, %v386_v29  ;;  %428 = vst.msk [vmem:[#allocation6 + $0x90] sm:$0xff] %vm346_vm9, %v386_v29 }
 0x194   :  { %427 = vst [vmem:[#allocation6 + $0x88] sm:$0xff] %v4375_v31  ;;  %808 = vrot.lane.b32.xlu1 %v4178_v57, %s3922_s18  ;;  %970 = vrot.lane.b32.xlu0 %v4098_v63, %s3924_s20 }
 0x196   :  { %v467_v33 = vpop.permute.xlu1 %466  ;;  %v4386_v34 = vpop.permute.xlu0 %470 }
 0x197   :  { %v4390_v35 = vsel %vm486_vm4, %v4327_v14, %v467_v33  ;;  %509 = vst.msk [vmem:[#allocation6 + $0x110] sm:$0xff] %vm346_vm9, %v467_v33  ;;  %v1042_v33 = vld [vmem:[#allocation6 + $0x30] sm:$0xff] }
 0x198   :  { %508 = vst [vmem:[#allocation6 + $0x108] sm:$0xff] %v4390_v35  ;;  %978 = vrot.lane.b32.xlu1 %v4156_v42, %s3924_s20  ;;  %976 = vrot.lane.b32.xlu0 %v4107_v8, %s3924_s20 }
 0x19a   :  { %v548_v63 = vpop.permute.xlu1 %547  ;;  %v4398_v36 = vpop.permute.xlu0 %551 }
 0x19b   :  { %v4402_v37 = vsel %vm567_vm5, %v4335_v17, %v548_v63  ;;  %590 = vst.msk [vmem:[#allocation6 + $0x190] sm:$0xff] %vm346_vm9, %v548_v63 }
 0x19c   :  { %589 = vst [vmem:[#allocation6 + $0x188] sm:$0xff] %v4402_v37  ;;  %903 = vrot.lane.b32.xlu1 %v4178_v57, %s3923_s19  ;;  %968 = vrot.lane.b32.xlu0 %v4095_v60, %s3924_s20 }
 0x19e   :  { %v629_v8 = vpop.permute.xlu1 %628  ;;  %v4410_v38 = vpop.permute.xlu0 %632 }
 0x19f   :  { %v4414_v39 = vsel %vm648_vm6, %v4343_v20, %v629_v8  ;;  %671 = vst.msk [vmem:[#allocation6 + $0x210] sm:$0xff] %vm346_vm9, %v629_v8 }
 0x1a0   :  { %670 = vst [vmem:[#allocation6 + $0x208] sm:$0xff] %v4414_v39  ;;  %974 = vrot.lane.b32.xlu1 %v4104_v5, %s3924_s20  ;;  %982 = vrot.lane.b32.xlu0 %v4124_v19, %s3924_s20 }
 0x1a2   :  { %v710_v60 = vpop.permute.xlu1 %709  ;;  %v4422_v40 = vpop.permute.xlu0 %713 }
 0x1a3   :  { %v4426_v41 = vsel %vm729_vm7, %v4351_v22, %v710_v60  ;;  %752 = vst.msk [vmem:[#allocation6 + $0x290] sm:$0xff] %vm346_vm9, %v710_v60 }
 0x1a4   :  { %751 = vst [vmem:[#allocation6 + $0x288] sm:$0xff] %v4426_v41  ;;  %984 = vrot.lane.b32.xlu1 %v4167_v50, %s3924_s20  ;;  %988 = vrot.lane.b32.xlu0 %v4134_v28, %s3924_s20  ;;  %v406_v50 = vsel %vm405_vm3, %v4271_v59, %v4319_v12 }
 0x1a6   :  { %v791_v5 = vpop.permute.xlu1 %790  ;;  %v4434_v19 = vpop.permute.xlu0 %794  ;;  %v1087_v60 = vld [vmem:[#allocation6 + $0x210] sm:$0xff] }
 0x1a7   :  { %v4438_v42 = vsel %vm810_vm8, %v4359_v24, %v791_v5  ;;  %833 = vst.msk [vmem:[#allocation6 + $0x310] sm:$0xff] %vm346_vm9, %v791_v5 }
 0x1a8   :  { %832 = vst [vmem:[#allocation6 + $0x308] sm:$0xff] %v4438_v42  ;;  %986 = vrot.lane.b32.xlu1 %v4132_v26, %s3924_s20  ;;  %980 = vrot.lane.b32.xlu0 %v4119_v16, %s3924_s20  ;;  %v408_v16 = vsel %vm405_vm3, %v4277_v61, %v390_v30 }
 0x1a9   :  { %v3583_v52 = vpack.c.bf16 %v408_v16, %v406_v50 }
 0x1aa   :  { %v4446_v28 = vpop.permute.xlu1 %879  ;;  %v4448_v43 = vpop.permute.xlu0 %393 }
 0x1ab   :  { %5704 = vst [vmem:[#allocation9_spill] sm:$0xff] %v4446_v28  ;;  %v4453_v44 = vsel %vm907_vm10, %v4367_v27, %v4446_v28 }
 0x1ac   :  { %5705 = vst [vmem:[#allocation10_spill] sm:$0xff] %v4453_v44  ;;  %933 = vst [vmem:[#allocation6 + $0x388] sm:$0xff] %v4453_v44  ;;  %990 = vrot.lane.b32.xlu1 %v4178_v57, %s3924_s20  ;;  %881 = vrot.lane.b32.xlu0 %v846_v45, %s3923_s19 }
 0x1ae   :  { %v392_v26 = vpop.permute.xlu1 %391  ;;  %v4461_v46 = vpop.permute.xlu0 %474 }
 0x1af   :  { %v409_v47 = vsel %vm405_vm3, %v390_v30, %v392_v26  ;;  %431 = vst.msk [vmem:[#allocation6 + $0xb0] sm:$0xff] %vm346_vm9, %v392_v26  ;;  %v1039_v26 = vld [vmem:[#allocation6 + $0x10] sm:$0xff] }
 0x1b0   :  { %430 = vst [vmem:[#allocation6 + $0xa8] sm:$0xff] %v409_v47  ;;  %889 = vrot.lane.b32.xlu1 %v850_v48, %s3923_s19  ;;  %897 = vrot.lane.b32.xlu0 %v854_v49, %s3923_s19  ;;  %v3581_v51 = vpack.c.bf16 %v409_v47, %v4375_v31  ;;  %v3647_v47 = vpack.c.bf16 %v1042_v33, %v1039_v26  ;;  %v1148_v33 = vld [vmem:[%s5692_s3 + $0x18] sm:$0xff] }
 0x1b2   :  { %v473_v53 = vpop.permute.xlu1 %472  ;;  %v4471_v54 = vpop.permute.xlu0 %555  ;;  %3582 = vmatprep.subr.bf16.mxu0 %v3581_v51 }
 0x1b3   :  { %v4475_v55 = vsel %vm486_vm4, %v4386_v34, %v473_v53  ;;  %512 = vst.msk [vmem:[#allocation6 + $0x130] sm:$0xff] %vm346_vm9, %v473_v53  ;;  %3584 = vmatpush1.bf16.msra.mxu0 %v3583_v52  ;;  %v1145_v53 = vld [vmem:[%s5692_s3] sm:$0xff] }
 0x1b4   :  { %511 = vst [vmem:[#allocation6 + $0x128] sm:$0xff] %v4475_v55  ;;  %905 = vrot.lane.b32.xlu1 %v858_v56, %s3923_s19  ;;  %v1146_v56 = vld [vmem:[%s5692_s3 + $0x8] sm:$0xff] }
 0x1b6   :  { %v554_v57 = vpop.permute.xlu1 %553  ;;  %v4480_v58 = vpop.permute.xlu0 %636 }
 0x1b7   :  { %v4484_v59 = vsel %vm567_vm5, %v4398_v36, %v554_v57  ;;  %593 = vst.msk [vmem:[#allocation6 + $0x1b0] sm:$0xff] %vm346_vm9, %v554_v57 }
 0x1b8   :  { %592 = vst [vmem:[#allocation6 + $0x1a8] sm:$0xff] %v4484_v59 }
 0x1ba   :  { %v635_v61 = vpop.permute.xlu1 %634  ;;  %v4488_v12 = vpop.permute.xlu0 %717 }
 0x1bb   :  { %v4492_v29 = vsel %vm648_vm6, %v4410_v38, %v635_v61  ;;  %674 = vst.msk [vmem:[#allocation6 + $0x230] sm:$0xff] %vm346_vm9, %v635_v61  ;;  %v3925_v61 = vmov 1  }
 0x1bc   :  { %673 = vst [vmem:[#allocation6 + $0x228] sm:$0xff] %v4492_v29  ;;  %3907 = vset.pattern.permute.xlu0 %v3925_v61  ;;  %3908 = vset.pattern.permute.xlu1 %v3925_v61 }
 0x1bd   :  { %1151 = vperm.xlu0 %3907, %v1145_v53   ;;  %1156 = vperm.xlu1 %3908, %v1146_v56  }
 0x1be   :  { %v716_v30 = vpop.permute.xlu1 %715  ;;  %v4496_v31 = vpop.permute.xlu0 %798 }
 0x1bf   :  { %v4500_v32 = vsel %vm729_vm7, %v4422_v40, %v716_v30  ;;  %755 = vst.msk [vmem:[#allocation6 + $0x2b0] sm:$0xff] %vm346_vm9, %v716_v30  ;;  %v1147_v30 = vld [vmem:[%s5692_s3 + $0x10] sm:$0xff] }
 0x1c0   :  { %754 = vst [vmem:[#allocation6 + $0x2a8] sm:$0xff] %v4500_v32 }
 0x1c1   :  { %1161 = vperm.xlu1 %3908, %v1147_v30   ;;  %1166 = vperm.xlu0 %3907, %v1148_v33  }
 0x1c2   :  { %v797_v63 = vpop.permute.xlu1 %796  ;;  %v396_v8 = vpop.permute.xlu0 %395  ;;  %v1090_v5 = vld [vmem:[#allocation6 + $0x230] sm:$0xff] }
 0x1c3   :  { %v4506_v45 = vsel %vm810_vm8, %v4434_v19, %v797_v63  ;;  %836 = vst.msk [vmem:[#allocation6 + $0x330] sm:$0xff] %vm346_vm9, %v797_v63  ;;  %v3645_v16 = vpack.c.bf16 %v1090_v5, %v1087_v60  ;;  %v410_v3 = vsel %vm405_vm3, %v4448_v43, %v396_v8 }
 0x1c4   :  { %835 = vst [vmem:[#allocation6 + $0x328] sm:$0xff] %v4506_v45 }
 0x1c5   :  { %3646 = vmatprep.subr.bf16.mxu1 %v3645_v16 }
 0x1c6   :  { %3648 = vmatpush3.bf16.msra.mxu1 %v3647_v47  ;;  %v398_v48 = vpop.permute.xlu1 %397  ;;  %v4510_v49 = vpop.permute.xlu0 %476 }
 0x1c7   :  { %v411_v50 = vsel %vm405_vm3, %v396_v8, %v398_v48  ;;  %434 = vst.msk [vmem:[#allocation6 + $0xd0] sm:$0xff] %vm346_vm9, %v398_v48 }
 0x1c8   :  { %433 = vst [vmem:[#allocation6 + $0xc8] sm:$0xff] %v411_v50 }
 0x1ca   :  { %v479_v51 = vpop.permute.xlu1 %478  ;;  %v4514_v52 = vpop.permute.xlu0 %557 }
 0x1cb   :  { %v4524_v57 = vsel %vm486_vm4, %v4510_v49, %v479_v51  ;;  %515 = vst.msk [vmem:[#allocation6 + $0x150] sm:$0xff] %vm346_vm9, %v479_v51 }
 0x1cc   :  { %514 = vst [vmem:[#allocation6 + $0x148] sm:$0xff] %v4524_v57 }
 0x1ce   :  { %v560_v63 = vpop.permute.xlu1 %559  ;;  %v4534_v60 = vpop.permute.xlu0 %638 }
 0x1cf   :  { %v4538_v5 = vsel %vm567_vm5, %v4514_v52, %v560_v63  ;;  %596 = vst.msk [vmem:[#allocation6 + $0x1d0] sm:$0xff] %vm346_vm9, %v560_v63 }
 0x1d0   :  { %595 = vst [vmem:[#allocation6 + $0x1c8] sm:$0xff] %v4538_v5 }
 0x1d2   :  { %v641_v16 = vpop.permute.xlu1 %640  ;;  %v4542_v26 = vpop.permute.xlu0 %719 }
 0x1d3   :  { %v4546_v47 = vsel %vm648_vm6, %v4534_v60, %v641_v16  ;;  %677 = vst.msk [vmem:[#allocation6 + $0x250] sm:$0xff] %vm346_vm9, %v641_v16 }
 0x1d4   :  { %676 = vst [vmem:[#allocation6 + $0x248] sm:$0xff] %v4546_v47 }
 0x1d6   :  { %v722_v48 = vpop.permute.xlu1 %721  ;;  %v4550_v51 = vpop.permute.xlu0 %800 }
 0x1d7   :  { %v4554_v53 = vsel %vm729_vm7, %v4542_v26, %v722_v48  ;;  %758 = vst.msk [vmem:[#allocation6 + $0x2d0] sm:$0xff] %vm346_vm9, %v722_v48 }
 0x1d8   :  { %757 = vst [vmem:[#allocation6 + $0x2c8] sm:$0xff] %v4554_v53 }
 0x1da   :  { %v803_v56 = vpop.permute.xlu1 %802  ;;  %v402_v61 = vpop.permute.xlu0 %401 }
 0x1db   :  { %v4560_v30 = vsel %vm810_vm8, %v4550_v51, %v803_v56  ;;  %839 = vst.msk [vmem:[#allocation6 + $0x350] sm:$0xff] %vm346_vm9, %v803_v56  ;;  %v412_v33 = vsel %vm405_vm3, %v4325_v13, %v402_v61  ;;  %v489_v56 = vsel %vm486_vm4, %v4285_v0, %v4386_v34 }
 0x1dc   :  { %5706 = vst [vmem:[#allocation11_spill] sm:$0xff] %v4560_v30  ;;  %838 = vst [vmem:[#allocation6 + $0x348] sm:$0xff] %v4560_v30  ;;  %v3587_v44 = vpack.c.bf16 %v412_v33, %v410_v3  ;;  %v3589_v30 = vpack.c.bf16 %v4475_v55, %v4390_v35  ;;  %v487_v3 = vsel %vm486_vm4, %v4279_v62, %v4327_v14 }
 0x1dd   :  { %v3591_v0 = vpack.c.bf16 %v489_v56, %v487_v3  ;;  %v570_v55 = vsel %vm567_vm5, %v4293_v2, %v4398_v36  ;;  %v572_v36 = vsel %vm567_vm5, %v4471_v54, %v4514_v52  ;;  %v649_v54 = vsel %vm648_vm6, %v4295_v4, %v4343_v20 }
 0x1de   :  { %v404_v63 = vpop.permute.xlu1 %403  ;;  %v4566_v16 = vpop.permute.xlu0 %885 }
 0x1df   :  { %v413_v48 = vsel %vm405_vm3, %v402_v61, %v404_v63  ;;  %437 = vst.msk [vmem:[#allocation6 + $0xf0] sm:$0xff] %vm346_vm9, %v404_v63  ;;  %v3605_v63 = vpack.c.bf16 %v4492_v29, %v4414_v39  ;;  %v653_v39 = vsel %vm648_vm6, %v4480_v58, %v4534_v60  ;;  %v730_v60 = vsel %vm729_vm7, %v4303_v7, %v4351_v22  ;;  %v1045_v7 = vld [vmem:[#allocation6 + $0x50] sm:$0xff] }
 0x1e0   :  { %436 = vst [vmem:[#allocation6 + $0xe8] sm:$0xff] %v413_v48  ;;  %v3585_v28 = vpack.c.bf16 %v413_v48, %v411_v50  ;;  %v3597_v50 = vpack.c.bf16 %v4484_v59, %v4402_v37  ;;  %v734_v22 = vsel %vm729_vm7, %v4488_v12, %v4542_v26  ;;  %v3621_v12 = vpack.c.bf16 %v4506_v45, %v4438_v42  ;;  %v1051_v26 = vld [vmem:[#allocation6 + $0x90] sm:$0xff] }
 0x1e2   :  { %v4575_v27 = vpop.permute.xlu1 %887  ;;  %v483_v13 = vpop.permute.xlu0 %482  ;;  %3586 = vmatprep.subr.bf16.mxu0 %v3585_v28 }
 0x1e3   :  { %v4582_v61 = vsel %vm907_vm10, %v4566_v16, %v4575_v27  ;;  %3588 = vmatpush1.bf16.msra.mxu0 %v3587_v44  ;;  %v493_v34 = vsel %vm486_vm4, %v4333_v15, %v483_v13  ;;  %v491_v44 = vsel %vm486_vm4, %v4461_v46, %v4510_v49  ;;  %v568_v46 = vsel %vm567_vm5, %v4287_v1, %v4335_v17 }
 0x1e4   :  { %936 = vst [vmem:[#allocation6 + $0x3a8] sm:$0xff] %v4582_v61  ;;  %3590 = vmatprep.subr.bf16.mxu0 %v3589_v30  ;;  %v3595_v14 = vpack.c.bf16 %v493_v34, %v491_v44  ;;  %v3599_v49 = vpack.c.bf16 %v570_v55, %v568_v46  ;;  %v651_v17 = vsel %vm648_vm6, %v4301_v6, %v4410_v38  ;;  %v1102_v34 = vld [vmem:[#allocation6 + $0x2b0] sm:$0xff] }
 0x1e5   :  { %v3607_v52 = vpack.c.bf16 %v651_v17, %v649_v54  ;;  %v1111_v17 = vld [vmem:[#allocation6 + $0x310] sm:$0xff] }
 0x1e6   :  { %v485_v28 = vpop.permute.xlu1 %484  ;;  %v564_v43 = vpop.permute.xlu0 %563 }
 0x1e7   :  { %v494_v35 = vsel %vm486_vm4, %v483_v13, %v485_v28  ;;  %518 = vst.msk [vmem:[#allocation6 + $0x170] sm:$0xff] %vm346_vm9, %v485_v28  ;;  %3592 = vmatpush1.bf16.msra.mxu0 %v3591_v0  ;;  %v3613_v13 = vpack.c.bf16 %v4500_v32, %v4426_v41  ;;  %v1093_v32 = vld [vmem:[#allocation6 + $0x250] sm:$0xff] }
 0x1e8   :  { %517 = vst [vmem:[#allocation6 + $0x168] sm:$0xff] %v494_v35  ;;  %v3593_v62 = vpack.c.bf16 %v494_v35, %v4524_v57  ;;  %v574_v57 = vsel %vm567_vm5, %v4341_v18, %v564_v43 }
 0x1e9   :  { %v3603_v1 = vpack.c.bf16 %v574_v57, %v572_v36 }
 0x1ea   :  { %v4599_v15 = vpop.permute.xlu1 %883  ;;  %v645_v8 = vpop.permute.xlu0 %644  ;;  %3594 = vmatprep.subr.bf16.mxu0 %v3593_v62 }
 0x1eb   :  { %3596 = vmatpush1.bf16.msra.mxu0 %v3595_v14  ;;  %v1054_v14 = vld [vmem:[#allocation6 + $0xb0] sm:$0xff] }
 0x1ec   :  { %3598 = vmatprep.subr.bf16.mxu0 %v3597_v50 }
 0x1ee   :  { %v566_v30 = vpop.permute.xlu1 %565  ;;  %v726_v33 = vpop.permute.xlu0 %725 }
 0x1ef   :  { %v575_v2 = vsel %vm567_vm5, %v564_v43, %v566_v30  ;;  %599 = vst.msk [vmem:[#allocation6 + $0x1f0] sm:$0xff] %vm346_vm9, %v566_v30  ;;  %3600 = vmatpush1.bf16.msra.mxu0 %v3599_v49  ;;  %v3655_v49 = vpack.c.bf16 %v1054_v14, %v1051_v26  ;;  %v1105_v30 = vld [vmem:[#allocation6 + $0x2d0] sm:$0xff] }
 0x1f0   :  { %598 = vst [vmem:[#allocation6 + $0x1e8] sm:$0xff] %v575_v2  ;;  %v3601_v37 = vpack.c.bf16 %v575_v2, %v4538_v5  ;;  %v655_v5 = vsel %vm648_vm6, %v4349_v21, %v645_v8  ;;  %v732_v21 = vsel %vm729_vm7, %v4309_v9, %v4422_v40  ;;  %v1048_v9 = vld [vmem:[#allocation6 + $0x70] sm:$0xff] }
 0x1f1   :  { %v3611_v20 = vpack.c.bf16 %v655_v5, %v653_v39  ;;  %v3615_v40 = vpack.c.bf16 %v732_v21, %v730_v60  ;;  %v3651_v35 = vpack.c.bf16 %v1048_v9, %v1045_v7  ;;  %v1114_v2 = vld [vmem:[#allocation6 + $0x330] sm:$0xff] }
 0x1f2   :  { %v4617_v18 = vpop.permute.xlu1 %895  ;;  %v4619_v59 = vpop.permute.xlu0 %806  ;;  %3602 = vmatprep.subr.bf16.mxu0 %v3601_v37  ;;  %v1057_v37 = vld [vmem:[#allocation6 + $0xd0] sm:$0xff] }
 0x1f3   :  { %3604 = vmatpush1.bf16.msra.mxu0 %v3603_v1  ;;  %v817_v57 = vsel %vm810_vm8, %v4365_v25, %v4619_v59  ;;  %v815_v25 = vsel %vm810_vm8, %v4496_v31, %v4550_v51  ;;  %v1063_v21 = vld [vmem:[#allocation6 + $0x110] sm:$0xff] }
 0x1f4   :  { %3606 = vmatprep.subr.bf16.mxu0 %v3605_v63  ;;  %v5707_v63 = vld [vmem:[#allocation11_spill] sm:$0xff]  ;;  %v3627_v5 = vpack.c.bf16 %v817_v57, %v815_v25  ;;  %v1072_v60 = vld [vmem:[#allocation6 + $0x170] sm:$0xff] }
 0x1f5   :  { %v4736_v26 = vld [vmem:[%s5694_s2 + $0x30] sm:$0xff] }
 0x1f6   :  { %v647_v48 = vpop.permute.xlu1 %646  ;;  %v4628_v6 = vpop.permute.xlu0 %875 }
 0x1f7   :  { %v656_v38 = vsel %vm648_vm6, %v645_v8, %v647_v48  ;;  %680 = vst.msk [vmem:[#allocation6 + $0x270] sm:$0xff] %vm346_vm9, %v647_v48  ;;  %3608 = vmatpush1.bf16.msra.mxu0 %v3607_v52  ;;  %v813_v8 = vsel %vm810_vm8, %v4317_v11, %v4434_v19  ;;  %v1060_v11 = vld [vmem:[#allocation6 + $0xf0] sm:$0xff]  ;;  %v3661_v52 = vpack.c.bf16 %v1114_v2, %v1111_v17  ;;  %v5708_v48 = vld [vmem:[#allocation8_spill] sm:$0xff] }
 0x1f8   :  { %679 = vst [vmem:[#allocation6 + $0x268] sm:$0xff] %v656_v38  ;;  %v3609_v4 = vpack.c.bf16 %v656_v38, %v4546_v47  ;;  %v736_v47 = vsel %vm729_vm7, %v4357_v23, %v726_v33  ;;  %v1099_v23 = vld [vmem:[#allocation6 + $0x290] sm:$0xff]  ;;  %v3659_v1 = vpack.c.bf16 %v1060_v11, %v1057_v37  ;;  %v908_v38 = vsel %vm907_vm10, %v4628_v6, %v5708_v48 }
 0x1f9   :  { %v3653_v62 = vpack.c.bf16 %v1102_v34, %v1099_v23  ;;  %v3619_v55 = vpack.c.bf16 %v736_v47, %v734_v22  ;;  %v1027_v17 = vld [vmem:[%s5694_s2 + $0x10] sm:$0xff] }
 0x1fa   :  { %v4639_v29 = vpop.permute.xlu1 %899  ;;  %v4641_v56 = vpop.permute.xlu0 %893  ;;  %3610 = vmatprep.subr.bf16.mxu0 %v3609_v4 }
 0x1fb   :  { %v4648_v58 = vsel %vm907_vm10, %v4641_v56, %v4617_v18  ;;  %3612 = vmatpush1.bf16.msra.mxu0 %v3611_v20  ;;  %v5709_v20 = vld [vmem:[#allocation10_spill] sm:$0xff] }
 0x1fc   :  { %939 = vst [vmem:[#allocation6 + $0x3c8] sm:$0xff] %v4648_v58  ;;  %3614 = vmatprep.subr.bf16.mxu0 %v3613_v13  ;;  %v3629_v31 = vpack.c.bf16 %v4582_v61, %v5709_v20  ;;  %v911_v13 = vsel %vm907_vm10, %v4599_v15, %v4566_v16  ;;  %v1069_v16 = vld [vmem:[#allocation6 + $0x150] sm:$0xff]  ;;  %v1036_v20 = vld [vmem:[%s5694_s2 + $0x58] sm:$0xff] }
 0x1fd   :  { %v3631_v9 = vpack.c.bf16 %v911_v13, %v908_v38  ;;  %v1075_v38 = vld [vmem:[#allocation6 + $0x190] sm:$0xff] }
 0x1fe   :  { %v728_v3 = vpop.permute.xlu1 %727  ;;  %v4656_v41 = vpop.permute.xlu0 %901  ;;  %v1096_v0 = vld [vmem:[#allocation6 + $0x270] sm:$0xff] }
 0x1ff   :  { %v737_v28 = vsel %vm729_vm7, %v726_v33, %v728_v3  ;;  %761 = vst.msk [vmem:[#allocation6 + $0x2f0] sm:$0xff] %vm346_vm9, %v728_v3  ;;  %v3649_v43 = vpack.c.bf16 %v1096_v0, %v1093_v32  ;;  %3616 = vmatpush1.bf16.msra.mxu0 %v3615_v40  ;;  %v1117_v3 = vld [vmem:[#allocation6 + $0x350] sm:$0xff]  ;;  %v917_v15 = vsel %vm907_vm10, %v4639_v29, %v4656_v41  ;;  %v4710_v29 = vld [vmem:[%s5694_s2] sm:$0xff] }
 0x200   :  { %760 = vst [vmem:[#allocation6 + $0x2e8] sm:$0xff] %v737_v28  ;;  %v3617_v44 = vpack.c.bf16 %v737_v28, %v4554_v53  ;;  %v811_v53 = vsel %vm810_vm8, %v4311_v10, %v4359_v24  ;;  %v3667_v28 = vpack.c.bf16 %v1072_v60, %v1069_v16 }
 0x201   :  { %3650 = vmatprep.subr.bf16.mxu1 %v3649_v43  ;;  %v3623_v19 = vpack.c.bf16 %v813_v8, %v811_v53  ;;  %v4724_v8 = vld [vmem:[%s5694_s2 + $0x18] sm:$0xff]  ;;  %v4741_v53 = vld [vmem:[%s5694_s2 + $0x50] sm:$0xff] }
 0x202   :  { %3652 = vmatpush3.bf16.msra.mxu1 %v3651_v35  ;;  %v973_v50 = vpop.permute.xlu1 %972  ;;  %v892_v46 = vpop.permute.xlu0 %891  ;;  %3618 = vmatprep.subr.bf16.mxu0 %v3617_v44 }
 0x203   :  { %1015 = vst.msk [vmem:[#allocation6 + $0x410] sm:$0xff] %vm346_vm9, %v973_v50  ;;  %3654 = vmatprep.subr.bf16.mxu1 %v3653_v62  ;;  %3620 = vmatpush1.bf16.msra.mxu0 %v3619_v55  ;;  %v914_v40 = vsel %vm907_vm10, %v892_v46, %v4641_v56 }
 0x204   :  { %3622 = vmatprep.subr.bf16.mxu0 %v3621_v12  ;;  %v3635_v43 = vpack.c.bf16 %v917_v15, %v914_v40 }
 0x206   :  { %3656 = vmatpush3.bf16.msra.mxu1 %v3655_v49  ;;  %v809_v42 = vpop.permute.xlu1 %808  ;;  %v971_v45 = vpop.permute.xlu0 %970  ;;  %v1108_v33 = vld [vmem:[#allocation6 + $0x2f0] sm:$0xff] }
 0x207   :  { %v818_v36 = vsel %vm810_vm8, %v4619_v59, %v809_v42  ;;  %842 = vst.msk [vmem:[#allocation6 + $0x370] sm:$0xff] %vm346_vm9, %v809_v42  ;;  %v994_v10 = vsel %vm992_vm11, %v971_v45, %v973_v50  ;;  %v3657_v24 = vpack.c.bf16 %v1108_v33, %v1105_v30  ;;  %3624 = vmatpush1.bf16.msra.mxu0 %v3623_v19  ;;  %v1066_v59 = vld [vmem:[#allocation6 + $0x130] sm:$0xff]  ;;  %v4729_v50 = vld [vmem:[%s5694_s2 + $0x38] sm:$0xff]  ;;  %v1034_v33 = vld [vmem:[%s5694_s2 + $0x48] sm:$0xff] }
 0x208   :  { %841 = vst [vmem:[#allocation6 + $0x368] sm:$0xff] %v818_v36  ;;  %1014 = vst [vmem:[#allocation6 + $0x408] sm:$0xff] %v994_v10  ;;  %v3625_v54 = vpack.c.bf16 %v818_v36, %v5707_v63  ;;  %v3663_v6 = vpack.c.bf16 %v1066_v59, %v1063_v21 }
 0x209   :  { %3658 = vmatprep.subr.bf16.mxu1 %v3657_v24 }
 0x20a   :  { %3660 = vmatpush3.bf16.msra.mxu1 %v3659_v1  ;;  %v979_v39 = vpop.permute.xlu1 %978  ;;  %v977_v4 = vpop.permute.xlu0 %976  ;;  %3626 = vmatprep.subr.bf16.mxu0 %v3625_v54  ;;  %v5711_v1 = vmov 0.0   ;;  %v1078_v54 = vld [vmem:[#allocation6 + $0x1b0] sm:$0xff] }
 0x20b   :  { %1018 = vst.msk [vmem:[#allocation6 + $0x430] sm:$0xff] %vm346_vm9, %v979_v39  ;;  %v996_v51 = vsel %vm992_vm11, %v977_v4, %v979_v39  ;;  %3662 = vmatprep.subr.bf16.mxu1 %v3661_v52  ;;  %3628 = vmatpush1.bf16.msra.mxu0 %v3627_v5  ;;  %v1033_v5 = vld [vmem:[%s5694_s2 + $0x40] sm:$0xff]  ;;  %v3671_v39 = vpack.c.bf16 %v1078_v54, %v1075_v38 }
 0x20c   :  { %1017 = vst [vmem:[#allocation6 + $0x428] sm:$0xff] %v996_v51  ;;  %3630 = vmatprep.subr.bf16.mxu0 %v3629_v31  ;;  %v3637_v35 = vpack.c.bf16 %v996_v51, %v994_v10 }
 0x20e   :  { %3664 = vmatpush3.bf16.msra.mxu1 %v3663_v6  ;;  %v4696_v61 = vpop.permute.xlu1 %903  ;;  %v969_v47 = vpop.permute.xlu0 %968  ;;  %v1120_v32 = vld [vmem:[#allocation6 + $0x370] sm:$0xff] }
 0x20f   :  { %v918_v0 = vsel %vm907_vm10, %v4656_v41, %v4696_v61  ;;  %v3665_v34 = vpack.c.bf16 %v1120_v32, %v1117_v3  ;;  %3632 = vmatpush1.bf16.msra.mxu0 %v3631_v9  ;;  %v993_v23 = vsel %vm992_vm11, %v969_v47, %v971_v45  ;;  %v5710_v45 = vld [vmem:[#allocation9_spill] sm:$0xff]  ;;  %v1081_v6 = vld [vmem:[#allocation6 + $0x1d0] sm:$0xff] }
 0x210   :  { %942 = vst [vmem:[#allocation6 + $0x3e8] sm:$0xff] %v918_v0  ;;  %v3633_v56 = vpack.c.bf16 %v918_v0, %v4648_v58  ;;  %v4715_v58 = vld [vmem:[%s5694_s2 + $0x20] sm:$0xff]  ;;  %v1135_v9 = vld [vmem:[#allocation6 + $0x410] sm:$0xff] }
 0x211   :  { %3666 = vmatprep.subr.bf16.mxu1 %v3665_v34 }
 0x212   :  { %3668 = vmatpush3.bf16.msra.mxu1 %v3667_v28  ;;  %v975_v7 = vpop.permute.xlu1 %974  ;;  %v983_v22 = vpop.permute.xlu0 %982  ;;  %3634 = vmatprep.subr.bf16.mxu0 %v3633_v56  ;;  %v1138_v21 = vld [vmem:[#allocation6 + $0x430] sm:$0xff] }
 0x213   :  { %v995_v44 = vsel %vm992_vm11, %v975_v7, %v977_v4  ;;  %3636 = vmatpush1.bf16.msra.mxu0 %v3635_v43  ;;  %v1084_v4 = vld [vmem:[#allocation6 + $0x1f0] sm:$0xff]  ;;  %v3677_v40 = vpack.c.bf16 %v1138_v21, %v1135_v9 }
 0x214   :  { %3638 = vmatprep.subr.bf16.mxu0 %v3637_v35  ;;  %v3639_v41 = vpack.c.bf16 %v995_v44, %v993_v23  ;;  %v3675_v60 = vpack.c.bf16 %v1084_v4, %v1081_v6 }
 0x216   :  { %v985_v62 = vpop.permute.xlu1 %984  ;;  %v989_v14 = vpop.permute.xlu0 %988  ;;  %1247 = vmatmul.mubr.f32.vlgmr.msra.gmra.mrb[0].mxu0 %v4710_v29 }
 0x217   :  { %v998_v55 = vsel %vm992_vm11, %v983_v22, %v985_v62  ;;  %1021 = vst.msk [vmem:[#allocation6 + $0x450] sm:$0xff] %vm346_vm9, %v985_v62  ;;  %3640 = vmatpush1.bf16.msra.mxu0 %v3639_v41  ;;  %1252 = vmatprep.mubr.f32.mxu0 %v4715_v58 }
 0x218   :  { %1020 = vst [vmem:[#allocation6 + $0x448] sm:$0xff] %v998_v55 }
 0x21a   :  { %v987_v46 = vpop.permute.xlu1 %986  ;;  %v981_v12 = vpop.permute.xlu0 %980  ;;  %1253 = vmatmul.mubr.f32.gmra.mrb[2].mxu0 %v4724_v8 }
 0x21b   :  { %1258 = vmatprep.mubr.f32.mxu0 %v4729_v50  ;;  %v999_v49 = vsel %vm992_vm11, %v987_v46, %v989_v14  ;;  %v997_v11 = vsel %vm992_vm11, %v981_v12, %v983_v22 }
 0x21c   :  { %v3643_v36 = vpack.c.bf16 %v999_v49, %v997_v11 }
 0x21e   :  { %v991_v19 = vpop.permute.xlu1 %990  ;;  %v882_v57 = vpop.permute.xlu0 %881  ;;  %1259 = vmatmul.mubr.f32.gmra.mrb[4].mxu0 %v4736_v26  ;;  %v1141_v47 = vld [vmem:[#allocation6 + $0x450] sm:$0xff] }
 0x21f   :  { %v1000_v42 = vsel %vm992_vm11, %v989_v14, %v991_v19  ;;  %1024 = vst.msk [vmem:[#allocation6 + $0x470] sm:$0xff] %vm346_vm9, %v991_v19  ;;  %v910_v30 = vsel %vm907_vm10, %v5710_v45, %v882_v57  ;;  %1264 = vmatprep.mubr.f32.mxu0 %v4741_v53 }
 0x220   :  { %1023 = vst [vmem:[#allocation6 + $0x468] sm:$0xff] %v1000_v42  ;;  %934 = vst.msk [vmem:[#allocation6 + $0x390] sm:$0xff] %vm346_vm9, %v910_v30  ;;  %v3641_v2 = vpack.c.bf16 %v1000_v42, %v998_v55 }
 0x222   :  { %v890_v10 = vpop.permute.xlu1 %889  ;;  %v898_v24 = vpop.permute.xlu0 %897  ;;  %1265 = vmatmul.mubr.f32.gmra.mrb[6].mxu0 %v1034_v33  ;;  %3642 = vmatprep.subr.bf16.mxu0 %v3641_v2 }
 0x223   :  { %v913_v37 = vsel %vm907_vm10, %v4575_v27, %v890_v10  ;;  %v916_v25 = vsel %vm907_vm10, %v4617_v18, %v898_v24  ;;  %3644 = vmatpush1.bf16.msra.mxu0 %v3643_v36  ;;  %1335 = vmatprep.mubr.f32.mxu0 %v5711_v1  ;;  %v1030_v18 = vld [vmem:[%s5694_s2 + $0x28] sm:$0xff] }
 0x224   :  { %937 = vst.msk [vmem:[#allocation6 + $0x3b0] sm:$0xff] %vm346_vm9, %v913_v37  ;;  %940 = vst.msk [vmem:[#allocation6 + $0x3d0] sm:$0xff] %vm346_vm9, %v916_v25 }
 0x226   :  { %v906_v63 = vpop.permute.xlu1 %905  ;;  %3450 = vmatmul.mubr.msk.f32.vlgmr.msra.gmra.mrb[0].mxu0 %vm1169_vm12, %v1027_v17 }
 0x227   :  { %v919_v27 = vsel %vm907_vm10, %v4696_v61, %v906_v63  ;;  %1341 = vmatprep.mubr.f32.mxu0 %v5711_v1  ;;  %v1123_v52 = vld [vmem:[#allocation6 + $0x390] sm:$0xff] }
 0x228   :  { %943 = vst.msk [vmem:[#allocation6 + $0x3f0] sm:$0xff] %vm346_vm9, %v919_v27  ;;  %v1144_v61 = vld [vmem:[#allocation6 + $0x470] sm:$0xff] }
 0x229   :  { %v3681_v3 = vpack.c.bf16 %v1144_v61, %v1141_v47 }
 0x22a   :  { %3451 = vmatmul.mubr.msk.f32.gmra.mrb[2].mxu0 %vm1169_vm12, %v1030_v18 }
 0x22b   :  { %v1126_v59 = vld [vmem:[#allocation6 + $0x3b0] sm:$0xff]  ;;  %1347 = vmatprep.mubr.f32.mxu0 %v5711_v1 }
 0x22c   :  { %v3669_v48 = vpack.c.bf16 %v1126_v59, %v1123_v52  ;;  %v1129_v31 = vld [vmem:[#allocation6 + $0x3d0] sm:$0xff] }
 0x22e   :  { %3670 = vmatprep.subr.bf16.mxu1 %v3669_v48  ;;  %3452 = vmatmul.mubr.msk.f32.gmra.mrb[4].mxu0 %vm1169_vm12, %v1033_v5 }
 0x22f   :  { %3672 = vmatpush3.bf16.msra.mxu1 %v3671_v39  ;;  %v1132_v51 = vld [vmem:[#allocation6 + $0x3f0] sm:$0xff]  ;;  %1353 = vmatprep.mubr.f32.mxu0 %v5711_v1 }
 0x230   :  { %v3673_v13 = vpack.c.bf16 %v1132_v51, %v1129_v31 }
 0x232   :  { %3674 = vmatprep.subr.bf16.mxu1 %v3673_v13  ;;  %3453 = vmatmul.mubr.msk.f32.gmra.mrb[6].mxu0 %vm1169_vm12, %v1036_v20 }
 0x233   :  { %3676 = vmatpush3.bf16.msra.mxu1 %v3675_v60 }
 0x234   :  { %3678 = vmatprep.subr.bf16.mxu1 %v3677_v40 }
 0x236   :  { %1425 = vmatmul.mubr.f32.vlgmr.msra.gmra.mrb[16].mxu1 %v4710_v29 }
 0x237   :  { %3680 = vmatpush3.bf16.msra.mxu1 %v3677_v40  ;;  %1429 = vmatprep.mubr.f32.mxu1 %v4715_v58 }
 0x238   :  { %3682 = vmatprep.subr.bf16.mxu1 %v3681_v3 }
 0x23a   :  { %1430 = vmatmul.mubr.f32.gmra.mrb[18].mxu1 %v4724_v8 }
 0x23b   :  { %3684 = vmatpush3.bf16.msra.mxu1 %v3681_v3  ;;  %1434 = vmatprep.mubr.f32.mxu1 %v4729_v50 }
 0x23c   :  { %v4794_v32 = vpop.permute.xlu0 %1151  ;;  %v4797_v15 = vpop.permute.xlu1 %1156 }
 0x23e   :  { %1435 = vmatmul.mubr.f32.gmra.mrb[20].mxu1 %v4736_v26 }
 0x23f   :  { %1439 = vmatprep.mubr.f32.mxu1 %v4741_v53 }
 0x240   :  { %v4808_v58 = vpop.permute.xlu1 %1161  ;;  %v1167_v53 = vpop.permute.xlu0 %1166 }
 0x242   :  { %1440 = vmatmul.mubr.f32.gmra.mrb[22].mxu1 %v1034_v33 }
 0x243   :  { %3532 = vmatprep.mubr.msk.f32.mxu1 %vm1169_vm12, %v1027_v17 }
 0x246   :  { %3533 = vmatmul.mubr.msk.f32.vlgmr.msra.gmra.mrb[24].mxu1 %vm1169_vm12, %v1030_v18 }
 0x247   :  { %3535 = vmatprep.mubr.msk.f32.mxu1 %vm1169_vm12, %v1033_v5 }
 0x24a   :  { %3536 = vmatmul.mubr.msk.f32.gmra.mrb[26].mxu1 %vm1169_vm12, %v1036_v20 }
 0x2f9   :  { %v1337_v0 = vpop.f32.mrb[0].mxu0 }
 0x2fa   :  { %v3835_v34 = vadd.f32 %v1337_v0, %v4794_v32  ;;  %v1339_v16 = vpop.f32.mrb[1].mxu0 }
 0x2fb   :  { %v3836_v28 = vadd.f32 %v1339_v16, %v4794_v32 }
 0x2fc   :  { %vm1530_vm13 = vcmp.ge.f32.partialorder %v3835_v34, 0.0  ;;  %v1542_v56 = vmul.f32 0.01, %v3835_v34 }
 0x2fd   :  { %vm1531_vm14 = vcmp.ge.f32.partialorder %v3836_v28, 0.0  ;;  %v1543_v43 = vmul.f32 0.01, %v3836_v28  ;;  %v1343_v7 = vpop.f32.mrb[2].mxu0 }
 0x2fe   :  { %v4800_v22 = vsel %vm1530_vm13, %v3835_v34, %v1542_v56  ;;  %v3837_v35 = vadd.f32 %v1343_v7, %v4797_v15  ;;  %v1345_v23 = vpop.f32.mrb[3].mxu0 }
 0x2ff   :  { %v4803_v44 = vsel %vm1531_vm14, %v3836_v28, %v1543_v43  ;;  %v3838_v29 = vadd.f32 %v1345_v23, %v4797_v15  ;;  %1611 = vrot.lane.b32.xlu1 %v4800_v22, %s3918_s1 }
 0x300   :  { %vm1533_vm0 = vcmp.ge.f32.partialorder %v3837_v35, 0.0  ;;  %v1545_v41 = vmul.f32 0.01, %v3837_v35  ;;  %1588 = vst.msk [vmem:[#allocation6 + $0x8] sm:$0xff] %vm1587_vm15, %v4803_v44 }
 0x301   :  { %vm1534_vm1 = vcmp.ge.f32.partialorder %v3838_v29, 0.0  ;;  %v1546_v62 = vmul.f32 0.01, %v3838_v29  ;;  %v1349_v14 = vpop.f32.mrb[4].mxu0 }
 0x302   :  { %v4812_v55 = vsel %vm1533_vm0, %v3837_v35, %v1545_v41  ;;  %v1351_v8 = vpop.f32.mrb[5].mxu0  ;;  %v3839_v50 = vadd.f32 %v1349_v14, %v4808_v58  ;;  %vm1965_vm0 = vcmask 818176  }
 0x303   :  { %v4815_v46 = vsel %vm1534_vm1, %v3838_v29, %v1546_v62  ;;  %v3840_v12 = vadd.f32 %v1351_v8, %v4808_v58  ;;  %1663 = vrot.lane.b32.xlu1 %v4800_v22, %s3926_s29  ;;  %v3687_v27 = vpack.c.bf16 %v4812_v55, %v4800_v22  ;;  %vm1679_vm1 = vcmask 1031168  }
 0x304   :  { %vm1536_vm2 = vcmp.ge.f32.partialorder %v3839_v50, 0.0  ;;  %v1548_v26 = vmul.f32 0.01, %v3839_v50  ;;  %1590 = vst.msk [vmem:[#allocation6 + $0x28] sm:$0xff] %vm1587_vm15, %v4815_v46 }
 0x305   :  { %v1355_v49 = vpop.f32.mrb[6].mxu0  ;;  %vm1537_vm3 = vcmp.ge.f32.partialorder %v3840_v12, 0.0  ;;  %v1549_v11 = vmul.f32 0.01, %v3840_v12 }
 0x306   :  { %v4822_v19 = vsel %vm1536_vm2, %v3839_v50, %v1548_v26  ;;  %v3841_v57 = vadd.f32 %v1355_v49, %v1167_v53  ;;  %v1357_v42 = vpop.f32.mrb[7].mxu0  ;;  %vm2038_vm2 = vcmask 809984  }
 0x307   :  { %v4824_v45 = vsel %vm1537_vm3, %v3840_v12, %v1549_v11  ;;  %v3842_v30 = vadd.f32 %v1357_v42, %v1167_v53  ;;  %1724 = vrot.lane.b32.xlu1 %v4800_v22, %s3922_s18  ;;  %v2149_v10 = vld [vmem:[#allocation6 + $0x8] sm:$0xff]  ;;  %vm2111_vm3 = vcmask 801792  }
 0x308   :  { %vm1539_vm5 = vcmp.ge.f32.partialorder %v3841_v57, 0.0  ;;  %v1551_v33 = vmul.f32 0.01, %v3841_v57  ;;  %1592 = vst.msk [vmem:[#allocation6 + $0x48] sm:$0xff] %vm1587_vm15, %v4824_v45 }
 0x309   :  { %v3499_v2 = vpop.f32.mrb[16].mxu1  ;;  %vm1540_vm6 = vcmp.ge.f32.partialorder %v3842_v30, 0.0  ;;  %v1552_v36 = vmul.f32 0.01, %v3842_v30 }
 0x30a   :  { %v3500_v24 = vpop.f32.mrb[17].mxu1  ;;  %v4830_v37 = vsel %vm1539_vm5, %v3841_v57, %v1551_v33 }
 0x30b   :  { %v3501_v25 = vadd.f32 %v3500_v24, %v3499_v2  ;;  %v4832_v17 = vsel %vm1540_vm6, %v3842_v30, %v1552_v36  ;;  %1796 = vrot.lane.b32.xlu1 %v4800_v22, %s3924_s20  ;;  %v2151_v63 = vld [vmem:[#allocation6 + $0x28] sm:$0xff]  ;;  %v3691_v20 = vpack.c.bf16 %v4830_v37, %v4822_v19 }
 0x30c   :  { %v3685_v18 = vpack.c.bf16 %v2151_v63, %v2149_v10  ;;  %1594 = vst.msk [vmem:[#allocation6 + $0x68] sm:$0xff] %vm1587_vm15, %v4832_v17 }
 0x30d   :  { %v3502_v54 = vpop.f32.mrb[18].mxu1  ;;  %v1427_v9 = vadd.f32 %v3501_v25, %v4794_v32 }
 0x30e   :  { %v3503_v52 = vpop.f32.mrb[19].mxu1  ;;  %3686 = vmatprep.subr.bf16.mxu1 %v3685_v18 }
 0x30f   :  { %v3504_v59 = vadd.f32 %v3503_v52, %v3502_v54  ;;  %1868 = vrot.lane.b32.xlu1 %v4800_v22, %s3927_s30  ;;  %3688 = vmatpush1.bf16.msra.mxu1 %v3687_v27  ;;  %v2153_v48 = vld [vmem:[#allocation6 + $0x48] sm:$0xff] }
 0x311   :  { %v3505_v5 = vpop.f32.mrb[20].mxu1  ;;  %v1432_v6 = vadd.f32 %v3504_v59, %v4797_v15 }
 0x312   :  { %v3506_v38 = vpop.f32.mrb[21].mxu1 }
 0x313   :  { %v3507_v39 = vadd.f32 %v3506_v38, %v3505_v5  ;;  %1941 = vrot.lane.b32.xlu1 %v4800_v22, %s3928_s6  ;;  %v2155_v4 = vld [vmem:[#allocation6 + $0x68] sm:$0xff] }
 0x314   :  { %v3689_v31 = vpack.c.bf16 %v2155_v4, %v2153_v48 }
 0x315   :  { %v3508_v51 = vpop.f32.mrb[22].mxu1  ;;  %v1437_v28 = vadd.f32 %v3507_v39, %v4808_v58 }
 0x316   :  { %v3509_v21 = vpop.f32.mrb[23].mxu1  ;;  %3690 = vmatprep.subr.bf16.mxu1 %v3689_v31 }
 0x317   :  { %v3510_v13 = vadd.f32 %v3509_v21, %v3508_v51  ;;  %1726 = vrot.lane.b32.xlu1 %v4803_v44, %s3922_s18  ;;  %3692 = vmatpush1.bf16.msra.mxu1 %v3691_v20 }
 0x319   :  { %v3534_v60 = vpop.f32.mrb[24].mxu1  ;;  %v1442_v0 = vadd.f32 %v3510_v13, %v1167_v53 }
 0x31a   :  { %v1517_v40 = vadd.f32 %v3534_v60, %v1432_v6  ;;  %v1511_v61 = vpop.f32.mrb[25].mxu1 }
 0x31b   :  { %v1512_v47 = vadd.f32 %v1511_v61, %v1427_v9  ;;  %1798 = vrot.lane.b32.xlu1 %v4803_v44, %s3924_s20 }
 0x31c   :  { %vm1535_vm7 = vcmp.ge.f32.partialorder %v1517_v40, 0.0  ;;  %v1547_v3 = vmul.f32 0.01, %v1517_v40 }
 0x31d   :  { %vm1532_vm10 = vcmp.ge.f32.partialorder %v1512_v47, 0.0  ;;  %v1544_v34 = vmul.f32 0.01, %v1512_v47  ;;  %v3537_v16 = vpop.f32.mrb[26].mxu1 }
 0x31e   :  { %v1559_v56 = vsel %vm1535_vm7, %v1517_v40, %v1547_v3  ;;  %v1527_v43 = vadd.f32 %v3537_v16, %v1442_v0  ;;  %v1521_v15 = vpop.f32.mrb[27].mxu1  ;;  %v2137_v40 = vld [vmem:[%s5694_s2 + $0x68] sm:$0xff] }
 0x31f   :  { %1571 = vst.msk [vmem:[#allocation3 + $0x30] sm:$0xff] %vm346_vm9, %v1559_v56  ;;  %v1556_v32 = vsel %vm1532_vm10, %v1512_v47, %v1544_v34  ;;  %v1522_v7 = vadd.f32 %v1521_v15, %v1437_v28  ;;  %1870 = vrot.lane.b32.xlu1 %v4803_v44, %s3927_s30  ;;  %2320 = vmatprep.mubr.f32.mxu1 %v2137_v40 }
 0x320   :  { %1568 = vst.msk [vmem:[#allocation3 + $0x10] sm:$0xff] %vm346_vm9, %v1556_v32  ;;  %vm1541_vm13 = vcmp.ge.f32.partialorder %v1527_v43, 0.0  ;;  %v1553_v35 = vmul.f32 0.01, %v1527_v43 }
 0x321   :  { %vm1538_vm14 = vcmp.ge.f32.partialorder %v1522_v7, 0.0  ;;  %v1550_v23 = vmul.f32 0.01, %v1522_v7 }
 0x322   :  { %v1565_v29 = vsel %vm1541_vm13, %v1527_v43, %v1553_v35 }
 0x323   :  { %1577 = vst.msk [vmem:[#allocation3 + $0x70] sm:$0xff] %vm346_vm9, %v1565_v29  ;;  %v1562_v41 = vsel %vm1538_vm14, %v1522_v7, %v1550_v23  ;;  %1943 = vrot.lane.b32.xlu1 %v4803_v44, %s3928_s6 }
 0x324   :  { %1574 = vst.msk [vmem:[#allocation3 + $0x50] sm:$0xff] %vm346_vm9, %v1562_v41  ;;  %vm1892_vm9 = vcmask 916480  }
 0x326   :  { %v4861_v58 = vld [vmem:[#allocation3 + $0x30] sm:$0xff] }
 0x327   :  { %1734 = vrot.lane.b32.xlu0 %v4861_v58, %s3922_s18  ;;  %1615 = vrot.lane.b32.xlu1 %v4812_v55, %s3918_s1  ;;  %v4879_v62 = vld [vmem:[#allocation3 + $0x10] sm:$0xff] }
 0x32a   :  { %v4897_v14 = vld [vmem:[#allocation3 + $0x70] sm:$0xff] }
 0x32b   :  { %1806 = vrot.lane.b32.xlu0 %v4861_v58, %s3924_s20  ;;  %1667 = vrot.lane.b32.xlu1 %v4812_v55, %s3926_s29  ;;  %v4911_v8 = vld [vmem:[#allocation3 + $0x50] sm:$0xff] }
 0x32f   :  { %1878 = vrot.lane.b32.xlu0 %v4861_v58, %s3927_s30  ;;  %1732 = vrot.lane.b32.xlu1 %v4815_v46, %s3922_s18 }
 0x333   :  { %1951 = vrot.lane.b32.xlu0 %v4861_v58, %s3928_s6  ;;  %1804 = vrot.lane.b32.xlu1 %v4815_v46, %s3924_s20 }
 0x337   :  { %1728 = vrot.lane.b32.xlu0 %v4879_v62, %s3922_s18  ;;  %1876 = vrot.lane.b32.xlu1 %v4815_v46, %s3927_s30 }
 0x33b   :  { %1800 = vrot.lane.b32.xlu0 %v4879_v62, %s3924_s20  ;;  %1949 = vrot.lane.b32.xlu1 %v4815_v46, %s3928_s6 }
 0x33f   :  { %1872 = vrot.lane.b32.xlu0 %v4879_v62, %s3927_s30  ;;  %1619 = vrot.lane.b32.xlu1 %v4822_v19, %s3918_s1 }
 0x343   :  { %1945 = vrot.lane.b32.xlu0 %v4879_v62, %s3928_s6  ;;  %1671 = vrot.lane.b32.xlu1 %v4822_v19, %s3926_s29 }
 0x347   :  { %1746 = vrot.lane.b32.xlu0 %v4897_v14, %s3922_s18  ;;  %1736 = vrot.lane.b32.xlu1 %v4822_v19, %s3922_s18 }
 0x34b   :  { %1818 = vrot.lane.b32.xlu0 %v4897_v14, %s3924_s20  ;;  %1808 = vrot.lane.b32.xlu1 %v4822_v19, %s3924_s20 }
 0x34f   :  { %1890 = vrot.lane.b32.xlu0 %v4897_v14, %s3927_s30  ;;  %1880 = vrot.lane.b32.xlu1 %v4822_v19, %s3927_s30 }
 0x353   :  { %1740 = vrot.lane.b32.xlu0 %v4911_v8, %s3922_s18  ;;  %1738 = vrot.lane.b32.xlu1 %v4824_v45, %s3922_s18 }
 0x357   :  { %1812 = vrot.lane.b32.xlu0 %v4911_v8, %s3924_s20  ;;  %1810 = vrot.lane.b32.xlu1 %v4824_v45, %s3924_s20 }
 0x35b   :  { %1884 = vrot.lane.b32.xlu0 %v4911_v8, %s3927_s30  ;;  %1882 = vrot.lane.b32.xlu1 %v4824_v45, %s3927_s30 }
 0x35f   :  { %1613 = vrot.lane.b32.xlu0 %v4803_v44, %s3918_s1  ;;  %1955 = vrot.lane.b32.xlu1 %v4824_v45, %s3928_s6 }
 0x363   :  { %1665 = vrot.lane.b32.xlu0 %v4803_v44, %s3926_s29  ;;  %1623 = vrot.lane.b32.xlu1 %v4830_v37, %s3918_s1 }
 0x367   :  { %1730 = vrot.lane.b32.xlu0 %v4812_v55, %s3922_s18  ;;  %1675 = vrot.lane.b32.xlu1 %v4830_v37, %s3926_s29 }
 0x36b   :  { %1802 = vrot.lane.b32.xlu0 %v4812_v55, %s3924_s20  ;;  %1953 = vrot.lane.b32.xlu1 %v4822_v19, %s3928_s6 }
 0x36f   :  { %1874 = vrot.lane.b32.xlu0 %v4812_v55, %s3927_s30  ;;  %2016 = vrot.lane.b32.xlu1 %v4803_v44, %s3929_s7 }
 0x371   :  { %v4945_v50 = vpop.permute.xlu1 %1611 }
 0x373   :  { %1947 = vrot.lane.b32.xlu0 %v4812_v55, %s3928_s6  ;;  %2022 = vrot.lane.b32.xlu1 %v4815_v46, %s3929_s7 }
 0x375   :  { %v4951_v12 = vpop.permute.xlu1 %1663 }
 0x377   :  { %1617 = vrot.lane.b32.xlu0 %v4815_v46, %s3918_s1  ;;  %1744 = vrot.lane.b32.xlu1 %v4832_v17, %s3922_s18 }
 0x379   :  { %v4957_v26 = vpop.permute.xlu1 %1724 }
 0x37b   :  { %1669 = vrot.lane.b32.xlu0 %v4815_v46, %s3926_s29  ;;  %2014 = vrot.lane.b32.xlu1 %v4800_v22, %s3929_s7 }
 0x37d   :  { %v4963_v53 = vpop.permute.xlu1 %1796 }
 0x37f   :  { %1621 = vrot.lane.b32.xlu0 %v4824_v45, %s3918_s1  ;;  %1816 = vrot.lane.b32.xlu1 %v4832_v17, %s3924_s20 }
 0x381   :  { %v4969_v49 = vpop.permute.xlu1 %1868 }
 0x383   :  { %1673 = vrot.lane.b32.xlu0 %v4824_v45, %s3926_s29  ;;  %2028 = vrot.lane.b32.xlu1 %v4824_v45, %s3929_s7 }
 0x385   :  { %v4975_v11 = vpop.permute.xlu1 %1941 }
 0x387   :  { %1742 = vrot.lane.b32.xlu0 %v4830_v37, %s3922_s18  ;;  %1888 = vrot.lane.b32.xlu1 %v4832_v17, %s3927_s30 }
 0x389   :  { %v4981_v57 = vpop.permute.xlu1 %1726 }
 0x38b   :  { %1814 = vrot.lane.b32.xlu0 %v4830_v37, %s3924_s20  ;;  %2026 = vrot.lane.b32.xlu1 %v4822_v19, %s3929_s7 }
 0x38d   :  { %v4987_v42 = vpop.permute.xlu1 %1798 }
 0x38f   :  { %1886 = vrot.lane.b32.xlu0 %v4830_v37, %s3927_s30  ;;  %1961 = vrot.lane.b32.xlu1 %v4832_v17, %s3928_s6 }
 0x391   :  { %v4993_v30 = vpop.permute.xlu1 %1870 }
 0x393   :  { %1625 = vrot.lane.b32.xlu0 %v4832_v17, %s3918_s1  ;;  %2089 = vrot.lane.b32.xlu1 %v4803_v44, %s3930_s8 }
 0x395   :  { %v4999_v33 = vpop.permute.xlu1 %1943 }
 0x397   :  { %1957 = vrot.lane.b32.xlu0 %v4911_v8, %s3928_s6  ;;  %2034 = vrot.lane.b32.xlu1 %v4832_v17, %s3929_s7 }
 0x399   :  { %v1735_v2 = vpop.permute.xlu0 %1734  ;;  %v5005_v36 = vpop.permute.xlu1 %1615 }
 0x39b   :  { %1677 = vrot.lane.b32.xlu0 %v4832_v17, %s3926_s29  ;;  %2095 = vrot.lane.b32.xlu1 %v4815_v46, %s3930_s8 }
 0x39d   :  { %v1807_v10 = vpop.permute.xlu0 %1806  ;;  %v5011_v24 = vpop.permute.xlu1 %1667 }
 0x39f   :  { %1963 = vrot.lane.b32.xlu0 %v4897_v14, %s3928_s6  ;;  %2087 = vrot.lane.b32.xlu1 %v4800_v22, %s3930_s8 }
 0x3a1   :  { %v1879_v44 = vpop.permute.xlu0 %1878  ;;  %v5017_v25 = vpop.permute.xlu1 %1732 }
 0x3a2   :  { %v1751_v63 = vsel %vm810_vm8, %v5017_v25, %v1735_v2  ;;  %v2222_v2 = vld [vmem:[%s5692_s3 + $0x10] sm:$0xff] }
 0x3a3   :  { %1959 = vrot.lane.b32.xlu0 %v4830_v37, %s3928_s6  ;;  %1767 = vst.msk [vmem:[#allocation6 + $0x1a8] sm:$0xff] %vm1587_vm15, %v1751_v63  ;;  %2101 = vrot.lane.b32.xlu1 %v4824_v45, %s3930_s8  ;;  %v2223_v63 = vld [vmem:[%s5692_s3 + $0x18] sm:$0xff] }
 0x3a5   :  { %v1952_v46 = vpop.permute.xlu0 %1951  ;;  %v5026_v27 = vpop.permute.xlu1 %1804 }
 0x3a6   :  { %v1823_v22 = vsel %vm992_vm11, %v5026_v27, %v1807_v10 }
 0x3a7   :  { %2018 = vrot.lane.b32.xlu0 %v4879_v62, %s3929_s7  ;;  %1839 = vst.msk [vmem:[#allocation6 + $0x228] sm:$0xff] %vm1587_vm15, %v1823_v22  ;;  %2107 = vrot.lane.b32.xlu1 %v4832_v17, %s3930_s8 }
 0x3a9   :  { %v1729_v18 = vpop.permute.xlu0 %1728  ;;  %v5035_v54 = vpop.permute.xlu1 %1876 }
 0x3aa   :  { %v1749_v45 = vsel %vm810_vm8, %v4981_v57, %v1729_v18  ;;  %v1896_v52 = vsel %vm1892_vm9, %v5035_v54, %v1879_v44 }
 0x3ab   :  { %1765 = vst.msk [vmem:[#allocation6 + $0x188] sm:$0xff] %vm1587_vm15, %v1749_v45  ;;  %2024 = vrot.lane.b32.xlu0 %v4861_v58, %s3929_s7  ;;  %1912 = vst.msk [vmem:[#allocation6 + $0x2a8] sm:$0xff] %vm1587_vm15, %v1896_v52  ;;  %2099 = vrot.lane.b32.xlu1 %v4822_v19, %s3930_s8 }
 0x3ad   :  { %v1801_v17 = vpop.permute.xlu0 %1800  ;;  %v5047_v59 = vpop.permute.xlu1 %1949 }
 0x3ae   :  { %v1821_v5 = vsel %vm992_vm11, %v4987_v42, %v1801_v17  ;;  %v1969_v48 = vsel %vm1965_vm0, %v5047_v59, %v1952_v46 }
 0x3af   :  { %1837 = vst.msk [vmem:[#allocation6 + $0x208] sm:$0xff] %vm1587_vm15, %v1821_v5  ;;  %2020 = vrot.lane.b32.xlu0 %v4812_v55, %s3929_s7  ;;  %1985 = vst.msk [vmem:[#allocation6 + $0x328] sm:$0xff] %vm1587_vm15, %v1969_v48 }
 0x3b1   :  { %v1873_v38 = vpop.permute.xlu0 %1872  ;;  %v5057_v39 = vpop.permute.xlu1 %1619 }
 0x3b2   :  { %v1894_v19 = vsel %vm1892_vm9, %v4993_v30, %v1873_v38 }
 0x3b3   :  { %1910 = vst.msk [vmem:[#allocation6 + $0x288] sm:$0xff] %vm1587_vm15, %v1894_v19  ;;  %2030 = vrot.lane.b32.xlu0 %v4911_v8, %s3929_s7 }
 0x3b5   :  { %v1946_v4 = vpop.permute.xlu0 %1945  ;;  %v5064_v20 = vpop.permute.xlu1 %1671 }
 0x3b6   :  { %v1967_v31 = vsel %vm1965_vm0, %v4999_v33, %v1946_v4 }
 0x3b7   :  { %1983 = vst.msk [vmem:[#allocation6 + $0x308] sm:$0xff] %vm1587_vm15, %v1967_v31  ;;  %2036 = vrot.lane.b32.xlu0 %v4897_v14, %s3929_s7 }
 0x3b9   :  { %v1747_v51 = vpop.permute.xlu0 %1746  ;;  %v5071_v21 = vpop.permute.xlu1 %1736 }
 0x3bb   :  { %2032 = vrot.lane.b32.xlu0 %v4830_v37, %s3929_s7 }
 0x3bd   :  { %v5075_v13 = vpop.permute.xlu0 %1818  ;;  %v5077_v6 = vpop.permute.xlu1 %1808 }
 0x3bf   :  { %2091 = vrot.lane.b32.xlu0 %v4879_v62, %s3930_s8 }
 0x3c1   :  { %v5081_v60 = vpop.permute.xlu0 %1890  ;;  %v5083_v9 = vpop.permute.xlu1 %1880 }
 0x3c3   :  { %2097 = vrot.lane.b32.xlu0 %v4861_v58, %s3930_s8  ;;  %v2220_v58 = vld [vmem:[%s5692_s3] sm:$0xff] }
 0x3c5   :  { %v1741_v61 = vpop.permute.xlu0 %1740  ;;  %v5090_v47 = vpop.permute.xlu1 %1738 }
 0x3c6   :  { %v1753_v3 = vsel %vm810_vm8, %v5090_v47, %v1741_v61 }
 0x3c7   :  { %2093 = vrot.lane.b32.xlu0 %v4812_v55, %s3930_s8  ;;  %1769 = vst.msk [vmem:[#allocation6 + $0x1c8] sm:$0xff] %vm1587_vm15, %v1753_v3 }
 0x3c9   :  { %v1813_v0 = vpop.permute.xlu0 %1812  ;;  %v5097_v34 = vpop.permute.xlu1 %1810 }
 0x3ca   :  { %v1825_v16 = vsel %vm992_vm11, %v5097_v34, %v1813_v0 }
 0x3cb   :  { %2103 = vrot.lane.b32.xlu0 %v4911_v8, %s3930_s8  ;;  %1841 = vst.msk [vmem:[#allocation6 + $0x248] sm:$0xff] %vm1587_vm15, %v1825_v16  ;;  %v2221_v8 = vld [vmem:[%s5692_s3 + $0x8] sm:$0xff] }
 0x3cd   :  { %v1885_v28 = vpop.permute.xlu0 %1884  ;;  %v5104_v56 = vpop.permute.xlu1 %1882 }
 0x3ce   :  { %v1898_v43 = vsel %vm1892_vm9, %v5104_v56, %v1885_v28 }
 0x3cf   :  { %2109 = vrot.lane.b32.xlu0 %v4897_v14, %s3930_s8  ;;  %1914 = vst.msk [vmem:[#allocation6 + $0x2c8] sm:$0xff] %vm1587_vm15, %v1898_v43  ;;  %v3931_v14 = vmov 2  }
 0x3d0   :  { %3909 = vset.pattern.permute.xlu1 %v3931_v14  ;;  %3910 = vset.pattern.permute.xlu0 %v3931_v14 }
 0x3d1   :  { %v1614_v55 = vpop.permute.xlu0 %1613  ;;  %v5111_v15 = vpop.permute.xlu1 %1955  ;;  %2226 = vperm.xlu1 %3909, %v2220_v58  }
 0x3d2   :  { %1640 = vst.msk [vmem:[#allocation6 + $0x88] sm:$0xff] %vm1587_vm15, %v1614_v55  ;;  %v1627_v4 = vsel %vm486_vm4, %v4945_v50, %v1614_v55 }
 0x3d3   :  { %2105 = vrot.lane.b32.xlu0 %v4830_v37, %s3930_s8 }
 0x3d5   :  { %v5116_v32 = vpop.permute.xlu0 %1665  ;;  %v1624_v7 = vpop.permute.xlu1 %1623  ;;  %2236 = vperm.xlu1 %3909, %v2222_v2  }
 0x3d6   :  { %1693 = vst.msk [vmem:[#allocation6 + $0x108] sm:$0xff] %vm1587_vm15, %v5116_v32 }
 0x3d7   :  { %2231 = vperm.xlu0 %3910, %v2221_v8  }
 0x3d9   :  { %v5120_v35 = vpop.permute.xlu0 %1730  ;;  %v5122_v23 = vpop.permute.xlu1 %1675  ;;  %2241 = vperm.xlu1 %3909, %v2223_v63   ;;  %v2157_v48 = vld [vmem:[#allocation6 + $0x88] sm:$0xff] }
 0x3dd   :  { %v5124_v29 = vpop.permute.xlu0 %1802  ;;  %v5126_v41 = vpop.permute.xlu1 %1953 }
 0x3e1   :  { %v5131_v62 = vpop.permute.xlu0 %1874  ;;  %v5133_v37 = vpop.permute.xlu1 %2016 }
 0x3e5   :  { %v5141_v10 = vpop.permute.xlu0 %1947  ;;  %v5143_v44 = vpop.permute.xlu1 %2022 }
 0x3e9   :  { %v1618_v46 = vpop.permute.xlu0 %1617  ;;  %v5148_v22 = vpop.permute.xlu1 %1744 }
 0x3ea   :  { %1642 = vst.msk [vmem:[#allocation6 + $0xa8] sm:$0xff] %vm1587_vm15, %v1618_v46  ;;  %v1755_v18 = vsel %vm810_vm8, %v5148_v22, %v1747_v51  ;;  %v1628_v17 = vsel %vm486_vm4, %v5005_v36, %v1618_v46 }
 0x3eb   :  { %1771 = vst.msk [vmem:[#allocation6 + $0x1e8] sm:$0xff] %vm1587_vm15, %v1755_v18  ;;  %v3695_v40 = vpack.c.bf16 %v1628_v17, %v1627_v4 }
 0x3ed   :  { %v1670_v45 = vpop.permute.xlu0 %1669  ;;  %v5154_v52 = vpop.permute.xlu1 %2014 }
 0x3ee   :  { %1695 = vst.msk [vmem:[#allocation6 + $0x128] sm:$0xff] %vm1587_vm15, %v1670_v45 }
 0x3f1   :  { %v1622_v5 = vpop.permute.xlu0 %1621  ;;  %v2159_v38 = vld [vmem:[#allocation6 + $0xa8] sm:$0xff]  ;;  %v5159_v19 = vpop.permute.xlu1 %1816 }
 0x3f2   :  { %1644 = vst.msk [vmem:[#allocation6 + $0xc8] sm:$0xff] %vm1587_vm15, %v1622_v5  ;;  %v3693_v31 = vpack.c.bf16 %v2159_v38, %v2157_v48  ;;  %v1827_v51 = vsel %vm992_vm11, %v5159_v19, %v5075_v13  ;;  %v1629_v46 = vsel %vm486_vm4, %v5057_v39, %v1622_v5  ;;  %v2165_v48 = vld [vmem:[#allocation6 + $0x108] sm:$0xff]  ;;  %v1681_v38 = vsel %vm1679_vm1, %v5011_v24, %v1670_v45 }
 0x3f3   :  { %1843 = vst.msk [vmem:[#allocation6 + $0x268] sm:$0xff] %vm1587_vm15, %v1827_v51  ;;  %v1680_v51 = vsel %vm1679_vm1, %v4951_v12, %v5116_v32 }
 0x3f4   :  { %3694 = vmatprep.subr.bf16.mxu1 %v3693_v31  ;;  %v3703_v5 = vpack.c.bf16 %v1681_v38, %v1680_v51  ;;  %v2185_v51 = vld [vmem:[#allocation6 + $0x248] sm:$0xff] }
 0x3f5   :  { %v1674_v36 = vpop.permute.xlu0 %1673  ;;  %3696 = vmatpush1.bf16.msra.mxu1 %v3695_v40  ;;  %v5168_v61 = vpop.permute.xlu1 %2028  ;;  %v2167_v63 = vld [vmem:[#allocation6 + $0x128] sm:$0xff] }
 0x3f6   :  { %1697 = vst.msk [vmem:[#allocation6 + $0x148] sm:$0xff] %vm1587_vm15, %v1674_v36  ;;  %v3701_v4 = vpack.c.bf16 %v2167_v63, %v2165_v48  ;;  %v2177_v63 = vld [vmem:[#allocation6 + $0x1c8] sm:$0xff] }
 0x3f7   :  { %v2183_v48 = vld [vmem:[#allocation6 + $0x228] sm:$0xff] }
 0x3f9   :  { %v1743_v3 = vpop.permute.xlu0 %1742  ;;  %v5171_v0 = vpop.permute.xlu1 %1888  ;;  %v2161_v8 = vld [vmem:[#allocation6 + $0xc8] sm:$0xff] }
 0x3fa   :  { %v1900_v50 = vsel %vm1892_vm9, %v5171_v0, %v5081_v60 }
 0x3fb   :  { %1916 = vst.msk [vmem:[#allocation6 + $0x2e8] sm:$0xff] %vm1587_vm15, %v1900_v50 }
 0x3fd   :  { %v5177_v13 = vpop.permute.xlu0 %1814  ;;  %v5185_v58 = vpop.permute.xlu1 %2026  ;;  %v2169_v40 = vld [vmem:[#allocation6 + $0x148] sm:$0xff] }
 0x401   :  { %v5179_v16 = vpop.permute.xlu0 %1886 }
 0x405   :  { %v1626_v28 = vpop.permute.xlu0 %1625 }
 0x406   :  { %1646 = vst.msk [vmem:[#allocation6 + $0xe8] sm:$0xff] %vm1587_vm15, %v1626_v28  ;;  %v1630_v14 = vsel %vm486_vm4, %v1624_v7, %v1626_v28  ;;  %v5193_v7 = vpop.permute.xlu1 %1961  ;;  %v2173_v28 = vld [vmem:[#allocation6 + $0x188] sm:$0xff] }
 0x407   :  { %v3699_v17 = vpack.c.bf16 %v1630_v14, %v1629_v46  ;;  %v1750_v14 = vsel %vm810_vm8, %v5120_v35, %v5017_v25  ;;  %v1754_v25 = vsel %vm810_vm8, %v1743_v3, %v5148_v22  ;;  %v1822_v22 = vsel %vm992_vm11, %v5124_v29, %v5026_v27  ;;  %v2189_v29 = vld [vmem:[#allocation6 + $0x288] sm:$0xff] }
 0x409   :  { %v1958_v43 = vpop.permute.xlu0 %1957 }
 0x40a   :  { %v1971_v55 = vsel %vm1965_vm0, %v5111_v15, %v1958_v43  ;;  %v1682_v43 = vsel %vm1679_vm1, %v5064_v20, %v1674_v36 }
 0x40b   :  { %1987 = vst.msk [vmem:[#allocation6 + $0x348] sm:$0xff] %vm1587_vm15, %v1971_v55  ;;  %v2175_v55 = vld [vmem:[#allocation6 + $0x1a8] sm:$0xff] }
 0x40d   :  { %v1678_v60 = vpop.permute.xlu0 %1677  ;;  %v2163_v2 = vld [vmem:[#allocation6 + $0xe8] sm:$0xff] }
 0x40e   :  { %1699 = vst.msk [vmem:[#allocation6 + $0x168] sm:$0xff] %vm1587_vm15, %v1678_v60  ;;  %v3697_v18 = vpack.c.bf16 %v2163_v2, %v2161_v8  ;;  %v1683_v24 = vsel %vm1679_vm1, %v5122_v23, %v1678_v60  ;;  %v3709_v8 = vpack.c.bf16 %v2175_v55, %v2173_v28  ;;  %v2179_v60 = vld [vmem:[#allocation6 + $0x1e8] sm:$0xff]  ;;  %v1748_v2 = vsel %vm810_vm8, %v4957_v26, %v4981_v57 }
 0x40f   :  { %v3707_v32 = vpack.c.bf16 %v1683_v24, %v1682_v43  ;;  %v3711_v36 = vpack.c.bf16 %v1750_v14, %v1748_v2  ;;  %v3713_v35 = vpack.c.bf16 %v2179_v60, %v2177_v63  ;;  %v1824_v24 = vsel %vm992_vm11, %v5077_v6, %v5097_v34  ;;  %v2195_v43 = vld [vmem:[#allocation6 + $0x2e8] sm:$0xff] }
 0x410   :  { %3698 = vmatprep.subr.bf16.mxu1 %v3697_v18  ;;  %v2181_v18 = vld [vmem:[#allocation6 + $0x208] sm:$0xff]  ;;  %v1893_v6 = vsel %vm1892_vm9, %v4969_v49, %v4993_v30  ;;  %v1968_v60 = vsel %vm1965_vm0, %v5141_v10, %v5047_v59 }
 0x411   :  { %v1964_v31 = vpop.permute.xlu0 %1963  ;;  %3700 = vmatpush1.bf16.msra.mxu1 %v3699_v17  ;;  %v1752_v17 = vsel %vm810_vm8, %v5071_v21, %v5090_v47  ;;  %v3717_v3 = vpack.c.bf16 %v2183_v48, %v2181_v18  ;;  %v1820_v21 = vsel %vm992_vm11, %v4963_v53, %v4987_v42  ;;  %v5232_v47 = vpop.permute.xlu1 %2089  ;;  %v2197_v14 = vld [vmem:[#allocation6 + $0x308] sm:$0xff] }
 0x412   :  { %v1973_v39 = vsel %vm1965_vm0, %v5193_v7, %v1964_v31  ;;  %3702 = vmatprep.subr.bf16.mxu1 %v3701_v4  ;;  %v3715_v57 = vpack.c.bf16 %v1754_v25, %v1752_v17  ;;  %v2187_v4 = vld [vmem:[#allocation6 + $0x268] sm:$0xff]  ;;  %v3719_v31 = vpack.c.bf16 %v1822_v22, %v1820_v21 }
 0x413   :  { %1989 = vst.msk [vmem:[#allocation6 + $0x368] sm:$0xff] %vm1587_vm15, %v1973_v39  ;;  %v1826_v39 = vsel %vm992_vm11, %v5177_v13, %v5159_v19  ;;  %v1895_v19 = vsel %vm1892_vm9, %v5131_v62, %v5035_v54  ;;  %v1899_v54 = vsel %vm1892_vm9, %v5179_v16, %v5171_v0  ;;  %v1966_v16 = vsel %vm1965_vm0, %v4975_v11, %v4999_v33 }
 0x414   :  { %v3723_v42 = vpack.c.bf16 %v1826_v39, %v1824_v24  ;;  %v1970_v11 = vsel %vm1965_vm0, %v5126_v41, %v5111_v15 }
 0x415   :  { %v5203_v45 = vpop.permute.xlu0 %1959  ;;  %3704 = vmatpush1.bf16.msra.mxu1 %v3703_v5  ;;  %v2171_v50 = vld [vmem:[#allocation6 + $0x168] sm:$0xff]  ;;  %v3721_v5 = vpack.c.bf16 %v2187_v4, %v2185_v51 }
 0x416   :  { %v3705_v12 = vpack.c.bf16 %v2171_v50, %v2169_v40  ;;  %v2191_v40 = vld [vmem:[#allocation6 + $0x2a8] sm:$0xff]  ;;  %v2035_v50 = vpop.permute.xlu1 %2034  ;;  %v1972_v59 = vsel %vm1965_vm0, %v5203_v45, %v5193_v7 }
 0x417   :  { %v3725_v13 = vpack.c.bf16 %v2191_v40, %v2189_v29  ;;  %v2140_v29 = vld [vmem:[%s5694_s2 + $0x80] sm:$0xff] }
 0x418   :  { %3706 = vmatprep.subr.bf16.mxu1 %v3705_v12  ;;  %v3727_v12 = vpack.c.bf16 %v1895_v19, %v1893_v6 }
 0x419   :  { %v2019_v23 = vpop.permute.xlu0 %2018  ;;  %3708 = vmatpush1.bf16.msra.mxu1 %v3707_v32  ;;  %v2193_v32 = vld [vmem:[#allocation6 + $0x2c8] sm:$0xff] }
 0x41a   :  { %v2040_v20 = vsel %vm2038_vm2, %v5133_v37, %v2019_v23  ;;  %3710 = vmatprep.subr.bf16.mxu1 %v3709_v8  ;;  %v3729_v62 = vpack.c.bf16 %v2195_v43, %v2193_v32  ;;  %v1897_v8 = vsel %vm1892_vm9, %v5083_v9, %v5104_v56  ;;  %v2096_v49 = vpop.permute.xlu1 %2095  ;;  %v2199_v23 = vld [vmem:[#allocation6 + $0x328] sm:$0xff]  ;;  %v3735_v56 = vpack.c.bf16 %v1968_v60, %v1966_v16  ;;  %v2146_v43 = vld [vmem:[%s5694_s2 + $0xb0] sm:$0xff] }
 0x41b   :  { %2056 = vst.msk [vmem:[#allocation6 + $0x388] sm:$0xff] %vm1587_vm15, %v2040_v20  ;;  %v3731_v30 = vpack.c.bf16 %v1899_v54, %v1897_v8  ;;  %v3733_v2 = vpack.c.bf16 %v2199_v23, %v2197_v14  ;;  %v2203_v0 = vld [vmem:[#allocation6 + $0x368] sm:$0xff]  ;;  %v2138_v54 = vld [vmem:[%s5694_s2 + $0x70] sm:$0xff]  ;;  %v2147_v14 = vld [vmem:[%s5694_s2 + $0xb8] sm:$0xff] }
 0x41c   :  { %v2145_v32 = vld [vmem:[%s5694_s2 + $0xa8] sm:$0xff] }
 0x41d   :  { %v2025_v46 = vpop.permute.xlu0 %2024  ;;  %3712 = vmatpush1.bf16.msra.mxu1 %v3711_v36  ;;  %v2201_v36 = vld [vmem:[#allocation6 + $0x348] sm:$0xff] }
 0x41e   :  { %v2042_v26 = vsel %vm2038_vm2, %v5143_v44, %v2025_v46  ;;  %3714 = vmatprep.subr.bf16.mxu1 %v3713_v35  ;;  %v3737_v10 = vpack.c.bf16 %v2203_v0, %v2201_v36  ;;  %v2088_v63 = vpop.permute.xlu1 %2087  ;;  %v3739_v46 = vpack.c.bf16 %v1972_v59, %v1970_v11 }
 0x41f   :  { %2058 = vst.msk [vmem:[#allocation6 + $0x3a8] sm:$0xff] %vm1587_vm15, %v2042_v26 }
 0x421   :  { %v5227_v38 = vpop.permute.xlu0 %2020  ;;  %3716 = vmatpush1.bf16.msra.mxu1 %v3715_v57  ;;  %v2039_v57 = vsel %vm2038_vm2, %v5154_v52, %v5133_v37 }
 0x422   :  { %3718 = vmatprep.subr.bf16.mxu1 %v3717_v3  ;;  %v2205_v18 = vld [vmem:[#allocation6 + $0x388] sm:$0xff]  ;;  %v2041_v7 = vsel %vm2038_vm2, %v5227_v38, %v5143_v44  ;;  %v2102_v15 = vpop.permute.xlu1 %2101  ;;  %v2043_v44 = vsel %vm2038_vm2, %v5185_v58, %v5168_v61 }
 0x423   :  { %v3743_v41 = vpack.c.bf16 %v2041_v7, %v2039_v57 }
 0x425   :  { %v2031_v27 = vpop.permute.xlu0 %2030  ;;  %3720 = vmatpush1.bf16.msra.mxu1 %v3719_v31 }
 0x426   :  { %v2044_v53 = vsel %vm2038_vm2, %v5168_v61, %v2031_v27  ;;  %3722 = vmatprep.subr.bf16.mxu1 %v3721_v5  ;;  %v2207_v35 = vld [vmem:[#allocation6 + $0x3a8] sm:$0xff]  ;;  %v2108_v39 = vpop.permute.xlu1 %2107  ;;  %v2136_v27 = vld [vmem:[%s5694_s2 + $0x60] sm:$0xff]  ;;  %v2112_v61 = vsel %vm2111_vm3, %v2088_v63, %v5232_v47 }
 0x427   :  { %2060 = vst.msk [vmem:[#allocation6 + $0x3c8] sm:$0xff] %vm1587_vm15, %v2044_v53  ;;  %v3741_v45 = vpack.c.bf16 %v2207_v35, %v2205_v18  ;;  %v2139_v53 = vld [vmem:[%s5694_s2 + $0x78] sm:$0xff] }
 0x429   :  { %v2037_v28 = vpop.permute.xlu0 %2036  ;;  %3724 = vmatpush1.bf16.msra.mxu1 %v3723_v42 }
 0x42a   :  { %v2046_v34 = vsel %vm2038_vm2, %v2035_v50, %v2037_v28  ;;  %3726 = vmatprep.subr.bf16.mxu1 %v3725_v13  ;;  %v2100_v40 = vpop.permute.xlu1 %2099  ;;  %v2142_v13 = vld [vmem:[%s5694_s2 + $0x90] sm:$0xff] }
 0x42b   :  { %2062 = vst.msk [vmem:[#allocation6 + $0x3e8] sm:$0xff] %vm1587_vm15, %v2046_v34  ;;  %v2116_v6 = vsel %vm2111_vm3, %v2100_v40, %v2102_v15  ;;  %v2900_v40 = vld [vmem:[%s5694_s2 + $0xc8] sm:$0xff] }
 0x42c   :  { %3083 = vmatprep.mubr.f32.mxu0 %v2900_v40 }
 0x42d   :  { %v2033_v55 = vpop.permute.xlu0 %2032  ;;  %3728 = vmatpush1.bf16.msra.mxu1 %v3727_v12 }
 0x42e   :  { %3730 = vmatprep.subr.bf16.mxu1 %v3729_v62  ;;  %v2209_v48 = vld [vmem:[#allocation6 + $0x3c8] sm:$0xff]  ;;  %v2045_v22 = vsel %vm2038_vm2, %v2033_v55, %v2035_v50  ;;  %v2144_v55 = vld [vmem:[%s5694_s2 + $0xa0] sm:$0xff] }
 0x42f   :  { %v3747_v37 = vpack.c.bf16 %v2045_v22, %v2043_v44  ;;  %v2141_v62 = vld [vmem:[%s5694_s2 + $0x88] sm:$0xff] }
 0x431   :  { %v2092_v20 = vpop.permute.xlu0 %2091  ;;  %3732 = vmatpush1.bf16.msra.mxu1 %v3731_v30 }
 0x432   :  { %v2113_v9 = vsel %vm2111_vm3, %v5232_v47, %v2092_v20  ;;  %3734 = vmatprep.subr.bf16.mxu1 %v3733_v2  ;;  %v2211_v26 = vld [vmem:[#allocation6 + $0x3e8] sm:$0xff]  ;;  %v2143_v47 = vld [vmem:[%s5694_s2 + $0x98] sm:$0xff] }
 0x433   :  { %2129 = vst.msk [vmem:[#allocation6 + $0x408] sm:$0xff] %vm1587_vm15, %v2113_v9  ;;  %v3745_v3 = vpack.c.bf16 %v2211_v26, %v2209_v48 }
 0x435   :  { %v2098_v25 = vpop.permute.xlu0 %2097  ;;  %3736 = vmatpush1.bf16.msra.mxu1 %v3735_v56 }
 0x436   :  { %v2115_v33 = vsel %vm2111_vm3, %v2096_v49, %v2098_v25  ;;  %3738 = vmatprep.subr.bf16.mxu1 %v3737_v10 }
 0x437   :  { %2131 = vst.msk [vmem:[#allocation6 + $0x428] sm:$0xff] %vm1587_vm15, %v2115_v33 }
 0x439   :  { %v2094_v17 = vpop.permute.xlu0 %2093  ;;  %3740 = vmatpush1.bf16.msra.mxu1 %v3739_v46 }
 0x43a   :  { %3742 = vmatprep.subr.bf16.mxu1 %v3741_v45  ;;  %v2213_v21 = vld [vmem:[#allocation6 + $0x408] sm:$0xff]  ;;  %v2114_v51 = vsel %vm2111_vm3, %v2094_v17, %v2096_v49 }
 0x43b   :  { %v3751_v24 = vpack.c.bf16 %v2114_v51, %v2112_v61 }
 0x43d   :  { %v2104_v4 = vpop.permute.xlu0 %2103  ;;  %3744 = vmatpush1.bf16.msra.mxu1 %v3743_v41 }
 0x43e   :  { %v2117_v38 = vsel %vm2111_vm3, %v2102_v15, %v2104_v4  ;;  %3746 = vmatprep.subr.bf16.mxu1 %v3745_v3  ;;  %v2215_v31 = vld [vmem:[#allocation6 + $0x428] sm:$0xff] }
 0x43f   :  { %2133 = vst.msk [vmem:[#allocation6 + $0x448] sm:$0xff] %vm1587_vm15, %v2117_v38  ;;  %v3749_v52 = vpack.c.bf16 %v2215_v31, %v2213_v21 }
 0x441   :  { %v2110_v5 = vpop.permute.xlu0 %2109  ;;  %3748 = vmatpush1.bf16.msra.mxu1 %v3747_v37 }
 0x442   :  { %v2119_v58 = vsel %vm2111_vm3, %v2108_v39, %v2110_v5  ;;  %3750 = vmatprep.subr.bf16.mxu1 %v3749_v52 }
 0x443   :  { %2135 = vst.msk [vmem:[#allocation6 + $0x468] sm:$0xff] %vm1587_vm15, %v2119_v58 }
 0x444   :  { %2321 = vmatmul.mubr.f32.vlgmr.msra.gmra.mrb[28].mxu1 %v2136_v27 }
 0x445   :  { %3752 = vmatpush1.bf16.msra.mxu1 %v3751_v24  ;;  %2326 = vmatprep.mubr.f32.mxu1 %v2140_v29  ;;  %v2106_v42 = vpop.permute.xlu0 %2105 }
 0x446   :  { %v2118_v19 = vsel %vm2111_vm3, %v2106_v42, %v2108_v39  ;;  %v2217_v50 = vld [vmem:[#allocation6 + $0x448] sm:$0xff] }
 0x447   :  { %v3755_v12 = vpack.c.bf16 %v2118_v19, %v2116_v6 }
 0x448   :  { %2327 = vmatmul.mubr.f32.gmra.mrb[30].mxu1 %v2139_v53 }
 0x449   :  { %2332 = vmatprep.mubr.f32.mxu1 %v2143_v47 }
 0x44a   :  { %v2219_v28 = vld [vmem:[#allocation6 + $0x468] sm:$0xff] }
 0x44b   :  { %v3753_v34 = vpack.c.bf16 %v2219_v28, %v2217_v50 }
 0x44c   :  { %2333 = vmatmul.mubr.f32.gmra.mrb[32].mxu1 %v2142_v13 }
 0x44d   :  { %3754 = vmatprep.subr.bf16.mxu1 %v3753_v34  ;;  %2338 = vmatprep.mubr.f32.mxu1 %v2146_v43 }
 0x44e   :  { %3756 = vmatpush1.bf16.msra.mxu1 %v3755_v12 }
 0x450   :  { %2339 = vmatmul.mubr.f32.gmra.mrb[34].mxu1 %v2145_v32  ;;  %v2227_v8 = vpop.permute.xlu1 %2226 }
 0x451   :  { %2409 = vmatprep.mubr.f32.mxu1 %v5711_v1 }
 0x454   :  { %3458 = vmatmul.mubr.msk.f32.vlgmr.msra.gmra.mrb[28].mxu1 %vm1169_vm12, %v2138_v54  ;;  %v2237_v59 = vpop.permute.xlu1 %2236 }
 0x455   :  { %2415 = vmatprep.mubr.f32.mxu1 %v5711_v1 }
 0x456   :  { %v2232_v2 = vpop.permute.xlu0 %2231 }
 0x458   :  { %3459 = vmatmul.mubr.msk.f32.gmra.mrb[30].mxu1 %vm1169_vm12, %v2141_v62  ;;  %v2242_v26 = vpop.permute.xlu1 %2241 }
 0x459   :  { %2421 = vmatprep.mubr.f32.mxu1 %v5711_v1 }
 0x45c   :  { %3460 = vmatmul.mubr.msk.f32.gmra.mrb[32].mxu1 %vm1169_vm12, %v2144_v55 }
 0x45d   :  { %2427 = vmatprep.mubr.f32.mxu1 %v5711_v1 }
 0x460   :  { %3461 = vmatmul.mubr.msk.f32.gmra.mrb[34].mxu1 %vm1169_vm12, %v2147_v14 }
 0x527   :  { %v2411_v49 = vpop.f32.mrb[28].mxu1 }
 0x528   :  { %v3843_v30 = vadd.f32 %v2411_v49, %v2227_v8  ;;  %v2413_v23 = vpop.f32.mrb[29].mxu1 }
 0x529   :  { %v3844_v60 = vadd.f32 %v2413_v23, %v2227_v8 }
 0x52a   :  { %vm2434_vm5 = vcmp.ge.f32.partialorder %v3843_v30, 0.0  ;;  %v2442_v20 = vmul.f32 0.01, %v3843_v30 }
 0x52b   :  { %vm2435_vm6 = vcmp.ge.f32.partialorder %v3844_v60, 0.0  ;;  %v2443_v0 = vmul.f32 0.01, %v3844_v60  ;;  %v2417_v16 = vpop.f32.mrb[30].mxu1 }
 0x52c   :  { %v5334_v9 = vsel %vm2434_vm5, %v3843_v30, %v2442_v20  ;;  %v3845_v56 = vadd.f32 %v2417_v16, %v2232_v2  ;;  %v2419_v36 = vpop.f32.mrb[31].mxu1  ;;  %vm2475_vm5 = vcmask 719872   ;;  %v2984_v16 = vld [vmem:[%s5692_s3 + $0x8] sm:$0xff] }
 0x52d   :  { %v2451_v10 = vsel %vm2435_vm6, %v3844_v60, %v2443_v0  ;;  %v3846_v63 = vadd.f32 %v2419_v36, %v2232_v2  ;;  %2499 = vrot.lane.b32.xlu0 %v5334_v9, %s3918_s1  ;;  %v2983_v0 = vld [vmem:[%s5692_s3] sm:$0xff] }
 0x52e   :  { %2459 = vst.msk [vmem:[#allocation4 + $0x8] sm:$0xff] %vm1587_vm15, %v2451_v10  ;;  %vm2436_vm7 = vcmp.ge.f32.partialorder %v3845_v56, 0.0  ;;  %v2444_v25 = vmul.f32 0.01, %v3845_v56  ;;  %v2986_v10 = vld [vmem:[%s5692_s3 + $0x18] sm:$0xff] }
 0x52f   :  { %vm2437_vm10 = vcmp.ge.f32.partialorder %v3846_v63, 0.0  ;;  %v2445_v35 = vmul.f32 0.01, %v3846_v63  ;;  %v2423_v11 = vpop.f32.mrb[32].mxu1 }
 0x530   :  { %v5339_v33 = vsel %vm2436_vm7, %v3845_v56, %v2444_v25  ;;  %v3847_v46 = vadd.f32 %v2423_v11, %v2237_v59  ;;  %v2425_v18 = vpop.f32.mrb[33].mxu1  ;;  %v3932_v56 = vmov 3  }
 0x531   :  { %v2453_v7 = vsel %vm2437_vm10, %v3846_v63, %v2445_v35  ;;  %v3848_v45 = vadd.f32 %v2425_v18, %v2237_v59  ;;  %2551 = vrot.lane.b32.xlu0 %v5334_v9, %s3926_s29  ;;  %v3759_v58 = vpack.c.bf16 %v5339_v33, %v5334_v9  ;;  %3912 = vset.pattern.permute.xlu1 %v3932_v56  ;;  %v2985_v59 = vld [vmem:[%s5692_s3 + $0x10] sm:$0xff]  ;;  %vm3935_vm10 = vmmov 0  }
 0x532   :  { %2461 = vst.msk [vmem:[#allocation4 + $0x28] sm:$0xff] %vm1587_vm15, %v2453_v7  ;;  %vm2438_vm13 = vcmp.ge.f32.partialorder %v3847_v46, 0.0  ;;  %v2446_v17 = vmul.f32 0.01, %v3847_v46  ;;  %3911 = vset.pattern.permute.xlu0 %v3932_v56  ;;  %3546 = vmatprep.mubr.msk.f32.mxu1 %vm3935_vm10, %v5711_v1 }
 0x533   :  { %vm2439_vm14 = vcmp.ge.f32.partialorder %v3848_v45, 0.0  ;;  %v2447_v57 = vmul.f32 0.01, %v3848_v45  ;;  %v2429_v15 = vpop.f32.mrb[34].mxu1 }
 0x534   :  { %v5344_v41 = vsel %vm2438_vm13, %v3847_v46, %v2446_v17  ;;  %v3849_v48 = vadd.f32 %v2429_v15, %v2242_v26  ;;  %v2431_v22 = vpop.f32.mrb[35].mxu1  ;;  %vm3346_vm13 = vcmask 15368  }
 0x535   :  { %v5346_v3 = vld [vmem:[#allocation4 + $0x8] sm:$0xff]  ;;  %v2455_v4 = vsel %vm2439_vm14, %v3848_v45, %v2447_v57  ;;  %v3850_v44 = vadd.f32 %v2431_v22, %v2242_v26  ;;  %2603 = vrot.lane.b32.xlu0 %v5334_v9, %s3922_s18  ;;  %vm3436_vm14 = vcmask 9216  }
 0x536   :  { %2463 = vst.msk [vmem:[#allocation4 + $0x48] sm:$0xff] %vm1587_vm15, %v2455_v4  ;;  %vm2440_vm6 = vcmp.ge.f32.partialorder %v3849_v48, 0.0  ;;  %v2448_v38 = vmul.f32 0.01, %v3849_v48  ;;  %2501 = vrot.lane.b32.xlu1 %v5346_v3, %s3918_s1 }
 0x537   :  { %2476 = vst.msk [vmem:[#allocation6 + $0x8] sm:$0xff] %vm2475_vm5, %v5346_v3  ;;  %vm2441_vm7 = vcmp.ge.f32.partialorder %v3850_v44, 0.0  ;;  %v2449_v21 = vmul.f32 0.01, %v3850_v44 }
 0x538   :  { %v5355_v31 = vsel %vm2440_vm6, %v3849_v48, %v2448_v38 }
 0x539   :  { %v5357_v37 = vld [vmem:[#allocation4 + $0x28] sm:$0xff]  ;;  %v2457_v52 = vsel %vm2441_vm7, %v3850_v44, %v2449_v21  ;;  %2655 = vrot.lane.b32.xlu0 %v5334_v9, %s3924_s20  ;;  %v3763_v42 = vpack.c.bf16 %v5355_v31, %v5344_v41 }
 0x53a   :  { %2465 = vst.msk [vmem:[#allocation4 + $0x68] sm:$0xff] %vm1587_vm15, %v2457_v52  ;;  %2553 = vrot.lane.b32.xlu1 %v5346_v3, %s3926_s29 }
 0x53b   :  { %2478 = vst.msk [vmem:[#allocation6 + $0x28] sm:$0xff] %vm2475_vm5, %v5357_v37 }
 0x53d   :  { %v5366_v51 = vld [vmem:[#allocation4 + $0x48] sm:$0xff]  ;;  %2707 = vrot.lane.b32.xlu0 %v5334_v9, %s3927_s30 }
 0x53e   :  { %2605 = vrot.lane.b32.xlu1 %v5346_v3, %s3922_s18  ;;  %2480 = vst.msk [vmem:[#allocation6 + $0x48] sm:$0xff] %vm2475_vm5, %v5366_v51  ;;  %v2912_v5 = vld [vmem:[#allocation6 + $0x8] sm:$0xff] }
 0x541   :  { %v5374_v39 = vld [vmem:[#allocation4 + $0x68] sm:$0xff]  ;;  %2503 = vrot.lane.b32.xlu0 %v5339_v33, %s3918_s1 }
 0x542   :  { %v2914_v27 = vld [vmem:[#allocation6 + $0x28] sm:$0xff]  ;;  %2657 = vrot.lane.b32.xlu1 %v5346_v3, %s3924_s20  ;;  %2482 = vst.msk [vmem:[#allocation6 + $0x68] sm:$0xff] %vm2475_vm5, %v5374_v39 }
 0x543   :  { %v3757_v61 = vpack.c.bf16 %v2914_v27, %v2912_v5 }
 0x545   :  { %3758 = vmatprep.subr.bf16.mxu0 %v3757_v61  ;;  %2555 = vrot.lane.b32.xlu0 %v5339_v33, %s3926_s29  ;;  %v2916_v29 = vld [vmem:[#allocation6 + $0x48] sm:$0xff] }
 0x546   :  { %3760 = vmatpush1.bf16.msra.mxu0 %v3759_v58  ;;  %2709 = vrot.lane.b32.xlu1 %v5346_v3, %s3927_s30 }
 0x549   :  { %v2918_v24 = vld [vmem:[#allocation6 + $0x68] sm:$0xff]  ;;  %2607 = vrot.lane.b32.xlu0 %v5339_v33, %s3922_s18 }
 0x54a   :  { %2505 = vrot.lane.b32.xlu1 %v5357_v37, %s3918_s1  ;;  %v3761_v53 = vpack.c.bf16 %v2918_v24, %v2916_v29 }
 0x54c   :  { %3762 = vmatprep.subr.bf16.mxu0 %v3761_v53 }
 0x54d   :  { %3764 = vmatpush1.bf16.msra.mxu0 %v3763_v42  ;;  %2659 = vrot.lane.b32.xlu0 %v5339_v33, %s3924_s20 }
 0x54e   :  { %2557 = vrot.lane.b32.xlu1 %v5357_v37, %s3926_s29 }
 0x551   :  { %2711 = vrot.lane.b32.xlu0 %v5339_v33, %s3927_s30 }
 0x552   :  { %2609 = vrot.lane.b32.xlu1 %v5357_v37, %s3922_s18 }
 0x555   :  { %2507 = vrot.lane.b32.xlu0 %v5344_v41, %s3918_s1 }
 0x556   :  { %2661 = vrot.lane.b32.xlu1 %v5357_v37, %s3924_s20 }
 0x559   :  { %2559 = vrot.lane.b32.xlu0 %v5344_v41, %s3926_s29 }
 0x55a   :  { %2713 = vrot.lane.b32.xlu1 %v5357_v37, %s3927_s30 }
 0x55d   :  { %2611 = vrot.lane.b32.xlu0 %v5344_v41, %s3922_s18 }
 0x55e   :  { %2509 = vrot.lane.b32.xlu1 %v5366_v51, %s3918_s1 }
 0x561   :  { %2663 = vrot.lane.b32.xlu0 %v5344_v41, %s3924_s20 }
 0x562   :  { %2561 = vrot.lane.b32.xlu1 %v5366_v51, %s3926_s29 }
 0x565   :  { %2715 = vrot.lane.b32.xlu0 %v5344_v41, %s3927_s30 }
 0x566   :  { %2613 = vrot.lane.b32.xlu1 %v5366_v51, %s3922_s18 }
 0x569   :  { %2511 = vrot.lane.b32.xlu0 %v5355_v31, %s3918_s1 }
 0x56a   :  { %2665 = vrot.lane.b32.xlu1 %v5366_v51, %s3924_s20 }
 0x56d   :  { %2759 = vrot.lane.b32.xlu0 %v5334_v9, %s3928_s6 }
 0x56e   :  { %2717 = vrot.lane.b32.xlu1 %v5366_v51, %s3927_s30 }
 0x571   :  { %2563 = vrot.lane.b32.xlu0 %v5355_v31, %s3926_s29 }
 0x572   :  { %2513 = vrot.lane.b32.xlu1 %v5374_v39, %s3918_s1 }
 0x575   :  { %2615 = vrot.lane.b32.xlu0 %v5355_v31, %s3922_s18 }
 0x576   :  { %2761 = vrot.lane.b32.xlu1 %v5346_v3, %s3928_s6 }
 0x579   :  { %2667 = vrot.lane.b32.xlu0 %v5355_v31, %s3924_s20 }
 0x57a   :  { %2565 = vrot.lane.b32.xlu1 %v5374_v39, %s3926_s29 }
 0x57d   :  { %2719 = vrot.lane.b32.xlu0 %v5355_v31, %s3927_s30 }
 0x57e   :  { %2765 = vrot.lane.b32.xlu1 %v5357_v37, %s3928_s6 }
 0x581   :  { %2763 = vrot.lane.b32.xlu0 %v5339_v33, %s3928_s6 }
 0x582   :  { %2617 = vrot.lane.b32.xlu1 %v5374_v39, %s3922_s18 }
 0x585   :  { %2767 = vrot.lane.b32.xlu0 %v5344_v41, %s3928_s6 }
 0x586   :  { %2769 = vrot.lane.b32.xlu1 %v5366_v51, %s3928_s6 }
 0x589   :  { %2771 = vrot.lane.b32.xlu0 %v5355_v31, %s3928_s6 }
 0x58a   :  { %2669 = vrot.lane.b32.xlu1 %v5374_v39, %s3924_s20 }
 0x58d   :  { %2811 = vrot.lane.b32.xlu0 %v5334_v9, %s3929_s7 }
 0x58e   :  { %2813 = vrot.lane.b32.xlu1 %v5346_v3, %s3929_s7 }
 0x591   :  { %2815 = vrot.lane.b32.xlu0 %v5339_v33, %s3929_s7 }
 0x592   :  { %2721 = vrot.lane.b32.xlu1 %v5374_v39, %s3927_s30 }
 0x595   :  { %2819 = vrot.lane.b32.xlu0 %v5344_v41, %s3929_s7 }
 0x596   :  { %2817 = vrot.lane.b32.xlu1 %v5357_v37, %s3929_s7 }
 0x599   :  { %2823 = vrot.lane.b32.xlu0 %v5355_v31, %s3929_s7 }
 0x59a   :  { %2773 = vrot.lane.b32.xlu1 %v5374_v39, %s3928_s6 }
 0x59d   :  { %2863 = vrot.lane.b32.xlu0 %v5334_v9, %s3930_s8 }
 0x59e   :  { %2821 = vrot.lane.b32.xlu1 %v5366_v51, %s3929_s7 }
 0x59f   :  { %v2500_v47 = vpop.permute.xlu0 %2499 }
 0x5a1   :  { %2867 = vrot.lane.b32.xlu0 %v5339_v33, %s3930_s8 }
 0x5a2   :  { %2825 = vrot.lane.b32.xlu1 %v5374_v39, %s3929_s7 }
 0x5a3   :  { %v2552_v19 = vpop.permute.xlu0 %2551 }
 0x5a5   :  { %2871 = vrot.lane.b32.xlu0 %v5344_v41, %s3930_s8 }
 0x5a6   :  { %2865 = vrot.lane.b32.xlu1 %v5346_v3, %s3930_s8 }
 0x5a7   :  { %v2604_v13 = vpop.permute.xlu0 %2603 }
 0x5a8   :  { %v2502_v50 = vpop.permute.xlu1 %2501 }
 0x5a9   :  { %v2515_v28 = vsel %vm486_vm4, %v2500_v47, %v2502_v50  ;;  %2528 = vst.msk [vmem:[#allocation6 + $0x88] sm:$0xff] %vm2475_vm5, %v2502_v50  ;;  %2875 = vrot.lane.b32.xlu0 %v5355_v31, %s3930_s8 }
 0x5aa   :  { %2869 = vrot.lane.b32.xlu1 %v5357_v37, %s3930_s8 }
 0x5ab   :  { %v2656_v43 = vpop.permute.xlu0 %2655 }
 0x5ac   :  { %v2554_v6 = vpop.permute.xlu1 %2553 }
 0x5ad   :  { %v5496_v34 = vsel %vm1679_vm1, %v2552_v19, %v2554_v6  ;;  %2580 = vst.msk [vmem:[#allocation6 + $0x108] sm:$0xff] %vm2475_vm5, %v2554_v6  ;;  %2989 = vperm.xlu0 %3911, %v2983_v0  }
 0x5ae   :  { %2873 = vrot.lane.b32.xlu1 %v5366_v51, %s3930_s8 }
 0x5af   :  { %v2708_v12 = vpop.permute.xlu0 %2707 }
 0x5b0   :  { %v2606_v32 = vpop.permute.xlu1 %2605  ;;  %v2920_v35 = vld [vmem:[#allocation6 + $0x88] sm:$0xff] }
 0x5b1   :  { %v5502_v54 = vsel %vm810_vm8, %v2604_v13, %v2606_v32  ;;  %2632 = vst.msk [vmem:[#allocation6 + $0x188] sm:$0xff] %vm2475_vm5, %v2606_v32  ;;  %3004 = vperm.xlu0 %3911, %v2986_v10  }
 0x5b2   :  { %2877 = vrot.lane.b32.xlu1 %v5374_v39, %s3930_s8 }
 0x5b3   :  { %v2504_v62 = vpop.permute.xlu0 %2503 }
 0x5b4   :  { %v2658_v55 = vpop.permute.xlu1 %2657 }
 0x5b5   :  { %v5508_v14 = vsel %vm992_vm11, %v2656_v43, %v2658_v55  ;;  %2684 = vst.msk [vmem:[#allocation6 + $0x208] sm:$0xff] %vm2475_vm5, %v2658_v55 }
 0x5b6   :  { %2994 = vperm.xlu1 %3912, %v2984_v16  }
 0x5b7   :  { %v2556_v8 = vpop.permute.xlu0 %2555 }
 0x5b8   :  { %v2710_v49 = vpop.permute.xlu1 %2709 }
 0x5b9   :  { %v5512_v30 = vsel %vm1892_vm9, %v2708_v12, %v2710_v49  ;;  %2736 = vst.msk [vmem:[#allocation6 + $0x288] sm:$0xff] %vm2475_vm5, %v2710_v49  ;;  %v2928_v12 = vld [vmem:[#allocation6 + $0x108] sm:$0xff] }
 0x5ba   :  { %2999 = vperm.xlu1 %3912, %v2985_v59   ;;  %v2936_v59 = vld [vmem:[#allocation6 + $0x188] sm:$0xff] }
 0x5bb   :  { %v2608_v23 = vpop.permute.xlu0 %2607 }
 0x5bc   :  { %v2506_v60 = vpop.permute.xlu1 %2505 }
 0x5bd   :  { %v2516_v2 = vsel %vm486_vm4, %v2504_v62, %v2506_v60  ;;  %2530 = vst.msk [vmem:[#allocation6 + $0xa8] sm:$0xff] %vm2475_vm5, %v2506_v60 }
 0x5be   :  { %v3767_v18 = vpack.c.bf16 %v2516_v2, %v2515_v28 }
 0x5bf   :  { %v2660_v20 = vpop.permute.xlu0 %2659 }
 0x5c0   :  { %v2558_v9 = vpop.permute.xlu1 %2557 }
 0x5c1   :  { %v5524_v36 = vsel %vm1679_vm1, %v2556_v8, %v2558_v9  ;;  %2582 = vst.msk [vmem:[#allocation6 + $0x128] sm:$0xff] %vm2475_vm5, %v2558_v9 }
 0x5c2   :  { %v3775_v8 = vpack.c.bf16 %v5524_v36, %v5496_v34 }
 0x5c3   :  { %v2712_v63 = vpop.permute.xlu0 %2711 }
 0x5c4   :  { %v2610_v25 = vpop.permute.xlu1 %2609  ;;  %v2922_v11 = vld [vmem:[#allocation6 + $0xa8] sm:$0xff] }
 0x5c5   :  { %v5534_v33 = vsel %vm810_vm8, %v2608_v23, %v2610_v25  ;;  %2634 = vst.msk [vmem:[#allocation6 + $0x1a8] sm:$0xff] %vm2475_vm5, %v2610_v25  ;;  %v3765_v46 = vpack.c.bf16 %v2922_v11, %v2920_v35 }
 0x5c6   :  { %v3783_v25 = vpack.c.bf16 %v5534_v33, %v5502_v54 }
 0x5c7   :  { %3766 = vmatprep.subr.bf16.mxu0 %v3765_v46  ;;  %v2508_v7 = vpop.permute.xlu0 %2507 }
 0x5c8   :  { %v2662_v45 = vpop.permute.xlu1 %2661  ;;  %3768 = vmatpush1.bf16.msra.mxu0 %v3767_v18  ;;  %v2930_v50 = vld [vmem:[#allocation6 + $0x128] sm:$0xff] }
 0x5c9   :  { %v5538_v17 = vsel %vm992_vm11, %v2660_v20, %v2662_v45  ;;  %2686 = vst.msk [vmem:[#allocation6 + $0x228] sm:$0xff] %vm2475_vm5, %v2662_v45  ;;  %v3773_v32 = vpack.c.bf16 %v2930_v50, %v2928_v12 }
 0x5ca   :  { %v3791_v33 = vpack.c.bf16 %v5538_v17, %v5508_v14 }
 0x5cb   :  { %v2560_v26 = vpop.permute.xlu0 %2559 }
 0x5cc   :  { %v2714_v57 = vpop.permute.xlu1 %2713  ;;  %v2938_v20 = vld [vmem:[#allocation6 + $0x1a8] sm:$0xff] }
 0x5cd   :  { %v5542_v15 = vsel %vm1892_vm9, %v2712_v63, %v2714_v57  ;;  %2738 = vst.msk [vmem:[#allocation6 + $0x2a8] sm:$0xff] %vm2475_vm5, %v2714_v57  ;;  %v3781_v10 = vpack.c.bf16 %v2938_v20, %v2936_v59 }
 0x5ce   :  { %v3799_v17 = vpack.c.bf16 %v5542_v15, %v5512_v30 }
 0x5cf   :  { %v2612_v41 = vpop.permute.xlu0 %2611 }
 0x5d0   :  { %v2510_v48 = vpop.permute.xlu1 %2509 }
 0x5d1   :  { %v2517_v22 = vsel %vm486_vm4, %v2508_v7, %v2510_v48  ;;  %2532 = vst.msk [vmem:[#allocation6 + $0xc8] sm:$0xff] %vm2475_vm5, %v2510_v48  ;;  %v2946_v7 = vld [vmem:[#allocation6 + $0x228] sm:$0xff] }
 0x5d3   :  { %v2664_v3 = vpop.permute.xlu0 %2663 }
 0x5d4   :  { %v2562_v4 = vpop.permute.xlu1 %2561 }
 0x5d5   :  { %v2569_v44 = vsel %vm1679_vm1, %v2560_v26, %v2562_v4  ;;  %2584 = vst.msk [vmem:[#allocation6 + $0x148] sm:$0xff] %vm2475_vm5, %v2562_v4 }
 0x5d7   :  { %v2716_v38 = vpop.permute.xlu0 %2715 }
 0x5d8   :  { %v2614_v21 = vpop.permute.xlu1 %2613  ;;  %v2924_v19 = vld [vmem:[#allocation6 + $0xc8] sm:$0xff] }
 0x5d9   :  { %v5550_v31 = vsel %vm810_vm8, %v2612_v41, %v2614_v21  ;;  %2636 = vst.msk [vmem:[#allocation6 + $0x1c8] sm:$0xff] %vm2475_vm5, %v2614_v21  ;;  %v2944_v41 = vld [vmem:[#allocation6 + $0x208] sm:$0xff] }
 0x5da   :  { %v3789_v48 = vpack.c.bf16 %v2946_v7, %v2944_v41 }
 0x5db   :  { %v2512_v37 = vpop.permute.xlu0 %2511 }
 0x5dc   :  { %v2666_v52 = vpop.permute.xlu1 %2665  ;;  %v2932_v60 = vld [vmem:[#allocation6 + $0x148] sm:$0xff] }
 0x5dd   :  { %v5554_v51 = vsel %vm992_vm11, %v2664_v3, %v2666_v52  ;;  %2688 = vst.msk [vmem:[#allocation6 + $0x248] sm:$0xff] %vm2475_vm5, %v2666_v52 }
 0x5df   :  { %v2760_v39 = vpop.permute.xlu0 %2759 }
 0x5e0   :  { %v2718_v5 = vpop.permute.xlu1 %2717  ;;  %v2940_v46 = vld [vmem:[#allocation6 + $0x1c8] sm:$0xff] }
 0x5e1   :  { %v5558_v27 = vsel %vm1892_vm9, %v2716_v38, %v2718_v5  ;;  %2740 = vst.msk [vmem:[#allocation6 + $0x2c8] sm:$0xff] %vm2475_vm5, %v2718_v5  ;;  %v2952_v5 = vld [vmem:[#allocation6 + $0x288] sm:$0xff] }
 0x5e3   :  { %v2564_v61 = vpop.permute.xlu0 %2563 }
 0x5e4   :  { %v2514_v58 = vpop.permute.xlu1 %2513  ;;  %v2948_v38 = vld [vmem:[#allocation6 + $0x248] sm:$0xff] }
 0x5e5   :  { %v2518_v29 = vsel %vm486_vm4, %v2512_v37, %v2514_v58  ;;  %2534 = vst.msk [vmem:[#allocation6 + $0xe8] sm:$0xff] %vm2475_vm5, %v2514_v58 }
 0x5e6   :  { %v3771_v6 = vpack.c.bf16 %v2518_v29, %v2517_v22 }
 0x5e7   :  { %v2616_v24 = vpop.permute.xlu0 %2615 }
 0x5e8   :  { %v2762_v53 = vpop.permute.xlu1 %2761 }
 0x5e9   :  { %v5564_v42 = vsel %vm1965_vm0, %v2760_v39, %v2762_v53  ;;  %2788 = vst.msk [vmem:[#allocation6 + $0x308] sm:$0xff] %vm2475_vm5, %v2762_v53  ;;  %v2956_v53 = vld [vmem:[#allocation6 + $0x2c8] sm:$0xff] }
 0x5eb   :  { %v2668_v47 = vpop.permute.xlu0 %2667 }
 0x5ec   :  { %v2566_v40 = vpop.permute.xlu1 %2565  ;;  %v2926_v13 = vld [vmem:[#allocation6 + $0xe8] sm:$0xff] }
 0x5ed   :  { %v2570_v28 = vsel %vm1679_vm1, %v2564_v61, %v2566_v40  ;;  %2586 = vst.msk [vmem:[#allocation6 + $0x168] sm:$0xff] %vm2475_vm5, %v2566_v40  ;;  %v3769_v43 = vpack.c.bf16 %v2926_v13, %v2924_v19 }
 0x5ee   :  { %v3779_v56 = vpack.c.bf16 %v2570_v28, %v2569_v44 }
 0x5ef   :  { %3770 = vmatprep.subr.bf16.mxu0 %v3769_v43  ;;  %v2720_v62 = vpop.permute.xlu0 %2719 }
 0x5f0   :  { %v2766_v55 = vpop.permute.xlu1 %2765  ;;  %3772 = vmatpush1.bf16.msra.mxu0 %v3771_v6  ;;  %v2960_v28 = vld [vmem:[#allocation6 + $0x308] sm:$0xff] }
 0x5f1   :  { %2790 = vst.msk [vmem:[#allocation6 + $0x328] sm:$0xff] %vm2475_vm5, %v2766_v55  ;;  %3774 = vmatprep.subr.bf16.mxu0 %v3773_v32 }
 0x5f3   :  { %v2764_v49 = vpop.permute.xlu0 %2763 }
 0x5f4   :  { %v2618_v23 = vpop.permute.xlu1 %2617  ;;  %3776 = vmatpush1.bf16.msra.mxu0 %v3775_v8  ;;  %v2934_v2 = vld [vmem:[#allocation6 + $0x168] sm:$0xff]  ;;  %v5573_v0 = vsel %vm1965_vm0, %v2764_v49, %v2766_v55 }
 0x5f5   :  { %v2622_v16 = vsel %vm810_vm8, %v2616_v24, %v2618_v23  ;;  %2638 = vst.msk [vmem:[#allocation6 + $0x1e8] sm:$0xff] %vm2475_vm5, %v2618_v23  ;;  %v3777_v9 = vpack.c.bf16 %v2934_v2, %v2932_v60  ;;  %v3807_v15 = vpack.c.bf16 %v5573_v0, %v5564_v42 }
 0x5f6   :  { %v3787_v57 = vpack.c.bf16 %v2622_v16, %v5550_v31  ;;  %v2954_v31 = vld [vmem:[#allocation6 + $0x2a8] sm:$0xff] }
 0x5f7   :  { %3778 = vmatprep.subr.bf16.mxu0 %v3777_v9  ;;  %v2768_v63 = vpop.permute.xlu0 %2767  ;;  %v3797_v61 = vpack.c.bf16 %v2954_v31, %v2952_v5  ;;  %v2910_v5 = vld [vmem:[%s5694_s2 + $0x118] sm:$0xff] }
 0x5f8   :  { %v2770_v34 = vpop.permute.xlu1 %2769  ;;  %3780 = vmatpush1.bf16.msra.mxu0 %v3779_v56  ;;  %v2962_v40 = vld [vmem:[#allocation6 + $0x328] sm:$0xff] }
 0x5f9   :  { %2792 = vst.msk [vmem:[#allocation6 + $0x348] sm:$0xff] %vm2475_vm5, %v2770_v34  ;;  %3782 = vmatprep.subr.bf16.mxu0 %v3781_v10  ;;  %v5579_v36 = vsel %vm1965_vm0, %v2768_v63, %v2770_v34  ;;  %v3805_v43 = vpack.c.bf16 %v2962_v40, %v2960_v28 }
 0x5fb   :  { %v2772_v35 = vpop.permute.xlu0 %2771 }
 0x5fc   :  { %v2670_v11 = vpop.permute.xlu1 %2669  ;;  %3784 = vmatpush1.bf16.msra.mxu0 %v3783_v25  ;;  %v2942_v18 = vld [vmem:[#allocation6 + $0x1e8] sm:$0xff] }
 0x5fd   :  { %v2674_v45 = vsel %vm992_vm11, %v2668_v47, %v2670_v11  ;;  %2690 = vst.msk [vmem:[#allocation6 + $0x268] sm:$0xff] %vm2475_vm5, %v2670_v11  ;;  %v3785_v26 = vpack.c.bf16 %v2942_v18, %v2940_v46  ;;  %v2903_v46 = vld [vmem:[%s5694_s2 + $0xe0] sm:$0xff] }
 0x5fe   :  { %v3795_v39 = vpack.c.bf16 %v2674_v45, %v5554_v51  ;;  %v2902_v45 = vld [vmem:[%s5694_s2 + $0xd8] sm:$0xff] }
 0x5ff   :  { %3786 = vmatprep.subr.bf16.mxu0 %v3785_v26  ;;  %v2812_v22 = vpop.permute.xlu0 %2811 }
 0x600   :  { %v2814_v3 = vpop.permute.xlu1 %2813  ;;  %3788 = vmatpush1.bf16.msra.mxu0 %v3787_v57 }
 0x601   :  { %2840 = vst.msk [vmem:[#allocation6 + $0x388] sm:$0xff] %vm2475_vm5, %v2814_v3  ;;  %3790 = vmatprep.subr.bf16.mxu0 %v3789_v48  ;;  %v2827_v54 = vsel %vm2038_vm2, %v2812_v22, %v2814_v3  ;;  %v2906_v22 = vld [vmem:[%s5694_s2 + $0xf8] sm:$0xff] }
 0x603   :  { %v2816_v4 = vpop.permute.xlu0 %2815 }
 0x604   :  { %v2722_v44 = vpop.permute.xlu1 %2721  ;;  %3792 = vmatpush1.bf16.msra.mxu0 %v3791_v33  ;;  %v2950_v21 = vld [vmem:[#allocation6 + $0x268] sm:$0xff]  ;;  %v2909_v33 = vld [vmem:[%s5694_s2 + $0x110] sm:$0xff] }
 0x605   :  { %v2726_v37 = vsel %vm1892_vm9, %v2720_v62, %v2722_v44  ;;  %2742 = vst.msk [vmem:[#allocation6 + $0x2e8] sm:$0xff] %vm2475_vm5, %v2722_v44  ;;  %v3793_v52 = vpack.c.bf16 %v2950_v21, %v2948_v38  ;;  %v2964_v62 = vld [vmem:[#allocation6 + $0x348] sm:$0xff] }
 0x606   :  { %v3803_v50 = vpack.c.bf16 %v2726_v37, %v5558_v27  ;;  %v2901_v37 = vld [vmem:[%s5694_s2 + $0xd0] sm:$0xff] }
 0x607   :  { %3794 = vmatprep.subr.bf16.mxu0 %v3793_v52  ;;  %v2820_v58 = vpop.permute.xlu0 %2819  ;;  %v2904_v52 = vld [vmem:[%s5694_s2 + $0xe8] sm:$0xff] }
 0x608   :  { %v2818_v29 = vpop.permute.xlu1 %2817  ;;  %3796 = vmatpush1.bf16.msra.mxu0 %v3795_v39  ;;  %v2968_v60 = vld [vmem:[#allocation6 + $0x388] sm:$0xff]  ;;  %v2907_v39 = vld [vmem:[%s5694_s2 + $0x100] sm:$0xff] }
 0x609   :  { %2842 = vst.msk [vmem:[#allocation6 + $0x3a8] sm:$0xff] %vm2475_vm5, %v2818_v29  ;;  %3798 = vmatprep.subr.bf16.mxu0 %v3797_v61  ;;  %v2828_v14 = vsel %vm2038_vm2, %v2816_v4, %v2818_v29  ;;  %v2908_v4 = vld [vmem:[%s5694_s2 + $0x108] sm:$0xff] }
 0x60a   :  { %v3815_v0 = vpack.c.bf16 %v2828_v14, %v2827_v54  ;;  %v2905_v54 = vld [vmem:[%s5694_s2 + $0xf0] sm:$0xff] }
 0x60b   :  { %v2824_v51 = vpop.permute.xlu0 %2823 }
 0x60c   :  { %v2774_v24 = vpop.permute.xlu1 %2773  ;;  %3800 = vmatpush1.bf16.msra.mxu0 %v3799_v17  ;;  %v2958_v47 = vld [vmem:[#allocation6 + $0x2e8] sm:$0xff] }
 0x60d   :  { %v2778_v19 = vsel %vm1965_vm0, %v2772_v35, %v2774_v24  ;;  %2794 = vst.msk [vmem:[#allocation6 + $0x368] sm:$0xff] %vm2475_vm5, %v2774_v24  ;;  %v3801_v13 = vpack.c.bf16 %v2958_v47, %v2956_v53  ;;  %v2899_v35 = vld [vmem:[%s5694_s2 + $0xc0] sm:$0xff]  ;;  %s3933_s2 = smov 57  }
 0x60e   :  { %v3811_v23 = vpack.c.bf16 %v2778_v19, %v5579_v36 }
 0x60f   :  { %3802 = vmatprep.subr.bf16.mxu0 %v3801_v13  ;;  %v2864_v12 = vpop.permute.xlu0 %2863 }
 0x610   :  { %v2822_v6 = vpop.permute.xlu1 %2821  ;;  %3804 = vmatpush1.bf16.msra.mxu0 %v3803_v50  ;;  %v2970_v8 = vld [vmem:[#allocation6 + $0x3a8] sm:$0xff] }
 0x611   :  { %v2829_v30 = vsel %vm2038_vm2, %v2820_v58, %v2822_v6  ;;  %2844 = vst.msk [vmem:[#allocation6 + $0x3c8] sm:$0xff] %vm2475_vm5, %v2822_v6  ;;  %3806 = vmatprep.subr.bf16.mxu0 %v3805_v43  ;;  %v3813_v2 = vpack.c.bf16 %v2970_v8, %v2968_v60 }
 0x613   :  { %v2868_v16 = vpop.permute.xlu0 %2867 }
 0x614   :  { %v2826_v32 = vpop.permute.xlu1 %2825  ;;  %3808 = vmatpush1.bf16.msra.mxu0 %v3807_v15  ;;  %v2966_v55 = vld [vmem:[#allocation6 + $0x368] sm:$0xff] }
 0x615   :  { %v2830_v27 = vsel %vm2038_vm2, %v2824_v51, %v2826_v32  ;;  %2846 = vst.msk [vmem:[#allocation6 + $0x3e8] sm:$0xff] %vm2475_vm5, %v2826_v32  ;;  %v3809_v49 = vpack.c.bf16 %v2966_v55, %v2964_v62 }
 0x616   :  { %v3819_v36 = vpack.c.bf16 %v2830_v27, %v2829_v30 }
 0x617   :  { %3810 = vmatprep.subr.bf16.mxu0 %v3809_v49  ;;  %v2872_v34 = vpop.permute.xlu0 %2871 }
 0x618   :  { %v2866_v20 = vpop.permute.xlu1 %2865  ;;  %3812 = vmatpush1.bf16.msra.mxu0 %v3811_v23  ;;  %v2972_v56 = vld [vmem:[#allocation6 + $0x3c8] sm:$0xff] }
 0x619   :  { %v2879_v42 = vsel %vm2111_vm3, %v2864_v12, %v2866_v20  ;;  %2892 = vst.msk [vmem:[#allocation6 + $0x408] sm:$0xff] %vm2475_vm5, %v2866_v20  ;;  %3814 = vmatprep.subr.bf16.mxu0 %v3813_v2 }
 0x61b   :  { %v2876_v18 = vpop.permute.xlu0 %2875 }
 0x61c   :  { %v2870_v9 = vpop.permute.xlu1 %2869  ;;  %3816 = vmatpush1.bf16.msra.mxu0 %v3815_v0  ;;  %v2974_v59 = vld [vmem:[#allocation6 + $0x3e8] sm:$0xff] }
 0x61d   :  { %v2880_v10 = vsel %vm2111_vm3, %v2868_v16, %v2870_v9  ;;  %2894 = vst.msk [vmem:[#allocation6 + $0x428] sm:$0xff] %vm2475_vm5, %v2870_v9  ;;  %v3817_v63 = vpack.c.bf16 %v2974_v59, %v2972_v56 }
 0x61e   :  { %v3823_v3 = vpack.c.bf16 %v2880_v10, %v2879_v42 }
 0x61f   :  { %3818 = vmatprep.subr.bf16.mxu0 %v3817_v63 }
 0x620   :  { %v2874_v25 = vpop.permute.xlu1 %2873  ;;  %3820 = vmatpush1.bf16.msra.mxu0 %v3819_v36  ;;  %v2976_v26 = vld [vmem:[#allocation6 + $0x408] sm:$0xff] }
 0x621   :  { %v2881_v11 = vsel %vm2111_vm3, %v2872_v34, %v2874_v25  ;;  %2896 = vst.msk [vmem:[#allocation6 + $0x448] sm:$0xff] %vm2475_vm5, %v2874_v25 }
 0x623   :  { %3084 = vmatmul.mubr.f32.vlgmr.msra.gmra.mrb[8].mxu0 %v2899_v35 }
 0x624   :  { %v2878_v7 = vpop.permute.xlu1 %2877  ;;  %3089 = vmatprep.mubr.f32.mxu0 %v2903_v46  ;;  %v2978_v57 = vld [vmem:[#allocation6 + $0x428] sm:$0xff] }
 0x625   :  { %v2882_v41 = vsel %vm2111_vm3, %v2876_v18, %v2878_v7  ;;  %2898 = vst.msk [vmem:[#allocation6 + $0x468] sm:$0xff] %vm2475_vm5, %v2878_v7  ;;  %v3821_v48 = vpack.c.bf16 %v2978_v57, %v2976_v26  ;;  %vm3277_vm3 = vcmask 7168  }
 0x626   :  { %v3827_v31 = vpack.c.bf16 %v2882_v41, %v2881_v11 }
 0x627   :  { %3090 = vmatmul.mubr.f32.gmra.mrb[10].mxu0 %v2902_v45  ;;  %3822 = vmatprep.subr.bf16.mxu0 %v3821_v48 }
 0x628   :  { %3824 = vmatpush1.bf16.msra.mxu0 %v3823_v3  ;;  %3095 = vmatprep.mubr.f32.mxu0 %v2906_v22  ;;  %v2980_v44 = vld [vmem:[#allocation6 + $0x448] sm:$0xff] }
 0x62b   :  { %3096 = vmatmul.mubr.f32.gmra.mrb[12].mxu0 %v2905_v54 }
 0x62c   :  { %3101 = vmatprep.mubr.f32.mxu0 %v2909_v33  ;;  %v2982_v38 = vld [vmem:[#allocation6 + $0x468] sm:$0xff]  ;;  %v2990_v61 = vpop.permute.xlu0 %2989 }
 0x62d   :  { %v3825_v21 = vpack.c.bf16 %v2982_v38, %v2980_v44 }
 0x62f   :  { %3102 = vmatmul.mubr.f32.gmra.mrb[14].mxu0 %v2908_v4  ;;  %3826 = vmatprep.subr.bf16.mxu0 %v3825_v21 }
 0x630   :  { %3828 = vmatpush1.bf16.msra.mxu0 %v3827_v31  ;;  %3172 = vmatprep.mubr.f32.mxu0 %v5711_v1  ;;  %v3005_v49 = vpop.permute.xlu0 %3004 }
 0x633   :  { %3462 = vmatmul.mubr.msk.f32.vlgmr.msra.gmra.mrb[8].mxu0 %vm1169_vm12, %v2901_v37 }
 0x634   :  { %3178 = vmatprep.mubr.f32.mxu0 %v5711_v1 }
 0x635   :  { %v2995_v29 = vpop.permute.xlu1 %2994 }
 0x637   :  { %3463 = vmatmul.mubr.msk.f32.gmra.mrb[10].mxu0 %vm1169_vm12, %v2904_v52 }
 0x638   :  { %3184 = vmatprep.mubr.f32.mxu0 %v5711_v1 }
 0x639   :  { %v3000_v28 = vpop.permute.xlu1 %2999 }
 0x63b   :  { %3464 = vmatmul.mubr.msk.f32.gmra.mrb[12].mxu0 %vm1169_vm12, %v2907_v39  ;;  %v3934_v39 = vmov 0.0|0.0  }
 0x63c   :  { %3190 = vmatprep.mubr.f32.mxu0 %v5711_v1  ;;  %3829 = vmatprep.subr.bf16.mxu1 %v3934_v39 }
 0x63f   :  { %3465 = vmatmul.mubr.msk.f32.gmra.mrb[14].mxu0 %vm1169_vm12, %v2910_v5 }
 0x706   :  { %v3174_v58 = vpop.f32.mrb[8].mxu0 }
 0x707   :  { %v3851_v14 = vadd.f32 %v3174_v58, %v2990_v61  ;;  %v3176_v17 = vpop.f32.mrb[9].mxu0 }
 0x708   :  { %v3852_v24 = vadd.f32 %v3176_v17, %v2990_v61 }
 0x709   :  { %vm3197_vm4 = vcmp.ge.f32.partialorder %v3851_v14, 0.0  ;;  %v3205_v53 = vmul.f32 0.01, %v3851_v14 }
 0x70a   :  { %vm3198_vm8 = vcmp.ge.f32.partialorder %v3852_v24, 0.0  ;;  %v3206_v47 = vmul.f32 0.01, %v3852_v24  ;;  %v3180_v40 = vpop.f32.mrb[10].mxu0 }
 0x70b   :  { %v3213_v51 = vsel %vm3197_vm4, %v3851_v14, %v3205_v53  ;;  %v3853_v19 = vadd.f32 %v3180_v40, %v2995_v29  ;;  %v3182_v13 = vpop.f32.mrb[11].mxu0 }
 0x70c   :  { %v3214_v50 = vsel %vm3198_vm8, %v3852_v24, %v3206_v47  ;;  %v3854_v43 = vadd.f32 %v3182_v13, %v2995_v29 }
 0x70d   :  { %3222 = vst.msk [vmem:[#allocation5 + $0x8] sm:$0xff] %vm2475_vm5, %v3214_v50  ;;  %vm3199_vm11 = vcmp.ge.f32.partialorder %v3853_v19, 0.0  ;;  %v3207_v6 = vmul.f32 0.01, %v3853_v19 }
 0x70e   :  { %vm3200_vm15 = vcmp.ge.f32.partialorder %v3854_v43, 0.0  ;;  %v3208_v30 = vmul.f32 0.01, %v3854_v43  ;;  %v3186_v15 = vpop.f32.mrb[12].mxu0 }
 0x70f   :  { %v3215_v12 = vsel %vm3199_vm11, %v3853_v19, %v3207_v6  ;;  %v3855_v32 = vadd.f32 %v3186_v15, %v3000_v28  ;;  %v3188_v62 = vpop.f32.mrb[13].mxu0 }
 0x710   :  { %v3216_v55 = vsel %vm3200_vm15, %v3854_v43, %v3208_v30  ;;  %v3856_v8 = vadd.f32 %v3188_v62, %v3000_v28  ;;  %v3429_v28 = vld [vmem:[%s5692_s3] sm:$0x3]  ;;  %v3936_v43 = vmov 4  }
 0x711   :  { %3224 = vst.msk [vmem:[#allocation5 + $0x28] sm:$0xff] %vm2475_vm5, %v3216_v55  ;;  %vm3201_vm9 = vcmp.ge.f32.partialorder %v3855_v32, 0.0  ;;  %v3209_v27 = vmul.f32 0.01, %v3855_v32  ;;  %3913 = vset.pattern.permute.xlu1 %v3936_v43  ;;  %3914 = vset.pattern.permute.xlu0 %v3936_v43 }
 0x712   :  { %vm3202_vm0 = vcmp.ge.f32.partialorder %v3856_v8, 0.0  ;;  %v3210_v23 = vmul.f32 0.01, %v3856_v8  ;;  %v3192_v60 = vpop.f32.mrb[14].mxu0 }
 0x713   :  { %v3217_v2 = vsel %vm3201_vm9, %v3855_v32, %v3209_v27  ;;  %v3857_v20 = vadd.f32 %v3192_v60, %v3005_v49  ;;  %v3194_v16 = vpop.f32.mrb[15].mxu0 }
 0x714   :  { %v3218_v42 = vsel %vm3202_vm0, %v3856_v8, %v3210_v23  ;;  %v3858_v0 = vadd.f32 %v3194_v16, %v3005_v49  ;;  %v3282_v9 = vld [vmem:[#allocation5 + $0x8] sm:$0xff]  ;;  %v3351_v16 = vld [vmem:[%s5695_s4] sm:$0xff] }
 0x715   :  { %3226 = vst.msk [vmem:[#allocation5 + $0x48] sm:$0xff] %vm2475_vm5, %v3218_v42  ;;  %vm3203_vm1 = vcmp.ge.f32.partialorder %v3857_v20, 0.0  ;;  %v3211_v56 = vmul.f32 0.01, %v3857_v20  ;;  %3290 = vrot.lane.b32.xlu1 %v3282_v9, %s3922_s18 }
 0x716   :  { %vm3204_vm2 = vcmp.ge.f32.partialorder %v3858_v0, 0.0  ;;  %v3212_v59 = vmul.f32 0.01, %v3858_v0 }
 0x717   :  { %v3219_v10 = vsel %vm3203_vm1, %v3857_v20, %v3211_v56 }
 0x718   :  { %v3220_v63 = vsel %vm3204_vm2, %v3858_v0, %v3212_v59  ;;  %v3283_v34 = vld [vmem:[#allocation5 + $0x28] sm:$0xff] }
 0x719   :  { %3228 = vst.msk [vmem:[#allocation5 + $0x68] sm:$0xff] %vm2475_vm5, %v3220_v63  ;;  %3292 = vrot.lane.b32.xlu0 %v3283_v34, %s3922_s18 }
 0x71c   :  { %v3284_v36 = vld [vmem:[#allocation5 + $0x48] sm:$0xff] }
 0x71d   :  { %3294 = vrot.lane.b32.xlu1 %v3284_v36, %s3922_s18 }
 0x720   :  { %v3285_v25 = vld [vmem:[#allocation5 + $0x68] sm:$0xff] }
 0x721   :  { %3296 = vrot.lane.b32.xlu0 %v3285_v25, %s3922_s18  ;;  %3237 = vrot.lane.b32.xlu1 %v3213_v51, %s3922_s18 }
 0x725   :  { %3239 = vrot.lane.b32.xlu0 %v3215_v12, %s3922_s18  ;;  %3241 = vrot.lane.b32.xlu1 %v3217_v2, %s3922_s18 }
 0x729   :  { %3243 = vrot.lane.b32.xlu0 %v3219_v10, %s3922_s18 }
 0x787   :  { %v3291_v35 = vpop.permute.xlu1 %3290 }
 0x788   :  { %v3302_v11 = vadd.f32 %v3291_v35, %v3282_v9 }
 0x78a   :  { %3310 = vrot.lane.b32.xlu1 %v3302_v11, %s3918_s1 }
 0x78b   :  { %v3293_v46 = vpop.permute.xlu0 %3292 }
 0x78c   :  { %v3303_v18 = vadd.f32 %v3293_v46, %v3283_v34 }
 0x78e   :  { %3312 = vrot.lane.b32.xlu0 %v3303_v18, %s3918_s1 }
 0x78f   :  { %v3295_v7 = vpop.permute.xlu1 %3294 }
 0x790   :  { %v3304_v45 = vadd.f32 %v3295_v7, %v3284_v36 }
 0x792   :  { %3314 = vrot.lane.b32.xlu1 %v3304_v45, %s3918_s1 }
 0x793   :  { %v3297_v26 = vpop.permute.xlu0 %3296  ;;  %v3238_v57 = vpop.permute.xlu1 %3237 }
 0x794   :  { %v3305_v41 = vadd.f32 %v3297_v26, %v3285_v25  ;;  %v3249_v48 = vadd.f32 %v3238_v57, %v3213_v51 }
 0x796   :  { %3316 = vrot.lane.b32.xlu0 %v3305_v41, %s3918_s1  ;;  %3257 = vrot.lane.b32.xlu1 %v3249_v48, %s3918_s1 }
 0x797   :  { %v3240_v22 = vpop.permute.xlu0 %3239  ;;  %v3242_v3 = vpop.permute.xlu1 %3241 }
 0x798   :  { %v3250_v54 = vadd.f32 %v3240_v22, %v3215_v12  ;;  %v3251_v33 = vadd.f32 %v3242_v3, %v3217_v2 }
 0x79a   :  { %3259 = vrot.lane.b32.xlu0 %v3250_v54, %s3918_s1  ;;  %3261 = vrot.lane.b32.xlu1 %v3251_v33, %s3918_s1 }
 0x79b   :  { %v3244_v4 = vpop.permute.xlu0 %3243 }
 0x79c   :  { %v3252_v44 = vadd.f32 %v3244_v4, %v3219_v10 }
 0x79e   :  { %3263 = vrot.lane.b32.xlu0 %v3252_v44, %s3918_s1 }
 0x7fc   :  { %v3311_v38 = vpop.permute.xlu1 %3310 }
 0x7fd   :  { %v3322_v21 = vadd.f32 %v3311_v38, %v3302_v11 }
 0x7ff   :  { %v3326_v31 = vmul.f32 0.25, %v3322_v21 }
 0x800   :  { %v3313_v37 = vpop.permute.xlu0 %3312 }
 0x801   :  { %v3323_v52 = vadd.f32 %v3313_v37, %v3303_v18  ;;  %3334 = vrot.lane.b32.xlu1 %v3326_v31, %s3933_s2 }
 0x803   :  { %v3327_v5 = vmul.f32 0.25, %v3323_v52 }
 0x804   :  { %v3315_v61 = vpop.permute.xlu1 %3314 }
 0x805   :  { %v3324_v58 = vadd.f32 %v3315_v61, %v3304_v45  ;;  %3336 = vrot.lane.b32.xlu0 %v3327_v5, %s3933_s2 }
 0x807   :  { %v3328_v29 = vmul.f32 0.25, %v3324_v58 }
 0x808   :  { %v3317_v14 = vpop.permute.xlu0 %3316  ;;  %v3258_v17 = vpop.permute.xlu1 %3257 }
 0x809   :  { %v3325_v24 = vadd.f32 %v3317_v14, %v3305_v41  ;;  %v3269_v53 = vadd.f32 %v3258_v17, %v3249_v48  ;;  %3338 = vrot.lane.b32.xlu1 %v3328_v29, %s3933_s2 }
 0x80b   :  { %v3329_v47 = vmul.f32 0.25, %v3325_v24  ;;  %v3273_v40 = vmul.f32 0.25, %v3269_v53 }
 0x80c   :  { %v3260_v51 = vpop.permute.xlu0 %3259  ;;  %v3262_v19 = vpop.permute.xlu1 %3261 }
 0x80d   :  { %3278 = vst.msk [vmem:[#allocation7] sm:$0xff] %vm3277_vm3, %v3273_v40  ;;  %v3270_v13 = vadd.f32 %v3260_v51, %v3250_v54  ;;  %v3271_v50 = vadd.f32 %v3262_v19, %v3251_v33  ;;  %3340 = vrot.lane.b32.xlu0 %v3329_v47, %s3933_s2  ;;  %3432 = vperm.xlu1 %3913, %v3429_v28  }
 0x80f   :  { %v3274_v6 = vmul.f32 0.25, %v3270_v13  ;;  %v3275_v30 = vmul.f32 0.25, %v3271_v50 }
 0x810   :  { %v3264_v15 = vpop.permute.xlu0 %3263 }
 0x811   :  { %3279 = vst.msk [vmem:[#allocation7 + $0x8] sm:$0xff] %vm3277_vm3, %v3274_v6  ;;  %3280 = vst.msk [vmem:[#allocation7 + $0x10] sm:$0xff] %vm3277_vm3, %v3275_v30  ;;  %v3272_v1 = vadd.f32 %v3264_v15, %v3252_v44 }
 0x813   :  { %v3276_v12 = vmul.f32 0.25, %v3272_v1 }
 0x815   :  { %3281 = vst.msk [vmem:[#allocation7 + $0x18] sm:$0xff] %vm3277_vm3, %v3276_v12 }
 0x873   :  { %v3335_v32 = vpop.permute.xlu1 %3334 }
 0x874   :  { %3347 = vst.msk [vmem:[#allocation7] sm:$0xff] %vm3346_vm13, %v3335_v32 }
 0x877   :  { %v3337_v62 = vpop.permute.xlu0 %3336 }
 0x878   :  { %3348 = vst.msk [vmem:[#allocation7 + $0x8] sm:$0xff] %vm3346_vm13, %v3337_v62 }
 0x87b   :  { %v3339_v55 = vpop.permute.xlu1 %3338  ;;  %v3352_v27 = vld [vmem:[#allocation7] sm:$0xff] }
 0x87c   :  { %3349 = vst.msk [vmem:[#allocation7 + $0x10] sm:$0xff] %vm3346_vm13, %v3339_v55 }
 0x87f   :  { %v3341_v8 = vpop.permute.xlu0 %3340  ;;  %v3353_v49 = vld [vmem:[#allocation7 + $0x8] sm:$0xff] }
 0x880   :  { %3350 = vst.msk [vmem:[#allocation7 + $0x18] sm:$0xff] %vm3346_vm13, %v3341_v8  ;;  %v3830_v23 = vpack.c.bf16 %v3353_v49, %v3352_v27 }
 0x882   :  { %3831 = vmatpush3.bf16.msra.mxu1 %v3830_v23 }
 0x883   :  { %3832 = vmatprep.subr.bf16.mxu1 %v3934_v39  ;;  %v3354_v60 = vld [vmem:[#allocation7 + $0x10] sm:$0xff] }
 0x887   :  { %v3355_v2 = vld [vmem:[#allocation7 + $0x18] sm:$0xff] }
 0x888   :  { %v3833_v20 = vpack.c.bf16 %v3355_v2, %v3354_v60 }
 0x88a   :  { %3834 = vmatpush3.bf16.msra.mxu1 %v3833_v20 }
 0x88c   :  { %v3433_v42 = vpop.permute.xlu1 %3432 }
 0x88d   :  { %3547 = vmatmul.mubr.msk.f32.vlgmr.msra.gmra.mrb[36].mxu1 %vm1169_vm12, %v3351_v16 }
 0x960   :  { %v3425_v0 = vpop.f32.mrb[36].mxu1 }
 0x961   :  { %v3548_v9 = vpop.f32.mrb[37].mxu1  ;;  %v3435_v56 = vadd.f32 %v3433_v42, %v3425_v0 }
 0x963   :  { %3437 = vst.msk [vmem:[%s5696_s5] sm:$0x3] %vm3436_vm14, %v3435_v56 }

</bundles_post_ra>
